<compile_context>
chip_gen: v5e
topology: v5e:2x2
jax: 0.10.0
libtpu: 0.0.40
codegen_flags: <defaults>
</compile_context>

<pallas_src>
import jax
import jax.numpy as jnp
from jax.experimental import pallas as pl
from jax.experimental.pallas import tpu as pltpu

# Logical (PyTorch) layer widths.
DIMS = [784, 520, 320, 240, 120, 10]
# Lane-padded widths at each layer boundary.  The input width (784) is kept
# UNPADDED so the wrapper never materializes a padded copy of x; all hidden /
# output widths are padded to multiples of 128 for lane-dense compute/stores.
PAD = [784, 640, 384, 256, 128, 128]


def _round_up(n, m):
    return (n + m - 1) // m * m


def _cdiv(a, b):
    return (a + b - 1) // b


def mlp_kernel(x_ref,
               w1_ref, b1_ref,
               w2_ref, b2_ref,
               w3_ref, b3_ref,
               w4_ref, b4_ref,
               w5_ref, b5_ref,
               o_ref):
    """Fused 5-layer MLP on one (TB, 784) batch tile.

    Matmul operands are bf16 (MXU-native on v5e/v6e/v7x) with f32
    accumulation; bias-add and ReLU run in f32 on the VPU.  The input is cast
    to bf16 in-kernel (cheaper than an extra HBM pad/cast pass in the
    wrapper); hidden and output widths are multiples of 128 so every
    intermediate and the final store are lane-dense.
    """
    def layer(h_bf16, w_ref, b_ref, relu):
        a = jnp.dot(h_bf16, w_ref[...], preferred_element_type=jnp.float32)
        a = a + b_ref[...]
        if relu:
            a = jnp.maximum(a, 0.0)
        return a

    h = x_ref[...].astype(jnp.bfloat16)                       # (TB, 784)
    h = layer(h, w1_ref, b1_ref, True).astype(jnp.bfloat16)   # (TB, 640)
    h = layer(h, w2_ref, b2_ref, True).astype(jnp.bfloat16)   # (TB, 384)
    h = layer(h, w3_ref, b3_ref, True).astype(jnp.bfloat16)   # (TB, 256)
    h = layer(h, w4_ref, b4_ref, True).astype(jnp.bfloat16)   # (TB, 128)
    o_ref[...] = layer(h, w5_ref, b5_ref, False)               # f32 (TB, 128)


def prepare_params(params):
    """Pad weights/biases to lane-aligned shapes and cast weights to bf16.

    Call ONCE (after init / after each training update), NOT per forward —
    this is the wrapper work the perf review flagged as dominating small-batch
    latency.  Returns a flat tuple (w1,b1,...,w5,b5) ready for net_forward.
    """
    flat = []
    for i, (w, b) in enumerate(params):
        in_d, out_d = DIMS[i], DIMS[i + 1]
        in_p, out_p = PAD[i], PAD[i + 1]
        w_p = jnp.zeros((in_p, out_p), jnp.bfloat16)
        w_p = w_p.at[:in_d, :out_d].set(w.astype(jnp.bfloat16))
        b_p = jnp.zeros((1, out_p), jnp.float32)
        b_p = b_p.at[:, :out_d].set(b.reshape(1, out_d).astype(jnp.float32))
        flat += [w_p, b_p]
    return tuple(flat)


def _pick_batch_tile(B, max_tile=512):
    """Batch-tile selection (per perf review):

      * B <= 256         : one tile, rounded up to 16 rows (bf16 sublane pack)
      * pad-waste cliff  : for 256 < B <= 512 where padding to a multiple of
                           256 would waste >25% rows, use one 16-aligned tile
      * otherwise        : largest multiple of 256 <= max_tile that keeps
                           >=2 grid steps (both v7x TensorCores busy; >=4 when
                           the batch allows, so the input DMA pipelines) and
                           <=25% padded rows.
    """
    if B <= 256:
        return _round_up(max(B, 1), 16)
    if B <= 512:
        b256 = _round_up(B, 256)
        if 4 * (b256 - B) > b256:          # >25% dead rows at TB=256
            return _round_up(B, 16)        # single, exact-ish tile
    tb = 256
    min_steps = 4 if B >= 1024 else 2
    for cand in range(512, max_tile + 1, 256):
        steps = _cdiv(B, cand)
        pad = steps * cand - B
        if steps >= min_steps and 4 * pad <= steps * cand:
            tb = cand
    return tb


def net_forward(x, padded_params, *, max_batch_tile=512):
    """x: (B, 1, 28, 28) or (B, 784). padded_params: output of prepare_params.

    Returns (B, 10) f32 logits.
    """
    x2d = x.reshape(-1, DIMS[0])            # free reshape, keep caller's dtype
    B = x2d.shape[0]

    TB = _pick_batch_tile(B, max_batch_tile)
    B_pad = _round_up(B, TB)
    if B_pad != B:                          # only the ragged case copies x
        x2d = jnp.pad(x2d, ((0, B_pad - B), (0, 0)))

    grid = (B_pad // TB,)

    # x / out are tiled along the batch grid; weights & biases use constant
    # index maps so they are DMA'd once and stay resident in VMEM.
    in_specs = [pl.BlockSpec((TB, PAD[0]), lambda i: (i, 0))]
    for li in range(5):
        in_p, out_p = PAD[li], PAD[li + 1]
        in_specs.append(pl.BlockSpec((in_p, out_p), lambda i: (0, 0)))
        in_specs.append(pl.BlockSpec((1, out_p), lambda i: (0, 0)))
    out_spec = pl.BlockSpec((TB, PAD[-1]), lambda i: (i, 0))

    flops = 2 * B_pad * sum(PAD[i] * PAD[i + 1] for i in range(5))
    weight_bytes = sum(int(a.size) * a.dtype.itemsize for a in padded_params)
    bytes_accessed = (int(x2d.size) * x2d.dtype.itemsize   # input (no pad pass)
                      + B_pad * PAD[-1] * 4                # f32 output
                      + weight_bytes)

    out_padded = pl.pallas_call(
        mlp_kernel,
        out_shape=jax.ShapeDtypeStruct((B_pad, PAD[-1]), jnp.float32),
        grid=grid,
        in_specs=in_specs,
        out_specs=out_spec,
        compiler_params=pltpu.CompilerParams(
            dimension_semantics=("parallel",),
            vmem_limit_bytes=32 * 1024 * 1024,
        ),
        cost_estimate=pl.CostEstimate(
            flops=flops, transcendentals=0, bytes_accessed=bytes_accessed),
    )(x2d, *padded_params)

    return out_padded[:B, :DIMS[-1]]


def init_params(key):
    """Deterministic synthetic parameters with PyTorch Linear semantics.

    Layer i has W of shape (in_i, out_i) and b of shape (1, out_i) in f32.
    """
    params = []
    for i in range(len(DIMS) - 1):
        key, kw, kb = jax.random.split(key, 3)
        fan_in, fan_out = DIMS[i], DIMS[i + 1]
        bound = 1.0 / (fan_in ** 0.5)  # same scale as torch's default init
        w = jax.random.uniform(kw, (fan_in, fan_out), jnp.float32,
                               minval=-bound, maxval=bound)
        b = jax.random.uniform(kb, (1, fan_out), jnp.float32,
                               minval=-bound, maxval=bound)
        params.append((w, b))
    return params


def reference_forward(x, params):
    """Plain-JAX f32 reference for correctness checking."""
    h = x.reshape(-1, DIMS[0]).astype(jnp.float32)
    for i, (w, b) in enumerate(params):
        h = h @ w + b
        if i < len(params) - 1:
            h = jnp.maximum(h, 0.0)
    return h


if __name__ == "__main__":
    key = jax.random.PRNGKey(0)
    key, kx = jax.random.split(key)

    # Small MNIST-like batch: (B=2, C=1, H=28, W=28), NCHW like the torch code.
    x = jax.random.normal(kx, (2, 1, 28, 28), jnp.float32)
    params = init_params(key)

    # Pad / cast the parameters ONCE (hoisted out of the per-call path).
    padded_params = prepare_params(params)

    out = net_forward(x, padded_params)
    out = jax.block_until_ready(out)

    ref = reference_forward(x, params)
    assert out.shape == (2, 10)
    # bf16 matmul operands (f32 accumulate) => loosened tolerance vs f32 ref.
    assert jnp.allclose(out, ref, atol=2e-2, rtol=2e-2), "mismatch vs reference"

    print("KERNEL_OK")
</pallas_src>

<mosaic_0001>
module attributes {stable_mosaic.version = 11 : i64} {
  func.func @mlp_kernel(%arg0: i32, %arg1: memref<16x784xf32, #tpu.memory_space<vmem>>, %arg2: memref<784x640xbf16, #tpu.memory_space<vmem>>, %arg3: memref<1x640xf32, #tpu.memory_space<vmem>>, %arg4: memref<640x384xbf16, #tpu.memory_space<vmem>>, %arg5: memref<1x384xf32, #tpu.memory_space<vmem>>, %arg6: memref<384x256xbf16, #tpu.memory_space<vmem>>, %arg7: memref<1x256xf32, #tpu.memory_space<vmem>>, %arg8: memref<256x128xbf16, #tpu.memory_space<vmem>>, %arg9: memref<1x128xf32, #tpu.memory_space<vmem>>, %arg10: memref<128x128xbf16, #tpu.memory_space<vmem>>, %arg11: memref<1x128xf32, #tpu.memory_space<vmem>>, %arg12: memref<16x128xf32, #tpu.memory_space<vmem>>) attributes {dimension_semantics = [#tpu.dimension_semantics<parallel>], iteration_bounds = array<i64: 1>, scalar_prefetch = 0 : i64, scratch_operands = 0 : i64, tpu.core_type = #tpu.core_type<tc>, window_params = [{transform_indices = @transform_0, window_bounds = array<i64: 16, 784>}, {pipeline_mode = #tpu.pipeline_mode<synchronous>, transform_indices = @transform_1, window_bounds = array<i64: 784, 640>}, {pipeline_mode = #tpu.pipeline_mode<synchronous>, transform_indices = @transform_2, window_bounds = array<i64: 1, 640>}, {pipeline_mode = #tpu.pipeline_mode<synchronous>, transform_indices = @transform_3, window_bounds = array<i64: 640, 384>}, {pipeline_mode = #tpu.pipeline_mode<synchronous>, transform_indices = @transform_4, window_bounds = array<i64: 1, 384>}, {pipeline_mode = #tpu.pipeline_mode<synchronous>, transform_indices = @transform_5, window_bounds = array<i64: 384, 256>}, {pipeline_mode = #tpu.pipeline_mode<synchronous>, transform_indices = @transform_6, window_bounds = array<i64: 1, 256>}, {pipeline_mode = #tpu.pipeline_mode<synchronous>, transform_indices = @transform_7, window_bounds = array<i64: 256, 128>}, {pipeline_mode = #tpu.pipeline_mode<synchronous>, transform_indices = @transform_8, window_bounds = array<i64: 1, 128>}, {pipeline_mode = #tpu.pipeline_mode<synchronous>, transform_indices = @transform_9, window_bounds = array<i64: 128, 128>}, {pipeline_mode = #tpu.pipeline_mode<synchronous>, transform_indices = @transform_10, window_bounds = array<i64: 1, 128>}, {transform_indices = @transform_11, window_bounds = array<i64: 16, 128>}]} {
    %c0 = arith.constant 0 : index
    %c0_0 = arith.constant 0 : index
    %0 = vector.load %arg1[%c0, %c0_0] : memref<16x784xf32, #tpu.memory_space<vmem>>, vector<16x784xf32>
    %1 = arith.truncf %0 : vector<16x784xf32> to vector<16x784xbf16>
    %c0_1 = arith.constant 0 : index
    %c0_2 = arith.constant 0 : index
    %2 = vector.load %arg2[%c0_1, %c0_2] : memref<784x640xbf16, #tpu.memory_space<vmem>>, vector<784x640xbf16>
    %cst = arith.constant dense<0.000000e+00> : vector<16x640xf32>
    %3 = tpu.matmul %1, %2, %cst {dimension_numbers = #tpu.dot_dimension_numbers<[1], [0], [0], [1], [0, 0, 1, 1], [], []>} : vector<16x784xbf16>, vector<784x640xbf16>, vector<16x640xf32> -> vector<16x640xf32>
    %c0_3 = arith.constant 0 : index
    %c0_4 = arith.constant 0 : index
    %4 = vector.load %arg3[%c0_3, %c0_4] : memref<1x640xf32, #tpu.memory_space<vmem>>, vector<1x640xf32>
    %5 = vector.broadcast %4 : vector<1x640xf32> to vector<16x640xf32>
    %6 = arith.addf %3, %5 : vector<16x640xf32>
    %cst_5 = arith.constant 0.000000e+00 : f32
    %7 = vector.broadcast %cst_5 : f32 to vector<16x640xf32>
    %8 = arith.maximumf %6, %7 : vector<16x640xf32>
    %9 = arith.truncf %8 : vector<16x640xf32> to vector<16x640xbf16>
    %c0_6 = arith.constant 0 : index
    %c0_7 = arith.constant 0 : index
    %10 = vector.load %arg4[%c0_6, %c0_7] : memref<640x384xbf16, #tpu.memory_space<vmem>>, vector<640x384xbf16>
    %cst_8 = arith.constant dense<0.000000e+00> : vector<16x384xf32>
    %11 = tpu.matmul %9, %10, %cst_8 {dimension_numbers = #tpu.dot_dimension_numbers<[1], [0], [0], [1], [0, 0, 1, 1], [], []>} : vector<16x640xbf16>, vector<640x384xbf16>, vector<16x384xf32> -> vector<16x384xf32>
    %c0_9 = arith.constant 0 : index
    %c0_10 = arith.constant 0 : index
    %12 = vector.load %arg5[%c0_9, %c0_10] : memref<1x384xf32, #tpu.memory_space<vmem>>, vector<1x384xf32>
    %13 = vector.broadcast %12 : vector<1x384xf32> to vector<16x384xf32>
    %14 = arith.addf %11, %13 : vector<16x384xf32>
    %cst_11 = arith.constant 0.000000e+00 : f32
    %15 = vector.broadcast %cst_11 : f32 to vector<16x384xf32>
    %16 = arith.maximumf %14, %15 : vector<16x384xf32>
    %17 = arith.truncf %16 : vector<16x384xf32> to vector<16x384xbf16>
    %c0_12 = arith.constant 0 : index
    %c0_13 = arith.constant 0 : index
    %18 = vector.load %arg6[%c0_12, %c0_13] : memref<384x256xbf16, #tpu.memory_space<vmem>>, vector<384x256xbf16>
    %cst_14 = arith.constant dense<0.000000e+00> : vector<16x256xf32>
    %19 = tpu.matmul %17, %18, %cst_14 {dimension_numbers = #tpu.dot_dimension_numbers<[1], [0], [0], [1], [0, 0, 1, 1], [], []>} : vector<16x384xbf16>, vector<384x256xbf16>, vector<16x256xf32> -> vector<16x256xf32>
    %c0_15 = arith.constant 0 : index
    %c0_16 = arith.constant 0 : index
    %20 = vector.load %arg7[%c0_15, %c0_16] : memref<1x256xf32, #tpu.memory_space<vmem>>, vector<1x256xf32>
    %21 = vector.broadcast %20 : vector<1x256xf32> to vector<16x256xf32>
    %22 = arith.addf %19, %21 : vector<16x256xf32>
    %cst_17 = arith.constant 0.000000e+00 : f32
    %23 = vector.broadcast %cst_17 : f32 to vector<16x256xf32>
    %24 = arith.maximumf %22, %23 : vector<16x256xf32>
    %25 = arith.truncf %24 : vector<16x256xf32> to vector<16x256xbf16>
    %c0_18 = arith.constant 0 : index
    %c0_19 = arith.constant 0 : index
    %26 = vector.load %arg8[%c0_18, %c0_19] : memref<256x128xbf16, #tpu.memory_space<vmem>>, vector<256x128xbf16>
    %cst_20 = arith.constant dense<0.000000e+00> : vector<16x128xf32>
    %27 = tpu.matmul %25, %26, %cst_20 {dimension_numbers = #tpu.dot_dimension_numbers<[1], [0], [0], [1], [0, 0, 1, 1], [], []>} : vector<16x256xbf16>, vector<256x128xbf16>, vector<16x128xf32> -> vector<16x128xf32>
    %c0_21 = arith.constant 0 : index
    %c0_22 = arith.constant 0 : index
    %28 = vector.load %arg9[%c0_21, %c0_22] : memref<1x128xf32, #tpu.memory_space<vmem>>, vector<1x128xf32>
    %29 = vector.broadcast %28 : vector<1x128xf32> to vector<16x128xf32>
    %30 = arith.addf %27, %29 : vector<16x128xf32>
    %cst_23 = arith.constant 0.000000e+00 : f32
    %31 = vector.broadcast %cst_23 : f32 to vector<16x128xf32>
    %32 = arith.maximumf %30, %31 : vector<16x128xf32>
    %33 = arith.truncf %32 : vector<16x128xf32> to vector<16x128xbf16>
    %c0_24 = arith.constant 0 : index
    %c0_25 = arith.constant 0 : index
    %34 = vector.load %arg10[%c0_24, %c0_25] : memref<128x128xbf16, #tpu.memory_space<vmem>>, vector<128x128xbf16>
    %cst_26 = arith.constant dense<0.000000e+00> : vector<16x128xf32>
    %35 = tpu.matmul %33, %34, %cst_26 {dimension_numbers = #tpu.dot_dimension_numbers<[1], [0], [0], [1], [0, 0, 1, 1], [], []>} : vector<16x128xbf16>, vector<128x128xbf16>, vector<16x128xf32> -> vector<16x128xf32>
    %c0_27 = arith.constant 0 : index
    %c0_28 = arith.constant 0 : index
    %36 = vector.load %arg11[%c0_27, %c0_28] : memref<1x128xf32, #tpu.memory_space<vmem>>, vector<1x128xf32>
    %37 = vector.broadcast %36 : vector<1x128xf32> to vector<16x128xf32>
    %38 = arith.addf %35, %37 : vector<16x128xf32>
    %c0_29 = arith.constant 0 : index
    %c0_30 = arith.constant 0 : index
    %39 = vector.load %arg12[%c0_29, %c0_30] : memref<16x128xf32, #tpu.memory_space<vmem>>, vector<16x128xf32>
    tpu.vector_store %arg12[%c0_29, %c0_30], %38 {strides = array<i32>} : memref<16x128xf32, #tpu.memory_space<vmem>>, vector<16x128xf32>,
    return
  }
  func.func @transform_0(%arg0: i32) -> (i32, i32) {
    %c0_i32 = arith.constant 0 : i32
    %c0_i32_0 = arith.constant 0 : i32
    return %arg0, %c0_i32 : i32, i32
  }
  func.func @transform_1(%arg0: i32) -> (i32, i32) {
    %c0_i32 = arith.constant 0 : i32
    %c0_i32_0 = arith.constant 0 : i32
    %c0_i32_1 = arith.constant 0 : i32
    return %c0_i32, %c0_i32_0 : i32, i32
  }
  func.func @transform_2(%arg0: i32) -> (i32, i32) {
    %c0_i32 = arith.constant 0 : i32
    %c0_i32_0 = arith.constant 0 : i32
    %c0_i32_1 = arith.constant 0 : i32
    return %c0_i32, %c0_i32_0 : i32, i32
  }
  func.func @transform_3(%arg0: i32) -> (i32, i32) {
    %c0_i32 = arith.constant 0 : i32
    %c0_i32_0 = arith.constant 0 : i32
    %c0_i32_1 = arith.constant 0 : i32
    return %c0_i32, %c0_i32_0 : i32, i32
  }
  func.func @transform_4(%arg0: i32) -> (i32, i32) {
    %c0_i32 = arith.constant 0 : i32
    %c0_i32_0 = arith.constant 0 : i32
    %c0_i32_1 = arith.constant 0 : i32
    return %c0_i32, %c0_i32_0 : i32, i32
  }
  func.func @transform_5(%arg0: i32) -> (i32, i32) {
    %c0_i32 = arith.constant 0 : i32
    %c0_i32_0 = arith.constant 0 : i32
    %c0_i32_1 = arith.constant 0 : i32
    return %c0_i32, %c0_i32_0 : i32, i32
  }
  func.func @transform_6(%arg0: i32) -> (i32, i32) {
    %c0_i32 = arith.constant 0 : i32
    %c0_i32_0 = arith.constant 0 : i32
    %c0_i32_1 = arith.constant 0 : i32
    return %c0_i32, %c0_i32_0 : i32, i32
  }
  func.func @transform_7(%arg0: i32) -> (i32, i32) {
    %c0_i32 = arith.constant 0 : i32
    %c0_i32_0 = arith.constant 0 : i32
    %c0_i32_1 = arith.constant 0 : i32
    return %c0_i32, %c0_i32_0 : i32, i32
  }
  func.func @transform_8(%arg0: i32) -> (i32, i32) {
    %c0_i32 = arith.constant 0 : i32
    %c0_i32_0 = arith.constant 0 : i32
    %c0_i32_1 = arith.constant 0 : i32
    return %c0_i32, %c0_i32_0 : i32, i32
  }
  func.func @transform_9(%arg0: i32) -> (i32, i32) {
    %c0_i32 = arith.constant 0 : i32
    %c0_i32_0 = arith.constant 0 : i32
    %c0_i32_1 = arith.constant 0 : i32
    return %c0_i32, %c0_i32_0 : i32, i32
  }
  func.func @transform_10(%arg0: i32) -> (i32, i32) {
    %c0_i32 = arith.constant 0 : i32
    %c0_i32_0 = arith.constant 0 : i32
    %c0_i32_1 = arith.constant 0 : i32
    return %c0_i32, %c0_i32_0 : i32, i32
  }
  func.func @transform_11(%arg0: i32) -> (i32, i32) {
    %c0_i32 = arith.constant 0 : i32
    %c0_i32_0 = arith.constant 0 : i32
    return %arg0, %c0_i32 : i32, i32
  }
}

</mosaic_0001>

<bundles_post_ra>
// kernel: tpu_custom_call.1
= control target key start
LH: loop header
LB: loop body
LE: loop exit
PB: predicated region body
PF: predicated region fallthrough
CT: control target
= control target key end

     0   :  { %16 = vsyncpa [#allocation3], 0  ;;  %s6630_s0 = inlined_call_operand.hbm [shape: f32[16,784], index: 0, kind: input, shape index: {}]   ;;  %s6631_s1 = inlined_call_operand.hbm [shape: bf16[784,640], index: 1, kind: input, shape index: {}]   ;;  %s6632_s2 = inlined_call_operand.hbm [shape: f32[1,640], index: 2, kind: input, shape index: {}]   ;;  %s6633_s3 = inlined_call_operand.hbm [shape: bf16[640,384], index: 3, kind: input, shape index: {}]   ;;  %s6634_s4 = inlined_call_operand.vmem [shape: f32[1,384], index: 4, kind: input, shape index: {}]   ;;  %s6635_s5 = inlined_call_operand.hbm [shape: bf16[384,256], index: 5, kind: input, shape index: {}]   ;;  %s6636_s6 = inlined_call_operand.vmem [shape: f32[1,256], index: 6, kind: input, shape index: {}]   ;;  %s6637_s7 = inlined_call_operand.hbm [shape: bf16[256,128], index: 7, kind: input, shape index: {}]   ;;  %s6638_s8 = inlined_call_operand.vmem [shape: f32[1,128], index: 8, kind: input, shape index: {}]   ;;  %s6639_s9 = inlined_call_operand.hbm [shape: bf16[128,128], index: 9, kind: input, shape index: {}]   ;;  %s6640_s10 = inlined_call_operand.vmem [shape: f32[1,128], index: 10, kind: input, shape index: {}]   ;;  %s6641_s11 = inlined_call_operand.hbm [shape: f32[16,128], index: 11, kind: output, shape index: {}]  }
   0x1   :  { %17 = vsyncpa [#allocation6], 0 }
   0x2   :  { %18 = vsyncpa [#allocation9], 0 }
   0x3   :  { %19 = vsyncpa [#allocation12], 0  ;;  %s38_s19 = sshll.u32 %s6631_s1, 4  ;;  %s39_s19 = int_to_ptr.hbm [resolvable:$true] %s38_s19 }
   0x4   :  { %20 = vsyncpa [#allocation4], 0  ;;  %s6350_s20 = smov [#allocation5]   ;;  %s62_s24 = sshll.u32 %s6633_s3, 4  ;;  %s63_s24 = int_to_ptr.hbm [resolvable:$true] %s62_s24 }
   0x5   :  { %s40_s21 = sshll.u32 %s6350_s20, 4  ;;  %s6351_s25 = smov 320   ;;  %s41_s21 = int_to_ptr.vmem [resolvable:$true] %s40_s21 }
   0x6   :  { %s6352_s26 = smov 20   ;;  %s6353_s27 = smov [#allocation8]  }
   0x7   :  { %46 = dma.hbm_to_vmem [thread:$0]  %s39_s19, 31360, %s41_s21, [#allocation6], %s6351_s25, %s6351_s25, %s6352_s26  }
   0x8   :  { %s64_s28 = sshll.u32 %s6353_s27, 4  ;;  %s6354_s29 = smov 192   ;;  %s65_s28 = int_to_ptr.vmem [resolvable:$true] %s64_s28 }
   0x9   :  { %s6355_s30 = smov 12   ;;  %s92_s13 = sshll.u32 %s6637_s7, 4  ;;  %s93_s13 = int_to_ptr.hbm [resolvable:$true] %s92_s13 }
   0xa   :  { %70 = dma.hbm_to_vmem [thread:$0]  %s63_s24, 15360, %s65_s28, [#allocation9], %s6354_s29, %s6354_s29, %s6355_s30  }
   0xb   :  { %s6356_s14 = smov [#allocation11]   ;;  %s25_s17 = sshll.u32 %s6630_s0, 4  ;;  %s26_s17 = int_to_ptr.hbm [resolvable:$true] %s25_s17 }
   0xc   :  { %s94_s15 = sshll.u32 %s6356_s14, 4  ;;  %s6357_s18 = smov 64   ;;  %s95_s15 = int_to_ptr.vmem [resolvable:$true] %s94_s15 }
   0xd   :  { %s6358_s19 = smov 4   ;;  %s6359_s20 = smov [#allocation2]  }
   0xe   :  { %100 = dma.hbm_to_vmem [thread:$0]  %s93_s13, 2048, %s95_s15, [#allocation12], %s6357_s18, %s6357_s18, %s6358_s19  }
   0xf   :  { %s27_s21 = sshll.u32 %s6359_s20, 4  ;;  %s6360_s22 = smov 896   ;;  %s28_s21 = int_to_ptr.vmem [resolvable:$true] %s27_s21 }
  0x10   :  { %s6361_s7 = smov 56   ;;  %s52_s25 = sshll.u32 %s6632_s2, 4  ;;  %s53_s25 = int_to_ptr.hbm [resolvable:$true] %s52_s25 }
  0x11   :  { %33 = dma.hbm_to_vmem [thread:$0]  %s26_s17, 1792, %s28_s21, [#allocation3], %s6360_s22, %s6360_s22, %s6361_s7  }
  0x12   :  { %s6362_s26 = smov [#allocation7]   ;;  %s77_s29 = sshll.u32 %s6635_s5, 4  ;;  %s78_s29 = int_to_ptr.hbm [resolvable:$true] %s77_s29 }
  0x13   :  { %s54_s0 = sshll.u32 %s6362_s26, 4  ;;  %s6363_s30 = smov [#allocation10]   ;;  %s55_s0 = int_to_ptr.vmem [resolvable:$true] %s54_s0 }
  0x14   :  { %57 = dma.hbm_to_vmem [thread:$0]  %s53_s25, 80, %s55_s0, [#allocation6]  }
  0x15   :  { %s79_s1 = sshll.u32 %s6363_s30, 4  ;;  %s6364_s12 = smov 128   ;;  %s80_s1 = int_to_ptr.vmem [resolvable:$true] %s79_s1 }
  0x16   :  { %s6365_s13 = smov 8   ;;  %s107_s15 = sshll.u32 %s6639_s9, 4  ;;  %s108_s15 = int_to_ptr.hbm [resolvable:$true] %s107_s15 }
  0x17   :  { %85 = dma.hbm_to_vmem [thread:$0]  %s78_s29, 6144, %s80_s1, [#allocation9], %s6364_s12, %s6364_s12, %s6365_s13  }
  0x18   :  { %s6366_s16 = smov [#allocation13]  }
  0x19   :  { %s109_s3 = sshll.u32 %s6366_s16, 4  ;;  %s110_s3 = int_to_ptr.vmem [resolvable:$true] %s109_s3 }
  0x1a   :  { %115 = dma.hbm_to_vmem [thread:$0]  %s108_s15, 1024, %s110_s3, [#allocation12], %s6357_s18, %s6357_s18, %s6358_s19  }
  0x1b   :  { %6340 = dma.done.wait [#allocation3], 1792  }
  0x1c   :  { %6341 = vsyncadd [#allocation3], 4294965504 }
  0x1d   :  { %6342 = dma.done.wait [#allocation6], 31440  }
  0x1e   :  { %6343 = vsyncadd [#allocation6], 4294935856 }
  0x1f   :  { %6344 = dma.done.wait [#allocation9], 21504  }
  0x20   :  { %6345 = vsyncadd [#allocation9], 4294945792 }
  0x21   :  { %6346 = dma.done.wait [#allocation12], 3072  }
  0x22   :  { %6347 = vsyncadd [#allocation12], 4294964224  ;;  %v4079_v0 = vld [vmem:[#allocation5 + $0x118] sm:$0xf]  ;;  %v5727_v1 = vld [vmem:[#allocation5 + $0x128] sm:$0xf0] }
  0x23   :  { %v4239_v2 = vld [vmem:[#allocation5 + $0x258] sm:$0xf]  ;;  %v4080_v3 = vor.u32 %v5727_v1, %v4079_v0  ;;  %v5767_v4 = vld [vmem:[#allocation5 + $0x268] sm:$0xf0]  ;;  %v4059_v11 = vld [vmem:[#allocation5 + $0xf0] sm:$0xf] }
  0x24   :  { %v4399_v5 = vld [vmem:[#allocation5 + $0x398] sm:$0xf]  ;;  %v5807_v6 = vld [vmem:[#allocation5 + $0x3a8] sm:$0xf0]  ;;  %v4240_v7 = vor.u32 %v5767_v4, %v4239_v2  ;;  %v5722_v13 = vld [vmem:[#allocation5 + $0x100] sm:$0xf0] }
  0x25   :  { %v4400_v8 = vor.u32 %v5807_v6, %v4399_v5  ;;  %v4559_v9 = vld [vmem:[#allocation5 + $0x4d8] sm:$0xf]  ;;  %v5847_v10 = vld [vmem:[#allocation5 + $0x4e8] sm:$0xf0]  ;;  %1752 = vmatpush.bf16.msra.mxu0 %v4080_v3  ;;  %v4219_v14 = vld [vmem:[#allocation5 + $0x230] sm:$0xf]  ;;  %v4060_v16 = vor.u32 %v5722_v13, %v4059_v11 }
  0x26   :  { %v4560_v12 = vor.u32 %v5847_v10, %v4559_v9  ;;  %v5762_v15 = vld [vmem:[#allocation5 + $0x240] sm:$0xf0]  ;;  %1766 = vmatpush.bf16.msra.mxu1 %v4240_v7  ;;  %v4379_v18 = vld [vmem:[#allocation5 + $0x370] sm:$0xf]  ;;  %v4039_v23 = vld [vmem:[#allocation5 + $0xc8] sm:$0xf] }
  0x27   :  { %1780 = vmatpush.bf16.msra.mxu2 %v4400_v8  ;;  %v4220_v17 = vor.u32 %v5762_v15, %v4219_v14  ;;  %v5802_v19 = vld [vmem:[#allocation5 + $0x380] sm:$0xf0]  ;;  %v4539_v20 = vld [vmem:[#allocation5 + $0x4b0] sm:$0xf]  ;;  %v5717_v24 = vld [vmem:[#allocation5 + $0xd8] sm:$0xf0] }
  0x28   :  { %1794 = vmatpush.bf16.msra.mxu3 %v4560_v12  ;;  %v4380_v21 = vor.u32 %v5802_v19, %v4379_v18  ;;  %v5842_v22 = vld [vmem:[#allocation5 + $0x4c0] sm:$0xf0]  ;;  %v4199_v26 = vld [vmem:[#allocation5 + $0x208] sm:$0xf]  ;;  %v5757_v27 = vld [vmem:[#allocation5 + $0x218] sm:$0xf0]  ;;  %v4040_v29 = vor.u32 %v5717_v24, %v4039_v23 }
  0x29   :  { %v4540_v25 = vor.u32 %v5842_v22, %v4539_v20  ;;  %v4359_v28 = vld [vmem:[#allocation5 + $0x348] sm:$0xf]  ;;  %1753 = vmatpush.bf16.msra.mxu0 %v4060_v16  ;;  %v5797_v30 = vld [vmem:[#allocation5 + $0x358] sm:$0xf0]  ;;  %v4200_v33 = vor.u32 %v5757_v27, %v4199_v26  ;;  %v4019_v35 = vld [vmem:[#allocation5 + $0xa0] sm:$0xf] }
  0x2a   :  { %v4519_v31 = vld [vmem:[#allocation5 + $0x488] sm:$0xf]  ;;  %v5837_v32 = vld [vmem:[#allocation5 + $0x498] sm:$0xf0]  ;;  %1767 = vmatpush.bf16.msra.mxu1 %v4220_v17  ;;  %v4360_v34 = vor.u32 %v5797_v30, %v4359_v28  ;;  %v5712_v36 = vld [vmem:[#allocation5 + $0xb0] sm:$0xf0] }
  0x2b   :  { %1781 = vmatpush.bf16.msra.mxu2 %v4380_v21  ;;  %v4179_v37 = vld [vmem:[#allocation5 + $0x1e0] sm:$0xf]  ;;  %v4520_v38 = vor.u32 %v5837_v32, %v4519_v31  ;;  %v5752_v39 = vld [vmem:[#allocation5 + $0x1f0] sm:$0xf0]  ;;  %v4020_v44 = vor.u32 %v5712_v36, %v4019_v35  ;;  %v3999_v47 = vld [vmem:[#allocation5 + $0x78] sm:$0xf] }
  0x2c   :  { %1795 = vmatpush.bf16.msra.mxu3 %v4540_v25  ;;  %v4339_v40 = vld [vmem:[#allocation5 + $0x320] sm:$0xf]  ;;  %v5792_v41 = vld [vmem:[#allocation5 + $0x330] sm:$0xf0]  ;;  %v4180_v45 = vor.u32 %v5752_v39, %v4179_v37  ;;  %v5707_v48 = vld [vmem:[#allocation5 + $0x88] sm:$0xf0] }
  0x2d   :  { %v4499_v42 = vld [vmem:[#allocation5 + $0x460] sm:$0xf]  ;;  %v5832_v43 = vld [vmem:[#allocation5 + $0x470] sm:$0xf0]  ;;  %1754 = vmatpush.bf16.msra.mxu0 %v4040_v29  ;;  %v4340_v46 = vor.u32 %v5792_v41, %v4339_v40  ;;  %v4159_v49 = vld [vmem:[#allocation5 + $0x1b8] sm:$0xf]  ;;  %v4000_v56 = vor.u32 %v5707_v48, %v3999_v47 }
  0x2e   :  { %1768 = vmatpush.bf16.msra.mxu1 %v4200_v33  ;;  %v4500_v50 = vor.u32 %v5832_v43, %v4499_v42  ;;  %v5747_v51 = vld [vmem:[#allocation5 + $0x1c8] sm:$0xf0]  ;;  %v4319_v52 = vld [vmem:[#allocation5 + $0x2f8] sm:$0xf]  ;;  %v3979_v59 = vld [vmem:[#allocation5 + $0x50] sm:$0xf] }
  0x2f   :  { %1782 = vmatpush.bf16.msra.mxu2 %v4360_v34  ;;  %v5787_v53 = vld [vmem:[#allocation5 + $0x308] sm:$0xf0]  ;;  %v4479_v54 = vld [vmem:[#allocation5 + $0x438] sm:$0xf]  ;;  %v4160_v57 = vor.u32 %v5747_v51, %v4159_v49  ;;  %v5702_v60 = vld [vmem:[#allocation5 + $0x60] sm:$0xf0] }
  0x30   :  { %1796 = vmatpush.bf16.msra.mxu3 %v4520_v38  ;;  %v5827_v55 = vld [vmem:[#allocation5 + $0x448] sm:$0xf0]  ;;  %v4320_v58 = vor.u32 %v5787_v53, %v4319_v52  ;;  %v4139_v61 = vld [vmem:[#allocation5 + $0x190] sm:$0xf]  ;;  %v5742_v63 = vld [vmem:[#allocation5 + $0x1a0] sm:$0xf0]  ;;  %v3980_v4 = vor.u32 %v5702_v60, %v3979_v59 }
  0x31   :  { %1755 = vmatpush.bf16.msra.mxu0 %v4020_v44  ;;  %v4480_v62 = vor.u32 %v5827_v55, %v4479_v54  ;;  %v4299_v0 = vld [vmem:[#allocation5 + $0x2d0] sm:$0xf]  ;;  %v5782_v1 = vld [vmem:[#allocation5 + $0x2e0] sm:$0xf0]  ;;  %v3959_v5 = vld [vmem:[#allocation5 + $0x28] sm:$0xf]  ;;  %v4140_v6 = vor.u32 %v5742_v63, %v4139_v61 }
  0x32   :  { %1769 = vmatpush.bf16.msra.mxu1 %v4180_v45  ;;  %v4459_v2 = vld [vmem:[#allocation5 + $0x410] sm:$0xf]  ;;  %v5822_v3 = vld [vmem:[#allocation5 + $0x420] sm:$0xf0]  ;;  %v4300_v7 = vor.u32 %v5782_v1, %v4299_v0  ;;  %v5697_v8 = vld [vmem:[#allocation5 + $0x38] sm:$0xf0] }
  0x33   :  { %1783 = vmatpush.bf16.msra.mxu2 %v4340_v46  ;;  %v4119_v9 = vld [vmem:[#allocation5 + $0x168] sm:$0xf]  ;;  %v5737_v10 = vld [vmem:[#allocation5 + $0x178] sm:$0xf0]  ;;  %v4460_v11 = vor.u32 %v5822_v3, %v4459_v2  ;;  %v3939_v16 = vld [vmem:[#allocation5] sm:$0xf]  ;;  %v3960_v18 = vor.u32 %v5697_v8, %v3959_v5 }
  0x34   :  { %1797 = vmatpush.bf16.msra.mxu3 %v4500_v50  ;;  %v4279_v12 = vld [vmem:[#allocation5 + $0x2a8] sm:$0xf]  ;;  %v5777_v13 = vld [vmem:[#allocation5 + $0x2b8] sm:$0xf0]  ;;  %v5692_v17 = vld [vmem:[#allocation5 + $0x10] sm:$0xf0]  ;;  %v4120_v23 = vor.u32 %v5737_v10, %v4119_v9 }
  0x35   :  { %1756 = vmatpush.bf16.msra.mxu0 %v4000_v56  ;;  %v4439_v14 = vld [vmem:[#allocation5 + $0x3e8] sm:$0xf]  ;;  %v5817_v15 = vld [vmem:[#allocation5 + $0x3f8] sm:$0xf0]  ;;  %v4099_v19 = vld [vmem:[#allocation5 + $0x140] sm:$0xf]  ;;  %v4280_v24 = vor.u32 %v5777_v13, %v4279_v12  ;;  %v3940_v35 = vor.u32 %v5692_v17, %v3939_v16 }
  0x36   :  { %1770 = vmatpush.bf16.msra.mxu1 %v4160_v57  ;;  %v5732_v20 = vld [vmem:[#allocation5 + $0x150] sm:$0xf0]  ;;  %v4259_v21 = vld [vmem:[#allocation5 + $0x280] sm:$0xf]  ;;  %v4719_v27 = vld [vmem:[#allocation5 + $0x618] sm:$0xf]  ;;  %v4440_v28 = vor.u32 %v5817_v15, %v4439_v14 }
  0x37   :  { %1784 = vmatpush.bf16.msra.mxu2 %v4320_v58  ;;  %v5772_v22 = vld [vmem:[#allocation5 + $0x290] sm:$0xf0]  ;;  %v4419_v25 = vld [vmem:[#allocation5 + $0x3c0] sm:$0xf]  ;;  %v5887_v29 = vld [vmem:[#allocation5 + $0x628] sm:$0xf0]  ;;  %v4100_v39 = vor.u32 %v5732_v20, %v4099_v19 }
  0x38   :  { %1798 = vmatpush.bf16.msra.mxu3 %v4480_v62  ;;  %v5812_v26 = vld [vmem:[#allocation5 + $0x3d0] sm:$0xf0]  ;;  %v4879_v30 = vld [vmem:[#allocation5 + $0x758] sm:$0xf]  ;;  %v5927_v31 = vld [vmem:[#allocation5 + $0x768] sm:$0xf0]  ;;  %v4260_v40 = vor.u32 %v5772_v22, %v4259_v21  ;;  %v4720_v45 = vor.u32 %v5887_v29, %v4719_v27 }
  0x39   :  { %1757 = vmatpush.bf16.msra.mxu0 %v3980_v4  ;;  %v5725_v32 = vld [vmem:[#allocation5 + $0x11c] sm:$0xf]  ;;  %v4081_v33 = vld [vmem:[#allocation5 + $0x12c] sm:$0xf0]  ;;  %v4899_v34 = vld [vmem:[#allocation5 + $0x780] sm:$0xf]  ;;  %v4420_v44 = vor.u32 %v5812_v26, %v4419_v25  ;;  %v4880_v49 = vor.u32 %v5927_v31, %v4879_v30 }
  0x3a   :  { %1771 = vmatpush.bf16.msra.mxu1 %v4140_v6  ;;  %v5932_v36 = vld [vmem:[#allocation5 + $0x790] sm:$0xf0]  ;;  %v149_v37 = vld [vmem:[#allocation2 + $0x10] sm:$0xff]  ;;  %v156_v38 = vld [vmem:[#allocation2 + $0x48] sm:$0xff]  ;;  %v4084_v50 = vor.u32 %v5725_v32, %v4081_v33  ;;  %vm1748_vm0 = vcmask 130048   ;;  %s6367_s21 = smov [#allocation14]  }
  0x3b   :  { %1785 = vmatpush.bf16.msra.mxu2 %v4300_v7  ;;  %v5765_v41 = vld [vmem:[#allocation5 + $0x25c] sm:$0xf]  ;;  %v4241_v42 = vld [vmem:[#allocation5 + $0x26c] sm:$0xf0]  ;;  %v5882_v46 = vld [vmem:[#allocation5 + $0x600] sm:$0xf0]  ;;  %v4900_v54 = vor.u32 %v5932_v36, %v4899_v34  ;;  %v6460_v59 = vpack.c.bf16 %v156_v38, %v149_v37 }
  0x3c   :  { %1799 = vmatpush.bf16.msra.mxu3 %v4460_v11  ;;  %v4699_v43 = vld [vmem:[#allocation5 + $0x5f0] sm:$0xf]  ;;  %v5922_v48 = vld [vmem:[#allocation5 + $0x740] sm:$0xf0]  ;;  %v154_v52 = vld [vmem:[#allocation2 + $0x38] sm:$0xff]  ;;  %v4244_v62 = vor.u32 %v5765_v41, %v4241_v42  ;;  %s3919_s22 = sshll.u32 %s6367_s21, 4  ;;  %s3920_s22 = int_to_ptr.vmem [resolvable:$true] %s3919_s22 }
  0x3d   :  { %1758 = vmatpush.bf16.msra.mxu0 %v3960_v18  ;;  %v4859_v47 = vld [vmem:[#allocation5 + $0x730] sm:$0xf]  ;;  %v150_v53 = vld [vmem:[#allocation2 + $0x18] sm:$0xff]  ;;  %v5720_v55 = vld [vmem:[#allocation5 + $0xf4] sm:$0xf]  ;;  %v4700_v63 = vor.u32 %v5882_v46, %v4699_v43  ;;  %s3921_s23 = sshll.u32 %s6641_s11, 4  ;;  %s3922_s23 = int_to_ptr.hbm [resolvable:$true] %s3921_s23 }
  0x3e   :  { %1772 = vmatpush.bf16.msra.mxu1 %v4120_v23  ;;  %v147_v51 = vld [vmem:[#allocation2] sm:$0xff]  ;;  %v4061_v56 = vld [vmem:[#allocation5 + $0x104] sm:$0xf0]  ;;  %v157_v58 = vld [vmem:[#allocation2 + $0x50] sm:$0xff]  ;;  %v4860_v3 = vor.u32 %v5922_v48, %v4859_v47 }
  0x3f   :  { %1786 = vmatpush.bf16.msra.mxu2 %v4280_v24  ;;  %v6458_v57 = vpack.c.bf16 %v154_v52, %v147_v51  ;;  %v5760_v60 = vld [vmem:[#allocation5 + $0x234] sm:$0xf]  ;;  %v6462_v61 = vpack.c.bf16 %v157_v58, %v150_v53  ;;  %v4221_v0 = vld [vmem:[#allocation5 + $0x244] sm:$0xf0]  ;;  %v5877_v2 = vld [vmem:[#allocation5 + $0x5d8] sm:$0xf0]  ;;  %v4064_v4 = vor.u32 %v5720_v55, %v4061_v56 }
  0x40   :  { %1800 = vmatpush.bf16.msra.mxu3 %v4440_v28  ;;  %v4679_v1 = vld [vmem:[#allocation5 + $0x5c8] sm:$0xf]  ;;  %v148_v6 = vld [vmem:[#allocation2 + $0x8] sm:$0xff]  ;;  %v155_v7 = vld [vmem:[#allocation2 + $0x40] sm:$0xff]  ;;  %v4224_v12 = vor.u32 %v5760_v60, %v4221_v0 }
  0x41   :  { %1759 = vmatpush.bf16.msra.mxu0 %v3940_v35  ;;  %v4839_v5 = vld [vmem:[#allocation5 + $0x708] sm:$0xf]  ;;  %v5917_v8 = vld [vmem:[#allocation5 + $0x718] sm:$0xf0]  ;;  %v5715_v9 = vld [vmem:[#allocation5 + $0xcc] sm:$0xf]  ;;  %v6465_v11 = vpack.c.bf16 %v155_v7, %v148_v6  ;;  %v4680_v13 = vor.u32 %v5877_v2, %v4679_v1 }
  0x42   :  { %1773 = vmatpush.bf16.msra.mxu1 %v4100_v39  ;;  %v4041_v10 = vld [vmem:[#allocation5 + $0xdc] sm:$0xf0]  ;;  %v5755_v14 = vld [vmem:[#allocation5 + $0x20c] sm:$0xf]  ;;  %v4840_v16 = vor.u32 %v5917_v8, %v4839_v5  ;;  %v5872_v19 = vld [vmem:[#allocation5 + $0x5b0] sm:$0xf0] }
  0x43   :  { %1787 = vmatpush.bf16.msra.mxu2 %v4260_v40  ;;  %v4201_v15 = vld [vmem:[#allocation5 + $0x21c] sm:$0xf0]  ;;  %v4044_v17 = vor.u32 %v5715_v9, %v4041_v10  ;;  %v5912_v21 = vld [vmem:[#allocation5 + $0x6f0] sm:$0xf0]  ;;  %v5710_v22 = vld [vmem:[#allocation5 + $0xa4] sm:$0xf] }
  0x44   :  { %1801 = vmatpush.bf16.msra.mxu3 %v4420_v44  ;;  %1760 = vmatmul.bf16.vlgmr.msra.gmra.mxu0 %v6458_v57  ;;  %v4659_v18 = vld [vmem:[#allocation5 + $0x5a0] sm:$0xf]  ;;  %v4021_v23 = vld [vmem:[#allocation5 + $0xb4] sm:$0xf0]  ;;  %v4204_v24 = vor.u32 %v5755_v14, %v4201_v15  ;;  %v5750_v26 = vld [vmem:[#allocation5 + $0x1e4] sm:$0xf] }
  0x45   :  { %1808 = vmatpush.bf16.msrb.mxu0 %v4720_v45  ;;  %v4819_v20 = vld [vmem:[#allocation5 + $0x6e0] sm:$0xf]  ;;  %1774 = vmatmul.bf16.vlgmr.msra.gmra.mxu1 %v6465_v11  ;;  %v4660_v25 = vor.u32 %v5872_v19, %v4659_v18  ;;  %v4181_v27 = vld [vmem:[#allocation5 + $0x1f4] sm:$0xf0]  ;;  %v4024_v29 = vor.u32 %v5710_v22, %v4021_v23  ;;  %v5867_v31 = vld [vmem:[#allocation5 + $0x588] sm:$0xf0] }
  0x46   :  { %1822 = vmatpush.bf16.msrb.mxu1 %v4880_v49  ;;  %1788 = vmatmul.bf16.vlgmr.msra.gmra.mxu2 %v6460_v59  ;;  %v4820_v28 = vor.u32 %v5912_v21, %v4819_v20  ;;  %v4639_v30 = vld [vmem:[#allocation5 + $0x578] sm:$0xf]  ;;  %v5907_v33 = vld [vmem:[#allocation5 + $0x6c8] sm:$0xf0]  ;;  %v5705_v34 = vld [vmem:[#allocation5 + $0x7c] sm:$0xf]  ;;  %v4184_v37 = vor.u32 %v5750_v26, %v4181_v27 }
  0x47   :  { %1843 = vmatpush.bf16.msrb.mxu2 %v4900_v54  ;;  %1802 = vmatmul.bf16.vlgmr.msra.gmra.mxu3 %v6462_v61  ;;  %v4799_v32 = vld [vmem:[#allocation5 + $0x6b8] sm:$0xf]  ;;  %v4001_v35 = vld [vmem:[#allocation5 + $0x8c] sm:$0xf0]  ;;  %v5745_v36 = vld [vmem:[#allocation5 + $0x1bc] sm:$0xf]  ;;  %v4640_v38 = vor.u32 %v5867_v31, %v4639_v30 }
  0x48   :  { %1850 = vmatpush.bf16.msrb.mxu3 %v4084_v50  ;;  %v4161_v39 = vld [vmem:[#allocation5 + $0x1cc] sm:$0xf0]  ;;  %v153_v40 = vld [vmem:[#allocation2 + $0x30] sm:$0xff]  ;;  %v160_v41 = vld [vmem:[#allocation2 + $0x68] sm:$0xff]  ;;  %v4800_v42 = vor.u32 %v5907_v33, %v4799_v32  ;;  %v4004_v43 = vor.u32 %v5705_v34, %v4001_v35 }
  0x49   :  { %1809 = vmatpush.bf16.msrb.mxu0 %v4700_v63  ;;  %v4619_v44 = vld [vmem:[#allocation5 + $0x550] sm:$0xf]  ;;  %v5862_v45 = vld [vmem:[#allocation5 + $0x560] sm:$0xf0]  ;;  %v5700_v48 = vld [vmem:[#allocation5 + $0x54] sm:$0xf]  ;;  %v6470_v50 = vpack.c.bf16 %v160_v41, %v153_v40  ;;  %v4164_v51 = vor.u32 %v5745_v36, %v4161_v39 }
  0x4a   :  { %1823 = vmatpush.bf16.msrb.mxu1 %v4860_v3  ;;  %v4779_v46 = vld [vmem:[#allocation5 + $0x690] sm:$0xf]  ;;  %v5902_v47 = vld [vmem:[#allocation5 + $0x6a0] sm:$0xf0]  ;;  %v3981_v49 = vld [vmem:[#allocation5 + $0x64] sm:$0xf0]  ;;  %v4620_v52 = vor.u32 %v5862_v45, %v4619_v44 }
  0x4b   :  { %1864 = vmatpush.bf16.msra.mxu2 %v4244_v62  ;;  %v5740_v53 = vld [vmem:[#allocation5 + $0x194] sm:$0xf]  ;;  %v4141_v54 = vld [vmem:[#allocation5 + $0x1a4] sm:$0xf0]  ;;  %v4780_v55 = vor.u32 %v5902_v47, %v4779_v46  ;;  %v3984_v56 = vor.u32 %v5700_v48, %v3981_v49  ;;  %v5857_v60 = vld [vmem:[#allocation5 + $0x538] sm:$0xf0] }
  0x4c   :  { %1851 = vmatpush.bf16.msrb.mxu3 %v4064_v4  ;;  %v4599_v58 = vld [vmem:[#allocation5 + $0x528] sm:$0xf]  ;;  %v5897_v63 = vld [vmem:[#allocation5 + $0x678] sm:$0xf0]  ;;  %v5695_v0 = vld [vmem:[#allocation5 + $0x2c] sm:$0xf]  ;;  %v4144_v4 = vor.u32 %v5740_v53, %v4141_v54 }
  0x4d   :  { %1810 = vmatpush.bf16.msrb.mxu0 %v4680_v13  ;;  %v4759_v62 = vld [vmem:[#allocation5 + $0x668] sm:$0xf]  ;;  %v3961_v1 = vld [vmem:[#allocation5 + $0x3c] sm:$0xf0]  ;;  %v5735_v2 = vld [vmem:[#allocation5 + $0x16c] sm:$0xf]  ;;  %v4600_v5 = vor.u32 %v5857_v60, %v4599_v58 }
  0x4e   :  { %1824 = vmatpush.bf16.msrb.mxu1 %v4840_v16  ;;  %v4121_v3 = vld [vmem:[#allocation5 + $0x17c] sm:$0xf0]  ;;  %v5852_v7 = vld [vmem:[#allocation5 + $0x510] sm:$0xf0]  ;;  %v4760_v9 = vor.u32 %v5897_v63, %v4759_v62  ;;  %v3964_v10 = vor.u32 %v5695_v0, %v3961_v1  ;;  %v5690_v13 = vld [vmem:[#allocation5 + $0x4] sm:$0xf] }
  0x4f   :  { %1865 = vmatpush.bf16.msra.mxu2 %v4224_v12  ;;  %v4579_v6 = vld [vmem:[#allocation5 + $0x500] sm:$0xf]  ;;  %v5892_v12 = vld [vmem:[#allocation5 + $0x650] sm:$0xf0]  ;;  %v3941_v14 = vld [vmem:[#allocation5 + $0x14] sm:$0xf0]  ;;  %v4124_v21 = vor.u32 %v5735_v2, %v4121_v3 }
  0x50   :  { %1852 = vmatpush.bf16.msrb.mxu3 %v4044_v17  ;;  %v4739_v8 = vld [vmem:[#allocation5 + $0x640] sm:$0xf]  ;;  %v5805_v15 = vld [vmem:[#allocation5 + $0x39c] sm:$0xf]  ;;  %v4401_v16 = vld [vmem:[#allocation5 + $0x3ac] sm:$0xf0]  ;;  %v4580_v22 = vor.u32 %v5852_v7, %v4579_v6  ;;  %v3944_v27 = vor.u32 %v5690_v13, %v3941_v14 }
  0x51   :  { %1811 = vmatpush.bf16.msrb.mxu0 %v4660_v25  ;;  %v5845_v17 = vld [vmem:[#allocation5 + $0x4dc] sm:$0xf]  ;;  %v4561_v18 = vld [vmem:[#allocation5 + $0x4ec] sm:$0xf0]  ;;  %v5730_v25 = vld [vmem:[#allocation5 + $0x144] sm:$0xf]  ;;  %v4740_v26 = vor.u32 %v5892_v12, %v4739_v8  ;;  %v4404_v31 = vor.u32 %v5805_v15, %v4401_v16 }
  0x52   :  { %1825 = vmatpush.bf16.msrb.mxu1 %v4820_v28  ;;  %v5885_v19 = vld [vmem:[#allocation5 + $0x61c] sm:$0xf]  ;;  %v4721_v20 = vld [vmem:[#allocation5 + $0x62c] sm:$0xf0]  ;;  %v4101_v28 = vld [vmem:[#allocation5 + $0x154] sm:$0xf0]  ;;  %v4564_v32 = vor.u32 %v5845_v17, %v4561_v18 }
  0x53   :  { %1866 = vmatpush.bf16.msra.mxu2 %v4204_v24  ;;  %v151_v23 = vld [vmem:[#allocation2 + $0x20] sm:$0xff]  ;;  %v158_v24 = vld [vmem:[#allocation2 + $0x58] sm:$0xff]  ;;  %v5925_v33 = vld [vmem:[#allocation5 + $0x75c] sm:$0xf]  ;;  %v4724_v36 = vor.u32 %v5885_v19, %v4721_v20  ;;  %v4104_v41 = vor.u32 %v5730_v25, %v4101_v28 }
  0x54   :  { %1853 = vmatpush.bf16.msrb.mxu3 %v4024_v29  ;;  %v152_v29 = vld [vmem:[#allocation2 + $0x28] sm:$0xff]  ;;  %v159_v30 = vld [vmem:[#allocation2 + $0x60] sm:$0xff]  ;;  %v4541_v40 = vld [vmem:[#allocation5 + $0x4c4] sm:$0xf0] }
  0x55   :  { %1812 = vmatpush.bf16.msrb.mxu0 %v4640_v38  ;;  %v4881_v34 = vld [vmem:[#allocation5 + $0x76c] sm:$0xf0]  ;;  %v5800_v35 = vld [vmem:[#allocation5 + $0x374] sm:$0xf]  ;;  %v4381_v38 = vld [vmem:[#allocation5 + $0x384] sm:$0xf0] }
  0x56   :  { %1826 = vmatpush.bf16.msrb.mxu1 %v4800_v42  ;;  %4917 = vmatmul.msk.bf16.vlgmr.msrb.gmra.mxu2 %vm1748_vm0, %v6470_v50  ;;  %v5840_v39 = vld [vmem:[#allocation5 + $0x4b4] sm:$0xf]  ;;  %v6476_v42 = vpack.c.bf16 %v159_v30, %v152_v29  ;;  %v4701_v44 = vld [vmem:[#allocation5 + $0x604] sm:$0xf0]  ;;  %v4884_v45 = vor.u32 %v5925_v33, %v4881_v34  ;;  %v4384_v46 = vor.u32 %v5800_v35, %v4381_v38  ;;  %v4361_v53 = vld [vmem:[#allocation5 + $0x35c] sm:$0xf0] }
  0x57   :  { %1867 = vmatpush.bf16.msra.mxu2 %v4184_v37  ;;  %v6474_v37 = vpack.c.bf16 %v158_v24, %v151_v23  ;;  %v4544_v47 = vor.u32 %v5840_v39, %v4541_v40  ;;  %v5920_v48 = vld [vmem:[#allocation5 + $0x734] sm:$0xf]  ;;  %v4861_v49 = vld [vmem:[#allocation5 + $0x744] sm:$0xf0]  ;;  %v5835_v54 = vld [vmem:[#allocation5 + $0x48c] sm:$0xf] }
  0x58   :  { %1854 = vmatpush.bf16.msrb.mxu3 %v4004_v43  ;;  %v5880_v43 = vld [vmem:[#allocation5 + $0x5f4] sm:$0xf]  ;;  %v4681_v58 = vld [vmem:[#allocation5 + $0x5dc] sm:$0xf0]  ;;  %v4864_v60 = vor.u32 %v5920_v48, %v4861_v49  ;;  %v5915_v0 = vld [vmem:[#allocation5 + $0x70c] sm:$0xf] }
  0x59   :  { %1813 = vmatpush.bf16.msrb.mxu0 %v4620_v52  ;;  %v4704_v52 = vor.u32 %v5880_v43, %v4701_v44  ;;  %v4841_v1 = vld [vmem:[#allocation5 + $0x71c] sm:$0xf0]  ;;  %v5790_v2 = vld [vmem:[#allocation5 + $0x324] sm:$0xf]  ;;  %v4501_v6 = vld [vmem:[#allocation5 + $0x474] sm:$0xf0] }
  0x5a   :  { %1827 = vmatpush.bf16.msrb.mxu1 %v4780_v55  ;;  %v4521_v55 = vld [vmem:[#allocation5 + $0x49c] sm:$0xf0]  ;;  %v5870_v7 = vld [vmem:[#allocation5 + $0x5a4] sm:$0xf]  ;;  %v4661_v8 = vld [vmem:[#allocation5 + $0x5b4] sm:$0xf0] }
  0x5b   :  { %1868 = vmatpush.bf16.msra.mxu2 %v4164_v51  ;;  %v5795_v51 = vld [vmem:[#allocation5 + $0x34c] sm:$0xf]  ;;  %v4524_v63 = vor.u32 %v5835_v54, %v4521_v55  ;;  %v5910_v13 = vld [vmem:[#allocation5 + $0x6e4] sm:$0xf]  ;;  %v4821_v14 = vld [vmem:[#allocation5 + $0x6f4] sm:$0xf0]  ;;  %v4664_v16 = vor.u32 %v5870_v7, %v4661_v8 }
  0x5c   :  { %1855 = vmatpush.bf16.msrb.mxu3 %v3984_v56  ;;  %v5875_v56 = vld [vmem:[#allocation5 + $0x5cc] sm:$0xf]  ;;  %v4364_v62 = vor.u32 %v5795_v51, %v4361_v53  ;;  %v5785_v15 = vld [vmem:[#allocation5 + $0x2fc] sm:$0xf]  ;;  %v4321_v17 = vld [vmem:[#allocation5 + $0x30c] sm:$0xf0] }
  0x5d   :  { %1814 = vmatpush.bf16.msrb.mxu0 %v4600_v5  ;;  %v4684_v3 = vor.u32 %v5875_v56, %v4681_v58  ;;  %v5830_v5 = vld [vmem:[#allocation5 + $0x464] sm:$0xf]  ;;  %v5825_v18 = vld [vmem:[#allocation5 + $0x43c] sm:$0xf]  ;;  %v4481_v19 = vld [vmem:[#allocation5 + $0x44c] sm:$0xf0]  ;;  %v4324_v23 = vor.u32 %v5785_v15, %v4321_v17 }
  0x5e   :  { %1828 = vmatpush.bf16.msrb.mxu1 %v4760_v9  ;;  %v4844_v9 = vor.u32 %v5915_v0, %v4841_v1  ;;  %v4504_v12 = vor.u32 %v5830_v5, %v4501_v6  ;;  %v5865_v20 = vld [vmem:[#allocation5 + $0x57c] sm:$0xf]  ;;  %v4484_v24 = vor.u32 %v5825_v18, %v4481_v19  ;;  %v4301_v29 = vld [vmem:[#allocation5 + $0x2e4] sm:$0xf0]  ;;  %v5820_v30 = vld [vmem:[#allocation5 + $0x414] sm:$0xf] }
  0x5f   :  { %1869 = vmatpush.bf16.msra.mxu2 %v4144_v4  ;;  %v4341_v4 = vld [vmem:[#allocation5 + $0x334] sm:$0xf0]  ;;  %v5905_v25 = vld [vmem:[#allocation5 + $0x6bc] sm:$0xf]  ;;  %v4621_v33 = vld [vmem:[#allocation5 + $0x564] sm:$0xf0] }
  0x60   :  { %1856 = vmatpush.bf16.msrb.mxu3 %v3964_v10  ;;  %v4344_v10 = vor.u32 %v5790_v2, %v4341_v4  ;;  %v5900_v38 = vld [vmem:[#allocation5 + $0x694] sm:$0xf]  ;;  %v4781_v39 = vld [vmem:[#allocation5 + $0x6a4] sm:$0xf0]  ;;  %v5775_v40 = vld [vmem:[#allocation5 + $0x2ac] sm:$0xf] }
  0x61   :  { %1815 = vmatpush.bf16.msrb.mxu0 %v4580_v22  ;;  %v4824_v22 = vor.u32 %v5910_v13, %v4821_v14  ;;  %v4281_v43 = vld [vmem:[#allocation5 + $0x2bc] sm:$0xf0]  ;;  %v5815_v44 = vld [vmem:[#allocation5 + $0x3ec] sm:$0xf]  ;;  %v4784_v48 = vor.u32 %v5900_v38, %v4781_v39  ;;  %v5770_v54 = vld [vmem:[#allocation5 + $0x284] sm:$0xf] }
  0x62   :  { %1829 = vmatpush.bf16.msrb.mxu1 %v4740_v26  ;;  %v4801_v26 = vld [vmem:[#allocation5 + $0x6cc] sm:$0xf0]  ;;  %v5895_v49 = vld [vmem:[#allocation5 + $0x66c] sm:$0xf]  ;;  %v4761_v51 = vld [vmem:[#allocation5 + $0x67c] sm:$0xf0] }
  0x63   :  { %1870 = vmatpush.bf16.msra.mxu2 %v4124_v21  ;;  %v4641_v21 = vld [vmem:[#allocation5 + $0x58c] sm:$0xf0]  ;;  %v4804_v34 = vor.u32 %v5905_v25, %v4801_v26  ;;  %v4261_v55 = vld [vmem:[#allocation5 + $0x294] sm:$0xf0]  ;;  %v5810_v56 = vld [vmem:[#allocation5 + $0x3c4] sm:$0xf] }
  0x64   :  { %1857 = vmatpush.bf16.msrb.mxu3 %v3944_v27  ;;  %1816 = vmatmul.bf16.vlgmr.msrb.gmra.mxu0 %v6474_v37  ;;  %v5780_v27 = vld [vmem:[#allocation5 + $0x2d4] sm:$0xf]  ;;  %v4644_v28 = vor.u32 %v5865_v20, %v4641_v21  ;;  %v4087_v0 = vld [vmem:[#allocation5 + $0x120] sm:$0xf]  ;;  %v5930_v5 = vld [vmem:[#allocation5 + $0x784] sm:$0xf]  ;;  %v4264_v7 = vor.u32 %v5770_v54, %v4261_v55 }
  0x65   :  { %1878 = vmatpush.bf16.msra.mxu0 %v4404_v31  ;;  %1830 = vmatmul.bf16.vlgmr.msrb.gmra.mxu1 %v6476_v42  ;;  %v4461_v31 = vld [vmem:[#allocation5 + $0x424] sm:$0xf0]  ;;  %v4304_v35 = vor.u32 %v5780_v27, %v4301_v29  ;;  %v5728_v1 = vld [vmem:[#allocation5 + $0x130] sm:$0xf0]  ;;  %v4247_v2 = vld [vmem:[#allocation5 + $0x260] sm:$0xf] }
  0x66   :  { %1892 = vmatpush.bf16.msra.mxu1 %v4564_v32  ;;  %v5860_v32 = vld [vmem:[#allocation5 + $0x554] sm:$0xf]  ;;  %v4901_v6 = vld [vmem:[#allocation5 + $0x794] sm:$0xf0]  ;;  %v4088_v13 = vor.u32 %v5728_v1, %v4087_v0  ;;  %v4407_v14 = vld [vmem:[#allocation5 + $0x3a0] sm:$0xf] }
  0x67   :  { %1871 = vmatpush.bf16.msra.mxu2 %v4104_v41  ;;  %1858 = vmatmul.bf16.vlgmr.msrb.gmra.mxu3 %v6458_v57  ;;  %v4624_v41 = vor.u32 %v5860_v32, %v4621_v33  ;;  %v5768_v4 = vld [vmem:[#allocation5 + $0x270] sm:$0xf0]  ;;  %v4904_v17 = vor.u32 %v5930_v5, %v4901_v6  ;;  %v4567_v18 = vld [vmem:[#allocation5 + $0x4e0] sm:$0xf]  ;;  %v4067_v20 = vld [vmem:[#allocation5 + $0xf8] sm:$0xf] }
  0x68   :  { %1906 = vmatpush.bf16.msra.mxu3 %v4724_v36  ;;  %v4464_v36 = vor.u32 %v5820_v30, %v4461_v31  ;;  %v5808_v15 = vld [vmem:[#allocation5 + $0x3b0] sm:$0xf0]  ;;  %v4387_v27 = vld [vmem:[#allocation5 + $0x378] sm:$0xf]  ;;  %v5843_v32 = vld [vmem:[#allocation5 + $0x4c8] sm:$0xf0] }
  0x69   :  { %1879 = vmatpush.bf16.msra.mxu0 %v4384_v46  ;;  %v5855_v46 = vld [vmem:[#allocation5 + $0x52c] sm:$0xf]  ;;  %v5848_v19 = vld [vmem:[#allocation5 + $0x4f0] sm:$0xf0]  ;;  %v4408_v25 = vor.u32 %v5808_v15, %v4407_v14  ;;  %v4547_v31 = vld [vmem:[#allocation5 + $0x4b8] sm:$0xf] }
  0x6a   :  { %1893 = vmatpush.bf16.msra.mxu1 %v4544_v47  ;;  %1872 = vmatmul.bf16.vlgmr.msra.gmra.mxu2 %v6465_v11  ;;  %v4601_v47 = vld [vmem:[#allocation5 + $0x53c] sm:$0xf0]  ;;  %v4568_v26 = vor.u32 %v5848_v19, %v4567_v18  ;;  %v4047_v33 = vld [vmem:[#allocation5 + $0xd0] sm:$0xf]  ;;  %v4548_v39 = vor.u32 %v5843_v32, %v4547_v31  ;;  %v5793_v55 = vld [vmem:[#allocation5 + $0x338] sm:$0xf0] }
  0x6b   :  { %1920 = vmatpush.bf16.msrb.mxu2 %v4884_v45  ;;  %v4441_v45 = vld [vmem:[#allocation5 + $0x3fc] sm:$0xf0]  ;;  %v4604_v58 = vor.u32 %v5855_v46, %v4601_v47  ;;  %v5838_v46 = vld [vmem:[#allocation5 + $0x4a0] sm:$0xf0]  ;;  %v4027_v47 = vld [vmem:[#allocation5 + $0xa8] sm:$0xf] }
  0x6c   :  { %1907 = vmatpush.bf16.msra.mxu3 %v4704_v52  ;;  %v4284_v52 = vor.u32 %v5775_v40, %v4281_v43  ;;  %v4444_v53 = vor.u32 %v5815_v44, %v4441_v45  ;;  %v4367_v40 = vld [vmem:[#allocation5 + $0x350] sm:$0xf]  ;;  %v5708_v0 = vld [vmem:[#allocation5 + $0x90] sm:$0xf0]  ;;  %v4167_v1 = vld [vmem:[#allocation5 + $0x1c0] sm:$0xf] }
  0x6d   :  { %1880 = vmatpush.bf16.msra.mxu0 %v4364_v62  ;;  %v5850_v62 = vld [vmem:[#allocation5 + $0x504] sm:$0xf]  ;;  %v4527_v45 = vld [vmem:[#allocation5 + $0x490] sm:$0xf]  ;;  %v4327_v5 = vld [vmem:[#allocation5 + $0x300] sm:$0xf] }
  0x6e   :  { %1894 = vmatpush.bf16.msra.mxu1 %v4524_v63  ;;  %v4581_v63 = vld [vmem:[#allocation5 + $0x514] sm:$0xf0]  ;;  %v4528_v54 = vor.u32 %v5838_v46, %v4527_v45  ;;  %v5788_v6 = vld [vmem:[#allocation5 + $0x310] sm:$0xf0]  ;;  %v5743_v15 = vld [vmem:[#allocation5 + $0x1a8] sm:$0xf0] }
  0x6f   :  { %1921 = vmatpush.bf16.msrb.mxu2 %v4864_v60  ;;  %v4421_v60 = vld [vmem:[#allocation5 + $0x3d4] sm:$0xf0]  ;;  %v5783_v19 = vld [vmem:[#allocation5 + $0x2e8] sm:$0xf0]  ;;  %v5778_v31 = vld [vmem:[#allocation5 + $0x2c0] sm:$0xf0] }
  0x70   :  { %1908 = vmatpush.bf16.msra.mxu3 %v4684_v3  ;;  %v4764_v3 = vor.u32 %v5895_v49, %v4761_v51  ;;  %v4424_v8 = vor.u32 %v5810_v56, %v4421_v60  ;;  %v4187_v49 = vld [vmem:[#allocation5 + $0x1e8] sm:$0xf]  ;;  %v5753_v51 = vld [vmem:[#allocation5 + $0x1f8] sm:$0xf0]  ;;  %v4147_v14 = vld [vmem:[#allocation5 + $0x198] sm:$0xf] }
  0x71   :  { %1881 = vmatpush.bf16.msra.mxu0 %v4344_v10  ;;  %v4741_v10 = vld [vmem:[#allocation5 + $0x654] sm:$0xf0]  ;;  %v4507_v56 = vld [vmem:[#allocation5 + $0x468] sm:$0xf]  ;;  %v4188_v60 = vor.u32 %v5753_v51, %v4187_v49  ;;  %v4447_v32 = vld [vmem:[#allocation5 + $0x3f0] sm:$0xf] }
  0x72   :  { %1895 = vmatpush.bf16.msra.mxu1 %v4504_v12  ;;  %v4584_v12 = vor.u32 %v5850_v62, %v4581_v63  ;;  %v5833_v62 = vld [vmem:[#allocation5 + $0x478] sm:$0xf0]  ;;  %v4007_v63 = vld [vmem:[#allocation5 + $0x80] sm:$0xf]  ;;  %v4307_v18 = vld [vmem:[#allocation5 + $0x2d8] sm:$0xf] }
  0x73   :  { %1922 = vmatpush.bf16.msrb.mxu2 %v4844_v9  ;;  %v5890_v9 = vld [vmem:[#allocation5 + $0x644] sm:$0xf]  ;;  %v4887_v45 = vld [vmem:[#allocation5 + $0x760] sm:$0xf]  ;;  %v5928_v46 = vld [vmem:[#allocation5 + $0x770] sm:$0xf0] }
  0x74   :  { %1909 = vmatpush.bf16.msra.mxu3 %v4664_v16  ;;  %v4248_v16 = vor.u32 %v5768_v4, %v4247_v2  ;;  %v4744_v21 = vor.u32 %v5890_v9, %v4741_v10  ;;  %v5748_v2 = vld [vmem:[#allocation5 + $0x1d0] sm:$0xf0]  ;;  %v4508_v4 = vor.u32 %v5833_v62, %v4507_v56  ;;  %v4487_v9 = vld [vmem:[#allocation5 + $0x440] sm:$0xf]  ;;  %v5773_v49 = vld [vmem:[#allocation5 + $0x298] sm:$0xf0] }
  0x75   :  { %1882 = vmatpush.bf16.msra.mxu0 %v4324_v23  ;;  %v4227_v23 = vld [vmem:[#allocation5 + $0x238] sm:$0xf]  ;;  %v5828_v10 = vld [vmem:[#allocation5 + $0x450] sm:$0xf0]  ;;  %v4427_v51 = vld [vmem:[#allocation5 + $0x3c8] sm:$0xf] }
  0x76   :  { %1896 = vmatpush.bf16.msra.mxu1 %v4484_v24  ;;  %v5763_v24 = vld [vmem:[#allocation5 + $0x248] sm:$0xf0]  ;;  %v5933_v56 = vld [vmem:[#allocation5 + $0x798] sm:$0xf0]  ;;  %v5726_v62 = vld [vmem:[#allocation5 + $0x124] sm:$0xf] }
  0x77   :  { %1923 = vmatpush.bf16.msrb.mxu2 %v4824_v22  ;;  %v5723_v22 = vld [vmem:[#allocation5 + $0x108] sm:$0xf0]  ;;  %v4228_v30 = vor.u32 %v5763_v24, %v4227_v23  ;;  %v3967_v24 = vld [vmem:[#allocation5 + $0x30] sm:$0xf] }
  0x78   :  { %1910 = vmatpush.bf16.msra.mxu3 %v4644_v28  ;;  %v5803_v28 = vld [vmem:[#allocation5 + $0x388] sm:$0xf0]  ;;  %v4068_v29 = vor.u32 %v5723_v22, %v4067_v20  ;;  %v4467_v22 = vld [vmem:[#allocation5 + $0x418] sm:$0xf] }
  0x79   :  { %1883 = vmatpush.bf16.msra.mxu0 %v4304_v35  ;;  %v4207_v35 = vld [vmem:[#allocation5 + $0x210] sm:$0xf]  ;;  %v4388_v38 = vor.u32 %v5803_v28, %v4387_v27  ;;  %v5823_v23 = vld [vmem:[#allocation5 + $0x428] sm:$0xf0]  ;;  %v5738_v27 = vld [vmem:[#allocation5 + $0x180] sm:$0xf0]  ;;  %v4308_v28 = vor.u32 %v5783_v19, %v4307_v18 }
  0x7a   :  { %1897 = vmatpush.bf16.msra.mxu1 %v4464_v36  ;;  %v5758_v36 = vld [vmem:[#allocation5 + $0x220] sm:$0xf0] }
  0x7b   :  { %1924 = vmatpush.bf16.msrb.mxu2 %v4804_v34  ;;  %v5718_v34 = vld [vmem:[#allocation5 + $0xe0] sm:$0xf0]  ;;  %v4208_v44 = vor.u32 %v5758_v36, %v4207_v35  ;;  %v3947_v36 = vld [vmem:[#allocation5 + $0x8] sm:$0xf] }
  0x7c   :  { %1911 = vmatpush.bf16.msra.mxu3 %v4624_v41  ;;  %v5798_v41 = vld [vmem:[#allocation5 + $0x360] sm:$0xf0]  ;;  %v4048_v43 = vor.u32 %v5718_v34, %v4047_v33 }
  0x7d   :  { %1884 = vmatpush.bf16.msra.mxu0 %v4284_v52  ;;  %v4368_v52 = vor.u32 %v5798_v41, %v4367_v40  ;;  %v5818_v35 = vld [vmem:[#allocation5 + $0x400] sm:$0xf0]  ;;  %v5733_v40 = vld [vmem:[#allocation5 + $0x158] sm:$0xf0]  ;;  %v4727_v41 = vld [vmem:[#allocation5 + $0x620] sm:$0xf] }
  0x7e   :  { %1898 = vmatpush.bf16.msra.mxu1 %v4444_v53  ;;  %v4347_v53 = vld [vmem:[#allocation5 + $0x328] sm:$0xf]  ;;  %v5918_v18 = vld [vmem:[#allocation5 + $0x720] sm:$0xf0] }
  0x7f   :  { %1925 = vmatpush.bf16.msrb.mxu2 %v4784_v48  ;;  %v5713_v48 = vld [vmem:[#allocation5 + $0xb8] sm:$0xf0] }
  0x80   :  { %1912 = vmatpush.bf16.msra.mxu3 %v4604_v58  ;;  %v4028_v58 = vor.u32 %v5713_v48, %v4027_v47  ;;  %v4448_v47 = vor.u32 %v5818_v35, %v4447_v32  ;;  %v4267_v48 = vld [vmem:[#allocation5 + $0x288] sm:$0xf] }
  0x81   :  { %1885 = vmatpush.bf16.msra.mxu0 %v4264_v7  ;;  %v4008_v7 = vor.u32 %v5708_v0, %v4007_v63  ;;  %v4089_v63 = vld [vmem:[#allocation5 + $0x134] sm:$0xf0] }
  0x82   :  { %1899 = vmatpush.bf16.msra.mxu1 %v4424_v8  ;;  %v4168_v8 = vor.u32 %v5748_v2, %v4167_v1  ;;  %v4707_v0 = vld [vmem:[#allocation5 + $0x5f8] sm:$0xf]  ;;  %v4268_v1 = vor.u32 %v5773_v49, %v4267_v48  ;;  %v5883_v2 = vld [vmem:[#allocation5 + $0x608] sm:$0xf0]  ;;  %v4189_v48 = vld [vmem:[#allocation5 + $0x1fc] sm:$0xf0] }
  0x83   :  { %1926 = vmatpush.bf16.msrb.mxu2 %v4764_v3  ;;  %v4348_v3 = vor.u32 %v5793_v55, %v4347_v53  ;;  %v4907_v55 = vld [vmem:[#allocation5 + $0x788] sm:$0xf] }
  0x84   :  { %1913 = vmatpush.bf16.msra.mxu3 %v4584_v12  ;;  %1886 = vmatmul.bf16.vlgmr.msra.gmra.mxu0 %v6460_v59  ;;  %v3987_v12 = vld [vmem:[#allocation5 + $0x58] sm:$0xf] }
  0x85   :  { %1941 = vmatpush.bf16.msrb.mxu0 %v4904_v17  ;;  %1900 = vmatmul.bf16.vlgmr.msra.gmra.mxu1 %v6462_v61  ;;  %v4488_v17 = vor.u32 %v5828_v10, %v4487_v9  ;;  %v4249_v9 = vld [vmem:[#allocation5 + $0x274] sm:$0xf0]  ;;  %v4708_v10 = vor.u32 %v5883_v2, %v4707_v0 }
  0x86   :  { %1948 = vmatpush.bf16.msrb.mxu1 %v4088_v13  ;;  %v5703_v13 = vld [vmem:[#allocation5 + $0x68] sm:$0xf0]  ;;  %v4169_v0 = vld [vmem:[#allocation5 + $0x1d4] sm:$0xf0] }
  0x87   :  { %1927 = vmatpush.bf16.msrb.mxu2 %v4744_v21  ;;  %1914 = vmatmul.bf16.vlgmr.msra.gmra.mxu3 %v6474_v37  ;;  %v3988_v20 = vor.u32 %v5703_v13, %v3987_v12  ;;  %v4148_v21 = vor.u32 %v5743_v15, %v4147_v14  ;;  %v5721_v13 = vld [vmem:[#allocation5 + $0xfc] sm:$0xf]  ;;  %v4069_v14 = vld [vmem:[#allocation5 + $0x10c] sm:$0xf0] }
  0x88   :  { %1962 = vmatpush.bf16.msrb.mxu3 %v4248_v16  ;;  %v4328_v16 = vor.u32 %v5788_v6, %v4327_v5  ;;  %v4908_v6 = vor.u32 %v5933_v56, %v4907_v55  ;;  %v4687_v15 = vld [vmem:[#allocation5 + $0x5d0] sm:$0xf]  ;;  %v5863_v55 = vld [vmem:[#allocation5 + $0x568] sm:$0xf0]  ;;  %v4787_v56 = vld [vmem:[#allocation5 + $0x698] sm:$0xf] }
  0x89   :  { %1976 = vmatpush.bf16.msra.mxu0 %v4408_v25  ;;  %v5698_v25 = vld [vmem:[#allocation5 + $0x40] sm:$0xf0] }
  0x8a   :  { %1949 = vmatpush.bf16.msrb.mxu1 %v4068_v29  ;;  %1928 = vmatmul.bf16.vlgmr.msrb.gmra.mxu2 %v6476_v42  ;;  %v4468_v29 = vor.u32 %v5823_v23, %v4467_v22  ;;  %v3968_v33 = vor.u32 %v5698_v25, %v3967_v24  ;;  %v4229_v22 = vld [vmem:[#allocation5 + $0x24c] sm:$0xf0]  ;;  %v5716_v25 = vld [vmem:[#allocation5 + $0xd4] sm:$0xf] }
  0x8b   :  { %1990 = vmatpush.bf16.msra.mxu2 %v4568_v26  ;;  %v4127_v26 = vld [vmem:[#allocation5 + $0x170] sm:$0xf] }
  0x8c   :  { %1963 = vmatpush.bf16.msrb.mxu3 %v4228_v30  ;;  %v4287_v30 = vld [vmem:[#allocation5 + $0x2b0] sm:$0xf]  ;;  %v4128_v34 = vor.u32 %v5738_v27, %v4127_v26  ;;  %v4049_v26 = vld [vmem:[#allocation5 + $0xe4] sm:$0xf0] }
  0x8d   :  { %1977 = vmatpush.bf16.msra.mxu0 %v4388_v38  ;;  %v5693_v38 = vld [vmem:[#allocation5 + $0x18] sm:$0xf0]  ;;  %v4667_v27 = vld [vmem:[#allocation5 + $0x5a8] sm:$0xf]  ;;  %v4052_v32 = vor.u32 %v5716_v25, %v4049_v26  ;;  %v5846_v25 = vld [vmem:[#allocation5 + $0x4e4] sm:$0xf] }
  0x8e   :  { %1950 = vmatpush.bf16.msrb.mxu1 %v4048_v43  ;;  %v4288_v43 = vor.u32 %v5778_v31, %v4287_v30  ;;  %v5913_v30 = vld [vmem:[#allocation5 + $0x6f8] sm:$0xf0]  ;;  %v4569_v26 = vld [vmem:[#allocation5 + $0x4f4] sm:$0xf0] }
  0x8f   :  { %1991 = vmatpush.bf16.msra.mxu2 %v4548_v39  ;;  %v4107_v39 = vld [vmem:[#allocation5 + $0x148] sm:$0xf] }
  0x90   :  { %1964 = vmatpush.bf16.msrb.mxu3 %v4208_v44  ;;  %v5888_v44 = vld [vmem:[#allocation5 + $0x630] sm:$0xf0]  ;;  %v4108_v53 = vor.u32 %v5733_v40, %v4107_v39  ;;  %v4029_v39 = vld [vmem:[#allocation5 + $0xbc] sm:$0xf0] }
  0x91   :  { %1978 = vmatpush.bf16.msra.mxu0 %v4368_v52  ;;  %v3948_v52 = vor.u32 %v5693_v38, %v3947_v36  ;;  %v5711_v38 = vld [vmem:[#allocation5 + $0xac] sm:$0xf]  ;;  %v4647_v40 = vld [vmem:[#allocation5 + $0x580] sm:$0xf] }
  0x92   :  { %1951 = vmatpush.bf16.msrb.mxu1 %v4028_v58  ;;  %v4728_v58 = vor.u32 %v5888_v44, %v4727_v41  ;;  %v5868_v41 = vld [vmem:[#allocation5 + $0x590] sm:$0xf0] }
  0x93   :  { %1992 = vmatpush.bf16.msra.mxu2 %v4528_v54  ;;  %v5813_v54 = vld [vmem:[#allocation5 + $0x3d8] sm:$0xf0]  ;;  %v5908_v44 = vld [vmem:[#allocation5 + $0x6d0] sm:$0xf0]  ;;  %v4648_v49 = vor.u32 %v5868_v41, %v4647_v40  ;;  %v4389_v41 = vld [vmem:[#allocation5 + $0x38c] sm:$0xf0] }
  0x94   :  { %1965 = vmatpush.bf16.msrb.mxu3 %v4188_v60  ;;  %4918 = vmatmul.msk.bf16.vlgmr.msrb.gmra.mxu0 %vm1748_vm0, %v6470_v50  ;;  %v4888_v60 = vor.u32 %v5928_v46, %v4887_v45  ;;  %v4428_v5 = vor.u32 %v5813_v54, %v4427_v51  ;;  %v4032_v46 = vor.u32 %v5711_v38, %v4029_v39  ;;  %v4627_v54 = vld [vmem:[#allocation5 + $0x558] sm:$0xf]  ;;  %v5801_v40 = vld [vmem:[#allocation5 + $0x37c] sm:$0xf] }
  0x95   :  { %1979 = vmatpush.bf16.msra.mxu0 %v4348_v3  ;;  %v4867_v3 = vld [vmem:[#allocation5 + $0x738] sm:$0xf] }
  0x96   :  { %1952 = vmatpush.bf16.msrb.mxu1 %v4008_v7  ;;  %v4092_v7 = vor.u32 %v5726_v62, %v4089_v63  ;;  %v5746_v63 = vld [vmem:[#allocation5 + $0x1c4] sm:$0xf]  ;;  %v4729_v38 = vld [vmem:[#allocation5 + $0x634] sm:$0xf0] }
  0x97   :  { %1993 = vmatpush.bf16.msra.mxu2 %v4508_v4  ;;  %v5923_v4 = vld [vmem:[#allocation5 + $0x748] sm:$0xf0] }
  0x98   :  { %1966 = vmatpush.bf16.msrb.mxu3 %v4168_v8  ;;  %v5766_v8 = vld [vmem:[#allocation5 + $0x264] sm:$0xf]  ;;  %v4868_v12 = vor.u32 %v5923_v4, %v4867_v3  ;;  %v5701_v3 = vld [vmem:[#allocation5 + $0x5c] sm:$0xf]  ;;  %v3989_v4 = vld [vmem:[#allocation5 + $0x6c] sm:$0xf0] }
  0x99   :  { %1980 = vmatpush.bf16.msra.mxu0 %v4328_v16  ;;  %v5878_v16 = vld [vmem:[#allocation5 + $0x5e0] sm:$0xf0]  ;;  %v4252_v19 = vor.u32 %v5766_v8, %v4249_v9  ;;  %v4172_v9 = vor.u32 %v5746_v63, %v4169_v0  ;;  %v5836_v63 = vld [vmem:[#allocation5 + $0x494] sm:$0xf]  ;;  %v4529_v0 = vld [vmem:[#allocation5 + $0x4a4] sm:$0xf0] }
  0x9a   :  { %1953 = vmatpush.bf16.msrb.mxu1 %v3988_v20  ;;  %v4072_v20 = vor.u32 %v5721_v13, %v4069_v14  ;;  %v4688_v23 = vor.u32 %v5878_v16, %v4687_v15  ;;  %v5898_v8 = vld [vmem:[#allocation5 + $0x680] sm:$0xf0]  ;;  %v4149_v13 = vld [vmem:[#allocation5 + $0x1ac] sm:$0xf0]  ;;  %v5696_v14 = vld [vmem:[#allocation5 + $0x34] sm:$0xf] }
  0x9b   :  { %1994 = vmatpush.bf16.msra.mxu2 %v4488_v17  ;;  %v4847_v17 = vld [vmem:[#allocation5 + $0x710] sm:$0xf] }
  0x9c   :  { %1967 = vmatpush.bf16.msrb.mxu3 %v4148_v21  ;;  %v5761_v21 = vld [vmem:[#allocation5 + $0x23c] sm:$0xf]  ;;  %v4848_v24 = vor.u32 %v5918_v18, %v4847_v17  ;;  %v3969_v17 = vld [vmem:[#allocation5 + $0x44] sm:$0xf0] }
  0x9d   :  { %1981 = vmatpush.bf16.msra.mxu0 %v4308_v28  ;;  %v5873_v28 = vld [vmem:[#allocation5 + $0x5b8] sm:$0xf0]  ;;  %v4232_v31 = vor.u32 %v5761_v21, %v4229_v22  ;;  %v4587_v18 = vld [vmem:[#allocation5 + $0x508] sm:$0xf]  ;;  %v5806_v22 = vld [vmem:[#allocation5 + $0x3a4] sm:$0xf] }
  0x9e   :  { %1954 = vmatpush.bf16.msrb.mxu1 %v3968_v33  ;;  %v5756_v33 = vld [vmem:[#allocation5 + $0x214] sm:$0xf]  ;;  %v4668_v35 = vor.u32 %v5873_v28, %v4667_v27  ;;  %v5893_v21 = vld [vmem:[#allocation5 + $0x658] sm:$0xf0]  ;;  %v3972_v27 = vor.u32 %v5696_v14, %v3969_v17 }
  0x9f   :  { %1995 = vmatpush.bf16.msra.mxu2 %v4468_v29  ;;  %v4827_v29 = vld [vmem:[#allocation5 + $0x6e8] sm:$0xf]  ;;  %v5736_v28 = vld [vmem:[#allocation5 + $0x174] sm:$0xf] }
  0xa0   :  { %1968 = vmatpush.bf16.msrb.mxu3 %v4128_v34  ;;  %v4209_v34 = vld [vmem:[#allocation5 + $0x224] sm:$0xf0]  ;;  %v4828_v36 = vor.u32 %v5913_v30, %v4827_v29  ;;  %v5916_v14 = vld [vmem:[#allocation5 + $0x714] sm:$0xf] }
  0xa1   :  { %1982 = vmatpush.bf16.msra.mxu0 %v4288_v43  ;;  %v4807_v43 = vld [vmem:[#allocation5 + $0x6c0] sm:$0xf]  ;;  %v4212_v45 = vor.u32 %v5756_v33, %v4209_v34  ;;  %v4129_v29 = vld [vmem:[#allocation5 + $0x184] sm:$0xf0]  ;;  %v4572_v34 = vor.u32 %v5846_v25, %v4569_v26  ;;  %v4489_v25 = vld [vmem:[#allocation5 + $0x454] sm:$0xf0] }
  0xa2   :  { %1955 = vmatpush.bf16.msrb.mxu1 %v3948_v52  ;;  %v4808_v51 = vor.u32 %v5908_v44, %v4807_v43  ;;  %v5706_v52 = vld [vmem:[#allocation5 + $0x84] sm:$0xf]  ;;  %v4132_v39 = vor.u32 %v5736_v28, %v4129_v29  ;;  %v5841_v43 = vld [vmem:[#allocation5 + $0x4bc] sm:$0xf]  ;;  %v4549_v44 = vld [vmem:[#allocation5 + $0x4cc] sm:$0xf0] }
  0xa3   :  { %1996 = vmatpush.bf16.msra.mxu2 %v4448_v47  ;;  %v5751_v47 = vld [vmem:[#allocation5 + $0x1ec] sm:$0xf] }
  0xa4   :  { %1969 = vmatpush.bf16.msrb.mxu3 %v4108_v53  ;;  %v4009_v53 = vld [vmem:[#allocation5 + $0x94] sm:$0xf0]  ;;  %v5911_v26 = vld [vmem:[#allocation5 + $0x6ec] sm:$0xf] }
  0xa5   :  { %1983 = vmatpush.bf16.msra.mxu0 %v4268_v1  ;;  %1956 = vmatmul.bf16.vlgmr.msrb.gmra.mxu1 %v6458_v57  ;;  %v4012_v62 = vor.u32 %v5706_v52, %v4009_v53  ;;  %v4628_v1 = vor.u32 %v5863_v55, %v4627_v54  ;;  %v4392_v52 = vor.u32 %v5801_v40, %v4389_v41  ;;  %v5881_v53 = vld [vmem:[#allocation5 + $0x5fc] sm:$0xf]  ;;  %v4809_v40 = vld [vmem:[#allocation5 + $0x6d4] sm:$0xf0] }
  0xa6   :  { %2004 = vmatpush.bf16.msra.mxu1 %v4728_v58  ;;  %v5903_v58 = vld [vmem:[#allocation5 + $0x6a8] sm:$0xf0]  ;;  %v4552_v54 = vor.u32 %v5841_v43, %v4549_v44  ;;  %v5861_v44 = vld [vmem:[#allocation5 + $0x55c] sm:$0xf] }
  0xa7   :  { %1997 = vmatpush.bf16.msra.mxu2 %v4428_v5  ;;  %1970 = vmatmul.bf16.vlgmr.msrb.gmra.mxu3 %v6465_v11  ;;  %v4788_v2 = vor.u32 %v5903_v58, %v4787_v56  ;;  %v4607_v5 = vld [vmem:[#allocation5 + $0x530] sm:$0xf]  ;;  %v5796_v58 = vld [vmem:[#allocation5 + $0x354] sm:$0xf] }
  0xa8   :  { %2018 = vmatpush.bf16.msra.mxu3 %v4888_v60  ;;  %1984 = vmatmul.bf16.vlgmr.msra.gmra.mxu0 %v6460_v59  ;;  %v4192_v60 = vor.u32 %v5751_v47, %v4189_v48  ;;  %v5926_v48 = vld [vmem:[#allocation5 + $0x764] sm:$0xf]  ;;  %v4709_v56 = vld [vmem:[#allocation5 + $0x60c] sm:$0xf0] }
  0xa9   :  { %2039 = vmatpush.bf16.msrb.mxu0 %v4908_v6  ;;  %v5858_v6 = vld [vmem:[#allocation5 + $0x540] sm:$0xf0] }
  0xaa   :  { %2005 = vmatpush.bf16.msra.mxu1 %v4708_v10  ;;  %1998 = vmatmul.bf16.vlgmr.msra.gmra.mxu2 %v6462_v61  ;;  %v3992_v10 = vor.u32 %v5701_v3, %v3989_v4  ;;  %v4608_v15 = vor.u32 %v5858_v6, %v4607_v5  ;;  %v4712_v3 = vor.u32 %v5881_v53, %v4709_v56  ;;  %v5876_v5 = vld [vmem:[#allocation5 + $0x5d4] sm:$0xf]  ;;  %v5901_v53 = vld [vmem:[#allocation5 + $0x69c] sm:$0xf] }
  0xab   :  { %2046 = vmatpush.bf16.msrb.mxu2 %v4092_v7  ;;  %v4767_v7 = vld [vmem:[#allocation5 + $0x670] sm:$0xf]  ;;  %v4532_v6 = vor.u32 %v5836_v63, %v4529_v0  ;;  %v4269_v0 = vld [vmem:[#allocation5 + $0x29c] sm:$0xf0] }
  0xac   :  { %2019 = vmatpush.bf16.msra.mxu3 %v4868_v12  ;;  %v5741_v12 = vld [vmem:[#allocation5 + $0x19c] sm:$0xf]  ;;  %v4768_v16 = vor.u32 %v5898_v8, %v4767_v7  ;;  %v4689_v7 = vld [vmem:[#allocation5 + $0x5e4] sm:$0xf0]  ;;  %v5791_v8 = vld [vmem:[#allocation5 + $0x32c] sm:$0xf] }
  0xad   :  { %2060 = vmatpush.bf16.msra.mxu0 %v4252_v19  ;;  %v5853_v19 = vld [vmem:[#allocation5 + $0x518] sm:$0xf0] }
  0xae   :  { %2006 = vmatpush.bf16.msra.mxu1 %v4688_v23  ;;  %v4152_v23 = vor.u32 %v5741_v12, %v4149_v13  ;;  %v4588_v30 = vor.u32 %v5853_v19, %v4587_v18  ;;  %v5831_v12 = vld [vmem:[#allocation5 + $0x46c] sm:$0xf]  ;;  %v4509_v13 = vld [vmem:[#allocation5 + $0x47c] sm:$0xf0] }
  0xaf   :  { %2047 = vmatpush.bf16.msrb.mxu2 %v4072_v20  ;;  %v4747_v20 = vld [vmem:[#allocation5 + $0x648] sm:$0xf]  ;;  %v5871_v18 = vld [vmem:[#allocation5 + $0x5ac] sm:$0xf]  ;;  %v4512_v19 = vor.u32 %v5831_v12, %v4509_v13 }
  0xb0   :  { %2020 = vmatpush.bf16.msra.mxu3 %v4848_v24  ;;  %v4409_v24 = vld [vmem:[#allocation5 + $0x3b4] sm:$0xf0] }
  0xb1   :  { %2061 = vmatpush.bf16.msra.mxu0 %v4232_v31  ;;  %v4748_v31 = vor.u32 %v5893_v21, %v4747_v20  ;;  %v4412_v33 = vor.u32 %v5806_v22, %v4409_v24  ;;  %v4669_v20 = vld [vmem:[#allocation5 + $0x5bc] sm:$0xf0]  ;;  %v5786_v21 = vld [vmem:[#allocation5 + $0x304] sm:$0xf]  ;;  %v4329_v22 = vld [vmem:[#allocation5 + $0x314] sm:$0xf0] }
  0xb2   :  { %2007 = vmatpush.bf16.msra.mxu1 %v4668_v35  ;;  %v3949_v35 = vld [vmem:[#allocation5 + $0x1c] sm:$0xf0]  ;;  %v5826_v24 = vld [vmem:[#allocation5 + $0x444] sm:$0xf]  ;;  %v4672_v28 = vor.u32 %v5871_v18, %v4669_v20  ;;  %v4332_v29 = vor.u32 %v5786_v21, %v4329_v22  ;;  %v4255_v18 = vld [vmem:[#allocation5 + $0x268] sm:$0xf] }
  0xb3   :  { %2048 = vmatpush.bf16.msrb.mxu2 %v4052_v32  ;;  %v5691_v32 = vld [vmem:[#allocation5 + $0xc] sm:$0xf]  ;;  %v4415_v22 = vld [vmem:[#allocation5 + $0x3a8] sm:$0xf] }
  0xb4   :  { %2021 = vmatpush.bf16.msra.mxu3 %v4828_v36  ;;  %v5886_v36 = vld [vmem:[#allocation5 + $0x624] sm:$0xf]  ;;  %v3952_v47 = vor.u32 %v5691_v32, %v3949_v35  ;;  %v4649_v32 = vld [vmem:[#allocation5 + $0x594] sm:$0xf0] }
  0xb5   :  { %2062 = vmatpush.bf16.msra.mxu0 %v4212_v45  ;;  %v5731_v45 = vld [vmem:[#allocation5 + $0x14c] sm:$0xf] }
  0xb6   :  { %2008 = vmatpush.bf16.msra.mxu1 %v4648_v49  ;;  %v4889_v49 = vld [vmem:[#allocation5 + $0x774] sm:$0xf0] }
  0xb7   :  { %2049 = vmatpush.bf16.msrb.mxu2 %v4032_v46  ;;  %v4109_v46 = vld [vmem:[#allocation5 + $0x15c] sm:$0xf0] }
  0xb8   :  { %2022 = vmatpush.bf16.msra.mxu3 %v4808_v51  ;;  %4919 = vmatmul.msk.bf16.vlgmr.msrb.gmra.mxu0 %vm1748_vm0, %v6470_v50  ;;  %v4732_v51 = vor.u32 %v5886_v36, %v4729_v38  ;;  %v4112_v55 = vor.u32 %v5731_v45, %v4109_v46  ;;  %v5821_v36 = vld [vmem:[#allocation5 + $0x41c] sm:$0xf]  ;;  %v4469_v38 = vld [vmem:[#allocation5 + $0x42c] sm:$0xf0] }
  0xb9   :  { %2063 = vmatpush.bf16.msra.mxu0 %v4192_v60  ;;  %v4369_v60 = vld [vmem:[#allocation5 + $0x364] sm:$0xf0]  ;;  %v4472_v45 = vor.u32 %v5821_v36, %v4469_v38  ;;  %v4629_v46 = vld [vmem:[#allocation5 + $0x56c] sm:$0xf0]  ;;  %v5764_v36 = vld [vmem:[#allocation5 + $0x250] sm:$0xf0] }
  0xba   :  { %2009 = vmatpush.bf16.msra.mxu1 %v4628_v1  ;;  %v5921_v1 = vld [vmem:[#allocation5 + $0x73c] sm:$0xf]  ;;  %v4372_v4 = vor.u32 %v5796_v58, %v4369_v60  ;;  %v5856_v58 = vld [vmem:[#allocation5 + $0x534] sm:$0xf]  ;;  %v4609_v60 = vld [vmem:[#allocation5 + $0x544] sm:$0xf0] }
  0xbb   :  { %2050 = vmatpush.bf16.msrb.mxu2 %v4012_v62  ;;  %v4892_v62 = vor.u32 %v5926_v48, %v4889_v49  ;;  %v4289_v48 = vld [vmem:[#allocation5 + $0x2c4] sm:$0xf0]  ;;  %v4612_v12 = vor.u32 %v5856_v58, %v4609_v60  ;;  %v4395_v38 = vld [vmem:[#allocation5 + $0x380] sm:$0xf]  ;;  %v4035_v58 = vld [vmem:[#allocation5 + $0xb0] sm:$0xf] }
  0xbc   :  { %2023 = vmatpush.bf16.msra.mxu3 %v4788_v2  ;;  %v4869_v2 = vld [vmem:[#allocation5 + $0x74c] sm:$0xf0]  ;;  %v5714_v60 = vld [vmem:[#allocation5 + $0xc0] sm:$0xf0] }
  0xbd   :  { %2064 = vmatpush.bf16.msra.mxu0 %v4172_v9  ;;  %v4349_v9 = vld [vmem:[#allocation5 + $0x33c] sm:$0xf0] }
  0xbe   :  { %2010 = vmatpush.bf16.msra.mxu1 %v4608_v15  ;;  %v4849_v15 = vld [vmem:[#allocation5 + $0x724] sm:$0xf0]  ;;  %v4352_v17 = vor.u32 %v5791_v8, %v4349_v9  ;;  %v5729_v8 = vld [vmem:[#allocation5 + $0x138] sm:$0xf0]  ;;  %v5896_v9 = vld [vmem:[#allocation5 + $0x674] sm:$0xf] }
  0xbf   :  { %2051 = vmatpush.bf16.msrb.mxu2 %v3992_v10  ;;  %v4872_v10 = vor.u32 %v5921_v1, %v4869_v2  ;;  %v5811_v1 = vld [vmem:[#allocation5 + $0x3cc] sm:$0xf]  ;;  %v4429_v2 = vld [vmem:[#allocation5 + $0x3dc] sm:$0xf0] }
  0xc0   :  { %2024 = vmatpush.bf16.msra.mxu3 %v4768_v16  ;;  %v4692_v16 = vor.u32 %v5876_v5, %v4689_v7  ;;  %v4095_v5 = vld [vmem:[#allocation5 + $0x128] sm:$0xf]  ;;  %v4909_v7 = vld [vmem:[#allocation5 + $0x79c] sm:$0xf0] }
  0xc1   :  { %2065 = vmatpush.bf16.msra.mxu0 %v4152_v23  ;;  %v4852_v23 = vor.u32 %v5916_v14, %v4849_v15  ;;  %v5851_v14 = vld [vmem:[#allocation5 + $0x50c] sm:$0xf]  ;;  %v4432_v15 = vor.u32 %v5811_v1, %v4429_v2  ;;  %v4096_v20 = vor.u32 %v5729_v8, %v4095_v5  ;;  %v4195_v5 = vld [vmem:[#allocation5 + $0x1f0] sm:$0xf] }
  0xc2   :  { %2011 = vmatpush.bf16.msra.mxu1 %v4588_v30  ;;  %v5866_v30 = vld [vmem:[#allocation5 + $0x584] sm:$0xf]  ;;  %v4355_v8 = vld [vmem:[#allocation5 + $0x330] sm:$0xf] }
  0xc3   :  { %2052 = vmatpush.bf16.msrb.mxu2 %v3972_v27  ;;  %v4829_v27 = vld [vmem:[#allocation5 + $0x6fc] sm:$0xf0]  ;;  %v4652_v41 = vor.u32 %v5866_v30, %v4649_v32  ;;  %v5849_v30 = vld [vmem:[#allocation5 + $0x4f8] sm:$0xf0] }
  0xc4   :  { %2025 = vmatpush.bf16.msra.mxu3 %v4748_v31  ;;  %v4492_v31 = vor.u32 %v5826_v24, %v4489_v25  ;;  %v4832_v35 = vor.u32 %v5911_v26, %v4829_v27  ;;  %v4075_v24 = vld [vmem:[#allocation5 + $0x100] sm:$0xf]  ;;  %v5724_v25 = vld [vmem:[#allocation5 + $0x110] sm:$0xf0]  ;;  %v5891_v26 = vld [vmem:[#allocation5 + $0x64c] sm:$0xf] }
  0xc5   :  { %2066 = vmatpush.bf16.msra.mxu0 %v4132_v39  ;;  %2012 = vmatmul.bf16.vlgmr.msra.gmra.mxu1 %v6474_v37  ;;  %v5906_v39 = vld [vmem:[#allocation5 + $0x6c4] sm:$0xf]  ;;  %v4749_v27 = vld [vmem:[#allocation5 + $0x65c] sm:$0xf0] }
  0xc6   :  { %2074 = vmatpush.bf16.msrb.mxu1 %v4412_v33  ;;  %v5781_v33 = vld [vmem:[#allocation5 + $0x2dc] sm:$0xf]  ;;  %v4812_v49 = vor.u32 %v5906_v39, %v4809_v40  ;;  %v5804_v39 = vld [vmem:[#allocation5 + $0x390] sm:$0xf0] }
  0xc7   :  { %2026 = vmatmul.bf16.vlgmr.msra.gmra.mxu3 %v6476_v42  ;;  %2053 = vmatpush.bf16.msrb.mxu2 %v3952_v47  ;;  %v5776_v47 = vld [vmem:[#allocation5 + $0x2b4] sm:$0xf] }
  0xc8   :  { %2088 = vmatpush.bf16.msrb.mxu3 %v4572_v34  ;;  %v4309_v34 = vld [vmem:[#allocation5 + $0x2ec] sm:$0xf0]  ;;  %v4292_v56 = vor.u32 %v5776_v47, %v4289_v48  ;;  %v5844_v47 = vld [vmem:[#allocation5 + $0x4d0] sm:$0xf0] }
  0xc9   :  { %2067 = vmatpush.bf16.msra.mxu0 %v4112_v55  ;;  %v4312_v43 = vor.u32 %v5781_v33, %v4309_v34  ;;  %v4632_v55 = vor.u32 %v5861_v44, %v4629_v46  ;;  %v4235_v33 = vld [vmem:[#allocation5 + $0x240] sm:$0xf]  ;;  %v4076_v34 = vor.u32 %v5724_v25, %v4075_v24  ;;  %v6501_v44 = vpop.f32.mrf.mxu0  ;;  %v5789_v24 = vld [vmem:[#allocation5 + $0x318] sm:$0xf0] }
  0xca   :  { %2075 = vmatpush.bf16.msrb.mxu1 %v4392_v52  ;;  %2054 = vmatmul.bf16.vlgmr.msrb.gmra.mxu2 %v6458_v57  ;;  %v4449_v52 = vld [vmem:[#allocation5 + $0x404] sm:$0xf0]  ;;  %v4555_v46 = vld [vmem:[#allocation5 + $0x4c0] sm:$0xf]  ;;  %v4236_v48 = vor.u32 %v5764_v36, %v4235_v33  ;;  %v6509_v1 = vpop.f32.mrf.mxu3 }
  0xcb   :  { %2102 = vmatpush.bf16.msra.mxu2 %v4732_v51  ;;  %v5816_v51 = vld [vmem:[#allocation5 + $0x3f4] sm:$0xf]  ;;  %v4315_v36 = vld [vmem:[#allocation5 + $0x2e0] sm:$0xf] }
  0xcc   :  { %2089 = vmatpush.bf16.msrb.mxu3 %v4552_v54  ;;  %2068 = vmatmul.bf16.vlgmr.msra.gmra.mxu0 %v6465_v11  ;;  %v4789_v54 = vld [vmem:[#allocation5 + $0x6ac] sm:$0xf0]  ;;  %v4452_v63 = vor.u32 %v5816_v51, %v4449_v52  ;;  %v4215_v51 = vld [vmem:[#allocation5 + $0x218] sm:$0xf] }
  0xcd   :  { %2116 = vmatpush.bf16.msrb.mxu0 %v4892_v62  ;;  %v5771_v62 = vld [vmem:[#allocation5 + $0x28c] sm:$0xf] }
  0xce   :  { %2076 = vmatpush.bf16.msrb.mxu1 %v4372_v4  ;;  %v4792_v4 = vor.u32 %v5901_v53, %v4789_v54  ;;  %v4272_v13 = vor.u32 %v5771_v62, %v4269_v0  ;;  %v5759_v53 = vld [vmem:[#allocation5 + $0x228] sm:$0xf0]  ;;  %v4375_v54 = vld [vmem:[#allocation5 + $0x358] sm:$0xf]  ;;  %v6507_v62 = vpop.f32.mrf.mxu1 }
  0xcf   :  { %2103 = vmatpush.bf16.msra.mxu2 %v4712_v3  ;;  %v6498_v3 = vpop.f32.mrf.mxu2  ;;  %v5839_v0 = vld [vmem:[#allocation5 + $0x4a8] sm:$0xf0]  ;;  %v4216_v2 = vor.u32 %v5759_v53, %v4215_v51  ;;  %v4135_v51 = vld [vmem:[#allocation5 + $0x178] sm:$0xf] }
  0xd0   :  { %2090 = vmatpush.bf16.msrb.mxu3 %v4532_v6  ;;  %v5931_v6 = vld [vmem:[#allocation5 + $0x78c] sm:$0xf] }
  0xd1   :  { %2117 = vmatpush.bf16.msrb.mxu0 %v4872_v10  ;;  %v4769_v10 = vld [vmem:[#allocation5 + $0x684] sm:$0xf0] }
  0xd2   :  { %2077 = vmatpush.bf16.msrb.mxu1 %v4352_v17  ;;  %v4912_v17 = vor.u32 %v5931_v6, %v4909_v7  ;;  %v4772_v21 = vor.u32 %v5896_v9, %v4769_v10  ;;  %v4036_v6 = vor.u32 %v5714_v60, %v4035_v58  ;;  %v5754_v7 = vld [vmem:[#allocation5 + $0x200] sm:$0xf0]  ;;  %v5779_v58 = vld [vmem:[#allocation5 + $0x2c8] sm:$0xf0] }
  0xd3   :  { %2104 = vmatpush.bf16.msra.mxu2 %v4692_v16  ;;  %v4589_v16 = vld [vmem:[#allocation5 + $0x51c] sm:$0xf0]  ;;  %v5794_v9 = vld [vmem:[#allocation5 + $0x340] sm:$0xf0] }
  0xd4   :  { %2091 = vmatpush.bf16.msrb.mxu3 %v4512_v19  ;;  %v5769_v19 = vld [vmem:[#allocation5 + $0x278] sm:$0xf0] }
  0xd5   :  { %2118 = vmatpush.bf16.msrb.mxu0 %v4852_v23  ;;  %v5809_v23 = vld [vmem:[#allocation5 + $0x3b8] sm:$0xf0] }
  0xd6   :  { %2078 = vmatpush.bf16.msrb.mxu1 %v4332_v29  ;;  %v4575_v29 = vld [vmem:[#allocation5 + $0x4e8] sm:$0xf]  ;;  %v4416_v32 = vor.u32 %v5809_v23, %v4415_v22  ;;  %v5749_v22 = vld [vmem:[#allocation5 + $0x1d8] sm:$0xf0]  ;;  %v6516_v33 = vpop.f32.mrf.mxu1 }
  0xd7   :  { %2105 = vmatpush.bf16.msra.mxu2 %v4672_v28  ;;  %v4592_v28 = vor.u32 %v5851_v14, %v4589_v16  ;;  %v4576_v40 = vor.u32 %v5849_v30, %v4575_v29  ;;  %v5834_v16 = vld [vmem:[#allocation5 + $0x480] sm:$0xf0]  ;;  %v4335_v23 = vld [vmem:[#allocation5 + $0x308] sm:$0xf]  ;;  %v5829_v29 = vld [vmem:[#allocation5 + $0x458] sm:$0xf0] }
  0xd8   :  { %2092 = vmatpush.bf16.msrb.mxu3 %v4492_v31  ;;  %v4256_v31 = vor.u32 %v5769_v19, %v4255_v18  ;;  %v4356_v18 = vor.u32 %v5794_v9, %v4355_v8  ;;  %v4175_v19 = vld [vmem:[#allocation5 + $0x1c8] sm:$0xf]  ;;  %v4115_v9 = vld [vmem:[#allocation5 + $0x150] sm:$0xf] }
  0xd9   :  { %2119 = vmatpush.bf16.msrb.mxu0 %v4832_v35  ;;  %v4752_v35 = vor.u32 %v5891_v26, %v4749_v27  ;;  %v3995_v26 = vld [vmem:[#allocation5 + $0x60] sm:$0xf]  ;;  %v5704_v27 = vld [vmem:[#allocation5 + $0x70] sm:$0xf0]  ;;  %v4176_v30 = vor.u32 %v5749_v22, %v4175_v19  ;;  %v5929_v19 = vld [vmem:[#allocation5 + $0x778] sm:$0xf0] }
  0xda   :  { %2079 = vmatpush.bf16.msrb.mxu1 %v4312_v43  ;;  %v5719_v43 = vld [vmem:[#allocation5 + $0xe8] sm:$0xf0] }
  0xdb   :  { %2106 = vmatpush.bf16.msra.mxu2 %v4652_v41  ;;  %v4055_v41 = vld [vmem:[#allocation5 + $0xd8] sm:$0xf] }
  0xdc   :  { %2093 = vmatpush.bf16.msrb.mxu3 %v4472_v45  ;;  %v6504_v45 = vpop.f32.mrf.mxu2  ;;  %v4056_v52 = vor.u32 %v5719_v43, %v4055_v41  ;;  %v3975_v41 = vld [vmem:[#allocation5 + $0x38] sm:$0xf]  ;;  %v5699_v43 = vld [vmem:[#allocation5 + $0x48] sm:$0xf0] }
  0xdd   :  { %2120 = vmatpush.bf16.msrb.mxu0 %v4812_v49  ;;  %v4396_v49 = vor.u32 %v5804_v39, %v4395_v38  ;;  %v5784_v38 = vld [vmem:[#allocation5 + $0x2f0] sm:$0xf0]  ;;  %v6518_v39 = vpop.f32.mrf.mxu3 }
  0xde   :  { %2080 = vmatpush.bf16.msrb.mxu1 %v4292_v56  ;;  %v4556_v56 = vor.u32 %v5844_v47, %v4555_v46  ;;  %v4475_v46 = vld [vmem:[#allocation5 + $0x420] sm:$0xf]  ;;  %v5824_v47 = vld [vmem:[#allocation5 + $0x430] sm:$0xf0] }
  0xdf   :  { %2107 = vmatpush.bf16.msra.mxu2 %v4632_v55  ;;  %v5799_v55 = vld [vmem:[#allocation5 + $0x368] sm:$0xf0]  ;;  %v4476_v60 = vor.u32 %v5824_v47, %v4475_v46 }
  0xe0   :  { %2094 = vmatpush.bf16.msrb.mxu3 %v4452_v63  ;;  %v4535_v63 = vld [vmem:[#allocation5 + $0x498] sm:$0xf] }
  0xe1   :  { %2121 = vmatpush.bf16.msrb.mxu0 %v4792_v4  ;;  %v4376_v4 = vor.u32 %v5799_v55, %v4375_v54  ;;  %v4536_v10 = vor.u32 %v5839_v0, %v4535_v63  ;;  %v3976_v54 = vor.u32 %v5699_v43, %v3975_v41  ;;  %v5739_v55 = vld [vmem:[#allocation5 + $0x188] sm:$0xf0]  ;;  %v3955_v63 = vld [vmem:[#allocation5 + $0x10] sm:$0xf]  ;;  %v5694_v0 = vld [vmem:[#allocation5 + $0x20] sm:$0xf0] }
  0xe2   :  { %2081 = vmatpush.bf16.msrb.mxu1 %v4272_v13  ;;  %v5709_v13 = vld [vmem:[#allocation5 + $0x98] sm:$0xf0]  ;;  %v5981_v41 = vld [vmem:[#allocation8 + $0x170] sm:$0xf0] }
  0xe3   :  { %2108 = vmatpush.bf16.msra.mxu2 %v4612_v12  ;;  %v4015_v12 = vld [vmem:[#allocation5 + $0x88] sm:$0xf] }
  0xe4   :  { %2095 = vmatpush.bf16.msrb.mxu3 %v4432_v15  ;;  %v6512_v14 = vpop.f32.mrf.mxu2  ;;  %v4515_v15 = vld [vmem:[#allocation5 + $0x470] sm:$0xf] }
  0xe5   :  { %2122 = vmatpush.bf16.msrb.mxu0 %v4772_v21  ;;  %2082 = vmatmul.bf16.vlgmr.msrb.gmra.mxu1 %v6460_v59  ;;  %v4016_v21 = vor.u32 %v5709_v13, %v4015_v12  ;;  %v4516_v25 = vor.u32 %v5834_v16, %v4515_v15  ;;  %v4275_v12 = vld [vmem:[#allocation5 + $0x290] sm:$0xf]  ;;  %v6526_v13 = vld [vmem:[#allocation7] sm:$0x1f]  ;;  %v6528_v15 = vpop.f32.mrf.mxu1  ;;  %v3956_v16 = vor.u32 %v5694_v0, %v3955_v63 }
  0xe6   :  { %2137 = vmatpush.bf16.msra.mxu1 %v4912_v17  ;;  %v4196_v17 = vor.u32 %v5754_v7, %v4195_v5  ;;  %v4455_v5 = vld [vmem:[#allocation5 + $0x3f8] sm:$0xf]  ;;  %v4136_v7 = vor.u32 %v5739_v55, %v4135_v51  ;;  %v464_v43 = vperm.slane %v6526_v13, 0  ;;  %v5954_v63 = vld [vmem:[#allocation8 + $0x98] sm:$0xf0] }
  0xe7   :  { %2096 = vmatmul.bf16.vlgmr.msrb.gmra.mxu3 %v6462_v61  ;;  %2109 = vmatpush.bf16.msra.mxu2 %v4592_v28  ;;  %v4495_v28 = vld [vmem:[#allocation5 + $0x448] sm:$0xf]  ;;  %v4695_v55 = vld [vmem:[#allocation5 + $0x5d8] sm:$0xf] }
  0xe8   :  { %2144 = vmatpush.bf16.msra.mxu3 %v4096_v20  ;;  %v6514_v20 = vpop.f32.mrf.mxu0 }
  0xe9   :  { %2123 = vmatpush.bf16.msrb.mxu0 %v4752_v35  ;;  %v5744_v35 = vld [vmem:[#allocation5 + $0x1b0] sm:$0xf0] }
  0xea   :  { %2158 = vmatpush.bf16.msrb.mxu1 %v4256_v31  ;;  %2110 = vmatmul.bf16.vlgmr.msra.gmra.mxu2 %v6474_v37  ;;  %v4336_v31 = vor.u32 %v5789_v24, %v4335_v23  ;;  %v6530_v22 = vpop.f32.mrf.mxu3  ;;  %v4715_v24 = vld [vmem:[#allocation5 + $0x600] sm:$0xf] }
  0xeb   :  { %2172 = vmatpush.bf16.msrb.mxu2 %v4416_v32  ;;  %v4155_v32 = vld [vmem:[#allocation5 + $0x1a0] sm:$0xf] }
  0xec   :  { %2145 = vmatpush.bf16.msra.mxu3 %v4076_v34  ;;  %2124 = vmatmul.bf16.vlgmr.msrb.gmra.mxu0 %v6476_v42  ;;  %v3996_v34 = vor.u32 %v5704_v27, %v3995_v26  ;;  %v6524_v53 = vpop.f32.mrf.mxu2  ;;  %v5934_v26 = vld [vmem:[#allocation5 + $0x7a0] sm:$0xf0]  ;;  %v5884_v27 = vld [vmem:[#allocation5 + $0x610] sm:$0xf0] }
  0xed   :  { %2186 = vmatpush.bf16.msra.mxu0 %v4576_v40  ;;  %v4496_v40 = vor.u32 %v5829_v29, %v4495_v28  ;;  %v4435_v28 = vld [vmem:[#allocation5 + $0x3d0] sm:$0xf]  ;;  %v5814_v29 = vld [vmem:[#allocation5 + $0x3e0] sm:$0xf0]  ;;  %v4716_v46 = vor.u32 %v5884_v27, %v4715_v24 }
  0xee   :  { %2159 = vmatpush.bf16.msrb.mxu1 %v4236_v48  ;;  %v4156_v48 = vor.u32 %v5744_v35, %v4155_v32  ;;  %v5008_v32 = vld [vmem:[#allocation8 + $0xa8] sm:$0xf]  ;;  %v4436_v47 = vor.u32 %v5814_v29, %v4435_v28 }
  0xef   :  { %2173 = vmatpush.bf16.msrb.mxu2 %v4396_v49  ;;  %v4316_v49 = vor.u32 %v5784_v38, %v4315_v36 }
  0xf0   :  { %2146 = vmatpush.bf16.msra.mxu3 %v4056_v52  ;;  %v6522_v52 = vpop.f32.mrf.mxu0 }
  0xf1   :  { %2187 = vmatpush.bf16.msra.mxu0 %v4556_v56  ;;  %v4295_v56 = vld [vmem:[#allocation5 + $0x2b8] sm:$0xf] }
  0xf2   :  { %2160 = vmatpush.bf16.msrb.mxu1 %v4216_v2  ;;  %v4735_v2 = vld [vmem:[#allocation5 + $0x628] sm:$0xf]  ;;  %v4296_v8 = vor.u32 %v5779_v58, %v4295_v56  ;;  %v5879_v56 = vld [vmem:[#allocation5 + $0x5e8] sm:$0xf0] }
  0xf3   :  { %2174 = vmatpush.bf16.msrb.mxu2 %v4376_v4  ;;  %v5889_v4 = vld [vmem:[#allocation5 + $0x638] sm:$0xf0] }
  0xf4   :  { %2147 = vmatpush.bf16.msra.mxu3 %v4036_v6  ;;  %v5819_v6 = vld [vmem:[#allocation5 + $0x408] sm:$0xf0]  ;;  %v6532_v36 = vpop.f32.mrf.mxu2 }
  0xf5   :  { %2188 = vmatpush.bf16.msra.mxu0 %v4536_v10  ;;  %4920 = vmatmul.msk.bf16.vlgmr.msra.gmra.mxu1 %vm1748_vm0, %v6470_v50  ;;  %v5734_v10 = vld [vmem:[#allocation5 + $0x160] sm:$0xf0]  ;;  %v4456_v23 = vor.u32 %v5819_v6, %v4455_v5  ;;  %v1764_v5 = vadd.f32 %v6514_v20, %v464_v43  ;;  %v465_v6 = vperm.slane %v6526_v13, 1  ;;  %v1861_v20 = vpop.f32.mrf.mxu3 }
  0xf6   :  { %2161 = vmatpush.bf16.msrb.mxu1 %v4196_v17  ;;  %v5774_v17 = vld [vmem:[#allocation5 + $0x2a0] sm:$0xf0] }
  0xf7   :  { %2175 = vmatpush.bf16.msrb.mxu2 %v4356_v18  ;;  %v4895_v18 = vld [vmem:[#allocation5 + $0x768] sm:$0xf]  ;;  %v1860_v27 = vadd.f32 %v6530_v22, %v465_v6 }
  0xf8   :  { %2148 = vmatpush.bf16.msra.mxu3 %v4016_v21  ;;  %v4736_v21 = vor.u32 %v5889_v4, %v4735_v2  ;;  %v4896_v35 = vor.u32 %v5929_v19, %v4895_v18  ;;  %v6535_v51 = vpop.f32.mrf.mxu0  ;;  %v5092_v2 = vld [vmem:[#allocation8 + $0x150] sm:$0xf]  ;;  %v5978_v4 = vld [vmem:[#allocation8 + $0x158] sm:$0xf0]  ;;  %v1762_v18 = vadd.f32 %v6501_v44, %v464_v43  ;;  %v4835_v44 = vld [vmem:[#allocation5 + $0x6f0] sm:$0xf] }
  0xf9   :  { %2189 = vmatpush.bf16.msra.mxu0 %v4516_v25  ;;  %v4915_v25 = vld [vmem:[#allocation5 + $0x790] sm:$0xf]  ;;  %v5093_v19 = vor.u32 %v5978_v4, %v5092_v2  ;;  %v1874_v43 = vadd.f32 %v6532_v36, %v1860_v27  ;;  %v5056_v2 = vld [vmem:[#allocation8 + $0x108] sm:$0xf]  ;;  %v5969_v36 = vld [vmem:[#allocation8 + $0x110] sm:$0xf0] }
  0xfa   :  { %2162 = vmatpush.bf16.msrb.mxu1 %v4176_v30  ;;  %v4116_v30 = vor.u32 %v5734_v10, %v4115_v9  ;;  %v4916_v38 = vor.u32 %v5934_v26, %v4915_v25  ;;  %v5919_v9 = vld [vmem:[#allocation5 + $0x728] sm:$0xf0]  ;;  %v6539_v10 = vpop.f32.mrf.mxu1  ;;  %v5080_v25 = vld [vmem:[#allocation8 + $0x138] sm:$0xf]  ;;  %v5975_v26 = vld [vmem:[#allocation8 + $0x140] sm:$0xf0] }
  0xfb   :  { %2176 = vmatpush.bf16.msrb.mxu2 %v4336_v31  ;;  %v4276_v31 = vor.u32 %v5774_v17, %v4275_v12  ;;  %v5874_v17 = vld [vmem:[#allocation5 + $0x5c0] sm:$0xf0] }
  0xfc   :  { %2149 = vmatpush.bf16.msra.mxu3 %v3996_v34  ;;  %v5957_v34 = vld [vmem:[#allocation8 + $0xb0] sm:$0xf0] }
  0xfd   :  { %2190 = vmatpush.bf16.msra.mxu0 %v4496_v40  ;;  %v5104_v40 = vld [vmem:[#allocation8 + $0x168] sm:$0xf] }
  0xfe   :  { %2163 = vmatpush.bf16.msrb.mxu1 %v4156_v48  ;;  %v4875_v48 = vld [vmem:[#allocation5 + $0x740] sm:$0xf]  ;;  %v5105_v58 = vor.u32 %v5981_v41, %v5104_v40  ;;  %v5068_v40 = vld [vmem:[#allocation8 + $0x120] sm:$0xf]  ;;  %v5972_v41 = vld [vmem:[#allocation8 + $0x128] sm:$0xf0] }
  0xff   :  { %2177 = vmatpush.bf16.msrb.mxu2 %v4316_v49  ;;  %v5924_v49 = vld [vmem:[#allocation5 + $0x750] sm:$0xf0] }
 0x100   :  { %2150 = vmatpush.bf16.msra.mxu3 %v3976_v54  ;;  %v5009_v54 = vor.u32 %v5957_v34, %v5008_v32  ;;  %v4876_v0 = vor.u32 %v5924_v49, %v4875_v48  ;;  %v4655_v32 = vld [vmem:[#allocation5 + $0x588] sm:$0xf]  ;;  %v5869_v34 = vld [vmem:[#allocation5 + $0x598] sm:$0xf0] }
 0x101   :  { %2191 = vmatpush.bf16.msra.mxu0 %v4476_v60  ;;  %v4996_v60 = vld [vmem:[#allocation8 + $0x90] sm:$0xf]  ;;  %v1887_v29 = vpop.f32.mrf.mxu0 }
 0x102   :  { %2164 = vmatpush.bf16.msrb.mxu1 %v4136_v7  ;;  %v4696_v7 = vor.u32 %v5879_v56, %v4695_v55  ;;  %v4997_v12 = vor.u32 %v5954_v63, %v4996_v60  ;;  %v5909_v48 = vld [vmem:[#allocation5 + $0x6d8] sm:$0xf0]  ;;  %v1901_v49 = vpop.f32.mrf.mxu1  ;;  %v5864_v55 = vld [vmem:[#allocation5 + $0x570] sm:$0xf0]  ;;  %v5069_v60 = vor.u32 %v5972_v41, %v5068_v40  ;;  %v5032_v40 = vld [vmem:[#allocation8 + $0xd8] sm:$0xf] }
 0x103   :  { %2178 = vmatpush.bf16.msrb.mxu2 %v4296_v8  ;;  %v4855_v8 = vld [vmem:[#allocation5 + $0x718] sm:$0xf]  ;;  %v5963_v41 = vld [vmem:[#allocation8 + $0xe0] sm:$0xf0] }
 0x104   :  { %2151 = vmatpush.bf16.msra.mxu3 %v3956_v16  ;;  %v4675_v16 = vld [vmem:[#allocation5 + $0x5b0] sm:$0xf]  ;;  %v4856_v24 = vor.u32 %v5919_v9, %v4855_v8  ;;  %v4960_v63 = vld [vmem:[#allocation8 + $0x48] sm:$0xf]  ;;  %v4795_v9 = vld [vmem:[#allocation5 + $0x6a0] sm:$0xf] }
 0x105   :  { %2192 = vmatpush.bf16.msra.mxu0 %v4456_v23  ;;  %v5951_v23 = vld [vmem:[#allocation8 + $0x80] sm:$0xf0]  ;;  %v4676_v28 = vor.u32 %v5874_v17, %v4675_v16  ;;  %v5859_v17 = vld [vmem:[#allocation5 + $0x548] sm:$0xf0] }
 0x106   :  { %2165 = vmatpush.bf16.msrb.mxu1 %v4116_v30  ;;  %v1875_v30 = vpop.f32.mrf.mxu2 }
 0x107   :  { %2179 = vmatpush.bf16.msrb.mxu2 %v4276_v31  ;;  %2152 = vmatmul.bf16.vlgmr.msra.gmra.mxu3 %v6458_v57  ;;  %v5914_v57 = vld [vmem:[#allocation5 + $0x700] sm:$0xf0] }
 0x108   :  { %2200 = vmatpush.bf16.msrb.mxu3 %v4736_v21  ;;  %v4984_v21 = vld [vmem:[#allocation8 + $0x78] sm:$0xf]  ;;  %v4836_v22 = vor.u32 %v5914_v57, %v4835_v44  ;;  %v4775_v57 = vld [vmem:[#allocation5 + $0x678] sm:$0xf] }
 0x109   :  { %2193 = vmatpush.bf16.msra.mxu0 %v4436_v47  ;;  %2166 = vmatmul.bf16.vlgmr.msrb.gmra.mxu1 %v6465_v11  ;;  %v4985_v31 = vor.u32 %v5951_v23, %v4984_v21  ;;  %v4815_v47 = vld [vmem:[#allocation5 + $0x6c8] sm:$0xf]  ;;  %v1889_v16 = vpop.f32.mrf.mxu0  ;;  %v5057_v21 = vor.u32 %v5969_v36, %v5056_v2  ;;  %v4948_v23 = vld [vmem:[#allocation8 + $0x30] sm:$0xf]  ;;  %v5960_v2 = vld [vmem:[#allocation8 + $0xc8] sm:$0xf0] }
 0x10a   :  { %2214 = vmatpush.bf16.msra.mxu1 %v4896_v35  ;;  %2180 = vmatmul.bf16.vlgmr.msrb.gmra.mxu2 %v6460_v59  ;;  %v1778_v59 = vadd.f32 %v6516_v33, %v1764_v5  ;;  %v1776_v35 = vadd.f32 %v6507_v62, %v1762_v18  ;;  %v5948_v33 = vld [vmem:[#allocation8 + $0x68] sm:$0xf0]  ;;  %v4635_v62 = vld [vmem:[#allocation5 + $0x560] sm:$0xf]  ;;  %v1888_v5 = vadd.f32 %v1887_v29, %v1874_v43  ;;  %v5899_v29 = vld [vmem:[#allocation5 + $0x688] sm:$0xf0] }
 0x10b   :  { %2235 = vmatpush.bf16.msra.mxu2 %v4916_v38  ;;  %v4972_v38 = vld [vmem:[#allocation8 + $0x60] sm:$0xf]  ;;  %v4636_v8 = vor.u32 %v5864_v55, %v4635_v62 }
 0x10c   :  { %2201 = vmatpush.bf16.msrb.mxu3 %v4716_v46  ;;  %2194 = vmatmul.bf16.vlgmr.msra.gmra.mxu0 %v6462_v61  ;;  %v5081_v61 = vor.u32 %v5975_v26, %v5080_v25  ;;  %v1792_v11 = vadd.f32 %v6504_v45, %v1778_v59  ;;  %v4656_v46 = vor.u32 %v5869_v34, %v4655_v32  ;;  %v5044_v26 = vld [vmem:[#allocation8 + $0xf0] sm:$0xf]  ;;  %v5966_v59 = vld [vmem:[#allocation8 + $0xf8] sm:$0xf0] }
 0x10d   :  { %3065 = vmatpush.bf16.msrb.mxu0 %v5009_v54  ;;  %v4973_v54 = vor.u32 %v5948_v33, %v4972_v38  ;;  %v1790_v56 = vadd.f32 %v6498_v3, %v1776_v35  ;;  %v4816_v45 = vor.u32 %v5909_v48, %v4815_v47  ;;  %v5045_v35 = vor.u32 %v5966_v59, %v5044_v26  ;;  %v6005_v38 = vld [vmem:[#allocation8 + $0x230] sm:$0xf0]  ;;  %v1903_v33 = vpop.f32.mrf.mxu1  ;;  %v5164_v59 = vld [vmem:[#allocation8 + $0x1e0] sm:$0xf] }
 0x10e   :  { %2215 = vmatpush.bf16.msra.mxu1 %v4876_v0  ;;  %v5945_v0 = vld [vmem:[#allocation8 + $0x50] sm:$0xf0]  ;;  %v1806_v4 = vadd.f32 %v6518_v39, %v1792_v11  ;;  %v5942_v39 = vld [vmem:[#allocation8 + $0x38] sm:$0xf0] }
 0x10f   :  { %3079 = vmatpush.bf16.msrb.mxu2 %v5105_v58  ;;  %v1862_v58 = vadd.f32 %v1861_v20, %v465_v6  ;;  %v4961_v3 = vor.u32 %v5945_v0, %v4960_v63  ;;  %v4615_v6 = vld [vmem:[#allocation5 + $0x538] sm:$0xf]  ;;  %v1804_v18 = vadd.f32 %v6509_v1, %v1790_v56  ;;  %v4949_v1 = vor.u32 %v5942_v39, %v4948_v23  ;;  %v5894_v47 = vld [vmem:[#allocation5 + $0x660] sm:$0xf0]  ;;  %v5188_v63 = vld [vmem:[#allocation8 + $0x210] sm:$0xf] }
 0x110   :  { %2202 = vmatpush.bf16.msrb.mxu3 %v4696_v7  ;;  %v1915_v7 = vpop.f32.mrf.mxu3  ;;  %v1820_v20 = vadd.f32 %v6535_v51, %v1806_v4  ;;  %v4616_v44 = vor.u32 %v5859_v17, %v4615_v6  ;;  %v4595_v51 = vld [vmem:[#allocation5 + $0x510] sm:$0xf]  ;;  %v6002_v0 = vld [vmem:[#allocation8 + $0x218] sm:$0xf0]  ;;  %v5176_v6 = vld [vmem:[#allocation8 + $0x1f8] sm:$0xf] }
 0x111   :  { %3066 = vmatpush.bf16.msrb.mxu0 %v4997_v12  ;;  %v5904_v12 = vld [vmem:[#allocation5 + $0x6b0] sm:$0xf0]  ;;  %v1818_v27 = vadd.f32 %v6522_v52, %v1804_v18  ;;  %v4998_v23 = vld [vmem:[#allocation8 + $0x9c] sm:$0xf0] }
 0x112   :  { %2216 = vmatpush.bf16.msra.mxu1 %v4856_v24  ;;  %v1929_v24 = vpop.f32.mrf.mxu2  ;;  %v4796_v25 = vor.u32 %v5904_v12, %v4795_v9  ;;  %v1834_v32 = vadd.f32 %v6539_v10, %v1820_v20  ;;  %v5200_v52 = vld [vmem:[#allocation8 + $0x228] sm:$0xf]  ;;  %v1943_v10 = vpop.f32.mrf.mxu0  ;;  %v5189_v12 = vor.u32 %v6002_v0, %v5188_v63  ;;  %v5999_v17 = vld [vmem:[#allocation8 + $0x200] sm:$0xf0]  ;;  %v4950_v63 = vld [vmem:[#allocation8 + $0x3c] sm:$0xf0] }
 0x113   :  { %3080 = vmatpush.bf16.msrb.mxu2 %v5093_v19  ;;  %v1876_v19 = vadd.f32 %v1875_v30, %v1862_v58  ;;  %v5854_v30 = vld [vmem:[#allocation5 + $0x520] sm:$0xf0]  ;;  %v1832_v11 = vadd.f32 %v6528_v15, %v1818_v27  ;;  %v5201_v62 = vor.u32 %v6005_v38, %v5200_v52  ;;  %v5033_v58 = vor.u32 %v5963_v41, %v5032_v40  ;;  %v5996_v27 = vld [vmem:[#allocation8 + $0x1e8] sm:$0xf0]  ;;  %v4974_v52 = vld [vmem:[#allocation8 + $0x6c] sm:$0xf0] }
 0x114   :  { %2203 = vmatpush.bf16.msrb.mxu3 %v4676_v28  ;;  %v1902_v28 = vadd.f32 %v1901_v49, %v1888_v5  ;;  %v4596_v43 = vor.u32 %v5854_v30, %v4595_v51  ;;  %v1848_v55 = vadd.f32 %v6524_v53, %v1834_v32  ;;  %v5296_v51 = vld [vmem:[#allocation8 + $0x2e8] sm:$0xf]  ;;  %v6029_v30 = vld [vmem:[#allocation8 + $0x2f0] sm:$0xf0]  ;;  %v5140_v40 = vld [vmem:[#allocation8 + $0x1b0] sm:$0xf] }
 0x115   :  { %3067 = vmatpush.bf16.msrb.mxu0 %v4985_v31  ;;  %v4936_v31 = vld [vmem:[#allocation8 + $0x18] sm:$0xf]  ;;  %v1890_v34 = vadd.f32 %v1889_v16, %v1876_v19  ;;  %v1846_v36 = vadd.f32 %v6512_v14, %v1832_v11  ;;  %v5152_v32 = vld [vmem:[#allocation8 + $0x1c8] sm:$0xf]  ;;  %v5990_v41 = vld [vmem:[#allocation8 + $0x1b8] sm:$0xf0] }
 0x116   :  { %2217 = vmatpush.bf16.msra.mxu1 %v4836_v22  ;;  %v4776_v22 = vor.u32 %v5899_v29, %v4775_v57  ;;  %v2247_v16 = vmax.f32 %v1848_v55, 0.0  ;;  %v5950_v57 = vld [vmem:[#allocation8 + $0x7c] sm:$0xf]  ;;  %v4986_v29 = vld [vmem:[#allocation8 + $0x84] sm:$0xf0] }
 0x117   :  { %3081 = vmatpush.bf16.msrb.mxu2 %v5081_v61  ;;  %v5939_v61 = vld [vmem:[#allocation8 + $0x20] sm:$0xf0]  ;;  %v1904_v56 = vadd.f32 %v1903_v33, %v1890_v34  ;;  %v2242_v14 = vmax.f32 %v1846_v36, 0.0  ;;  %v5297_v34 = vor.u32 %v6029_v30, %v5296_v51  ;;  %v5284_v33 = vld [vmem:[#allocation8 + $0x2d0] sm:$0xf] }
 0x118   :  { %2204 = vmatpush.bf16.msrb.mxu3 %v4656_v46  ;;  %v4755_v46 = vld [vmem:[#allocation5 + $0x650] sm:$0xf]  ;;  %v1917_v48 = vpop.f32.mrf.mxu3  ;;  %v4937_v49 = vor.u32 %v5939_v61, %v4936_v31  ;;  %v5984_v36 = vld [vmem:[#allocation8 + $0x188] sm:$0xf0]  ;;  %v5224_v51 = vld [vmem:[#allocation8 + $0x258] sm:$0xf] }
 0x119   :  { %3068 = vmatpush.bf16.msrb.mxu0 %v4973_v54  ;;  %v4924_v54 = vld [vmem:[#allocation8] sm:$0xf]  ;;  %v4756_v15 = vor.u32 %v5894_v47, %v4755_v46  ;;  %v1918_v5 = vadd.f32 %v1917_v48, %v1904_v56  ;;  %v5947_v61 = vld [vmem:[#allocation8 + $0x64] sm:$0xf]  ;;  %v4962_v46 = vld [vmem:[#allocation8 + $0x54] sm:$0xf0]  ;;  %v5141_v47 = vor.u32 %v5990_v41, %v5140_v40 }
 0x11a   :  { %2218 = vmatpush.bf16.msra.mxu1 %v4816_v45  ;;  %4921 = vmatmul.msk.bf16.vlgmr.msra.gmra.mxu2 %vm1748_vm0, %v6470_v50  ;;  %v1916_v50 = vadd.f32 %v1915_v7, %v1902_v28  ;;  %v5020_v45 = vld [vmem:[#allocation8 + $0xc0] sm:$0xf]  ;;  %v5956_v7 = vld [vmem:[#allocation8 + $0xac] sm:$0xf]  ;;  %v1931_v9 = vpop.f32.mrf.mxu2  ;;  %v1945_v39 = vpop.f32.mrf.mxu0  ;;  %v5272_v48 = vld [vmem:[#allocation8 + $0x2b8] sm:$0xf] }
 0x11b   :  { %3082 = vmatpush.bf16.msrb.mxu2 %v5069_v60  ;;  %v5936_v60 = vld [vmem:[#allocation8 + $0x8] sm:$0xf0]  ;;  %v1932_v19 = vadd.f32 %v1931_v9, %v1918_v5  ;;  %v5938_v9 = vld [vmem:[#allocation8 + $0x1c] sm:$0xf]  ;;  %v6011_v30 = vld [vmem:[#allocation8 + $0x260] sm:$0xf0] }
 0x11c   :  { %2205 = vmatpush.bf16.msrb.mxu3 %v4636_v8  ;;  %v1930_v4 = vadd.f32 %v1929_v24, %v1916_v50  ;;  %v5010_v8 = vld [vmem:[#allocation8 + $0xb4] sm:$0xf0]  ;;  %v4925_v53 = vor.u32 %v5936_v60, %v4924_v54  ;;  %v5177_v24 = vor.u32 %v5999_v17, %v5176_v6  ;;  %v4977_v50 = vor.u32 %v5947_v61, %v4974_v52  ;;  %v5987_v54 = vld [vmem:[#allocation8 + $0x1a0] sm:$0xf0]  ;;  %v5941_v60 = vld [vmem:[#allocation8 + $0x34] sm:$0xf] }
 0x11d   :  { %3069 = vmatpush.bf16.msrb.mxu0 %v4961_v3  ;;  %v5021_v3 = vor.u32 %v5960_v2, %v5020_v45  ;;  %v5013_v18 = vor.u32 %v5956_v7, %v5010_v8  ;;  %v1946_v26 = vadd.f32 %v1945_v39, %v1932_v19  ;;  %v6020_v45 = vld [vmem:[#allocation8 + $0x2a8] sm:$0xf0]  ;;  %v5116_v2 = vld [vmem:[#allocation8 + $0x180] sm:$0xf]  ;;  %v4953_v5 = vor.u32 %v5941_v60, %v4950_v63  ;;  %v5106_v8 = vld [vmem:[#allocation8 + $0x174] sm:$0xf0] }
 0x11e   :  { %2219 = vmatpush.bf16.msra.mxu1 %v4796_v25  ;;  %v1944_v20 = vadd.f32 %v1943_v10, %v1930_v4  ;;  %v6563_v25 = vpack.c.bf16 %v2247_v16, %v2242_v14  ;;  %v6023_v10 = vld [vmem:[#allocation8 + $0x2c0] sm:$0xf0]  ;;  %v5980_v7 = vld [vmem:[#allocation8 + $0x16c] sm:$0xf]  ;;  %v5248_v16 = vld [vmem:[#allocation8 + $0x288] sm:$0xf] }
 0x11f   :  { %3083 = vmatpush.bf16.msrb.mxu2 %v5057_v21  ;;  %v5953_v21 = vld [vmem:[#allocation8 + $0x94] sm:$0xf]  ;;  %v5273_v55 = vor.u32 %v6023_v10, %v5272_v48  ;;  %v5109_v17 = vor.u32 %v5980_v7, %v5106_v8  ;;  %v466_v14 = vperm.slane %v6526_v13, 2  ;;  %v4926_v39 = vld [vmem:[#allocation8 + $0xc] sm:$0xf0] }
 0x120   :  { %2206 = vmatpush.bf16.msrb.mxu3 %v4616_v44  ;;  %v2243_v28 = vmax.f32 %v1944_v20, 0.0  ;;  %v2248_v44 = vmax.f32 %v1946_v26, 0.0  ;;  %v5977_v19 = vld [vmem:[#allocation8 + $0x154] sm:$0xf]  ;;  %v5236_v26 = vld [vmem:[#allocation8 + $0x270] sm:$0xf] }
 0x121   :  { %3070 = vmatpush.bf16.msrb.mxu0 %v4949_v1  ;;  %v5165_v1 = vor.u32 %v5996_v27, %v5164_v59  ;;  %v6014_v59 = vld [vmem:[#allocation8 + $0x278] sm:$0xf0]  ;;  %v5070_v61 = vld [vmem:[#allocation8 + $0x12c] sm:$0xf0]  ;;  %v5968_v48 = vld [vmem:[#allocation8 + $0x10c] sm:$0xf] }
 0x122   :  { %2220 = vmatpush.bf16.msra.mxu1 %v4776_v22  ;;  %v6567_v31 = vpack.c.bf16 %v2248_v44, %v2243_v28  ;;  %v6026_v22 = vld [vmem:[#allocation8 + $0x2d8] sm:$0xf0]  ;;  %v5237_v28 = vor.u32 %v6014_v59, %v5236_v26  ;;  %v5058_v10 = vld [vmem:[#allocation8 + $0x114] sm:$0xf0]  ;;  %v5992_v59 = vld [vmem:[#allocation8 + $0x1cc] sm:$0xf] }
 0x123   :  { %3084 = vmatpush.bf16.msrb.mxu2 %v5045_v35  ;;  %v4989_v35 = vor.u32 %v5950_v57, %v4986_v29  ;;  %v5285_v11 = vor.u32 %v6026_v22, %v5284_v33  ;;  %v5974_v29 = vld [vmem:[#allocation8 + $0x13c] sm:$0xf]  ;;  %v6008_v33 = vld [vmem:[#allocation8 + $0x248] sm:$0xf0] }
 0x124   :  { %2207 = vmatpush.bf16.msrb.mxu3 %v4596_v43  ;;  %v5944_v43 = vld [vmem:[#allocation8 + $0x4c] sm:$0xf]  ;;  %v5962_v8 = vld [vmem:[#allocation8 + $0xdc] sm:$0xf] }
 0x125   :  { %3071 = vmatpush.bf16.msrb.mxu0 %v4937_v49  ;;  %v5128_v49 = vld [vmem:[#allocation8 + $0x198] sm:$0xf]  ;;  %v4965_v56 = vor.u32 %v5944_v43, %v4962_v46 }
 0x126   :  { %2221 = vmatpush.bf16.msra.mxu1 %v4756_v15  ;;  %v5129_v0 = vor.u32 %v5987_v54, %v5128_v49  ;;  %v5260_v15 = vld [vmem:[#allocation8 + $0x2a0] sm:$0xf]  ;;  %v5202_v43 = vld [vmem:[#allocation8 + $0x234] sm:$0xf0] }
 0x127   :  { %3085 = vmatpush.bf16.msrb.mxu2 %v5033_v58  ;;  %2208 = vmatmul.bf16.vlgmr.msrb.gmra.mxu3 %v6474_v37  ;;  %v5001_v37 = vor.u32 %v5953_v21, %v4998_v23  ;;  %v1957_v58 = vpop.f32.mrf.mxu1  ;;  %v5261_v4 = vor.u32 %v6020_v45, %v5260_v15  ;;  %v5094_v21 = vld [vmem:[#allocation8 + $0x15c] sm:$0xf0]  ;;  %v5935_v23 = vld [vmem:[#allocation8 + $0x4] sm:$0xf] }
 0x128   :  { %3093 = vmatpush.bf16.msra.mxu3 %v5201_v62  ;;  %v6570_v62 = vpop.f32.mrf.mxu0  ;;  %v1958_v44 = vadd.f32 %v1957_v58, %v466_v14  ;;  %v4929_v57 = vor.u32 %v5935_v23, %v4926_v39  ;;  %v5190_v58 = vld [vmem:[#allocation8 + $0x21c] sm:$0xf0] }
 0x129   :  { %3072 = vmatpush.bf16.msrb.mxu0 %v4925_v53  ;;  %2222 = vmatmul.bf16.vlgmr.msra.gmra.mxu1 %v6476_v42  ;;  %v5993_v42 = vld [vmem:[#allocation8 + $0x1d0] sm:$0xf0]  ;;  %v4938_v53 = vld [vmem:[#allocation8 + $0x24] sm:$0xf0]  ;;  %v5046_v15 = vld [vmem:[#allocation8 + $0xfc] sm:$0xf0] }
 0x12a   :  { %3107 = vmatpush.bf16.msrb.mxu1 %v5297_v34  ;;  %v5153_v38 = vor.u32 %v5993_v42, %v5152_v32  ;;  %v1971_v6 = vpop.f32.mrf.mxu3  ;;  %v4941_v20 = vor.u32 %v5938_v9, %v4938_v53  ;;  %v5225_v32 = vor.u32 %v6011_v30, %v5224_v51  ;;  %v5034_v9 = vld [vmem:[#allocation8 + $0xe4] sm:$0xf0]  ;;  %v5989_v30 = vld [vmem:[#allocation8 + $0x1b4] sm:$0xf] }
 0x12b   :  { %3086 = vmatpush.bf16.msrb.mxu2 %v5021_v3  ;;  %v6017_v3 = vld [vmem:[#allocation8 + $0x290] sm:$0xf0]  ;;  %v1972_v34 = vadd.f32 %v1971_v6, %v1958_v44  ;;  %v5037_v6 = vor.u32 %v5962_v8, %v5034_v9 }
 0x12c   :  { %3094 = vmatpush.bf16.msra.mxu3 %v5189_v12  ;;  %3073 = vmatmul.bf16.vlgmr.msrb.gmra.mxu0 %v6563_v25  ;;  %v5117_v12 = vor.u32 %v5984_v36, %v5116_v2 }
 0x12d   :  { %v1999_v22 = vpop.f32.mrf.mxu2 }
 0x12e   :  { %3087 = vmatmul.bf16.vlgmr.msrb.gmra.mxu2 %v6567_v31  ;;  %3108 = vmatpush.bf16.msrb.mxu1 %v5285_v11 }
 0x12f   :  { %3135 = vmatpush.bf16.msra.mxu2 %v5013_v18  ;;  %v5249_v18 = vor.u32 %v6017_v3, %v5248_v16  ;;  %v1959_v27 = vpop.f32.mrf.mxu1 }
 0x130   :  { %3095 = vmatpush.bf16.msra.mxu3 %v5177_v24  ;;  %v1987_v24 = vpop.f32.mrf.mxu0  ;;  %v1960_v46 = vadd.f32 %v1959_v27, %v466_v14  ;;  %v5154_v27 = vld [vmem:[#allocation8 + $0x1d4] sm:$0xf0] }
 0x131   :  { %v5157_v44 = vor.u32 %v5992_v59, %v5154_v27  ;;  %v6041_v59 = vld [vmem:[#allocation8 + $0x350] sm:$0xf0] }
 0x132   :  { %3109 = vmatpush.bf16.msrb.mxu1 %v5273_v55  ;;  %v1973_v52 = vpop.f32.mrf.mxu3  ;;  %v5061_v55 = vor.u32 %v5968_v48, %v5058_v10  ;;  %v4992_v48 = vld [vmem:[#allocation8 + $0x80] sm:$0xf]  ;;  %v5952_v10 = vld [vmem:[#allocation8 + $0x88] sm:$0xf0] }
 0x133   :  { %3136 = vmatpush.bf16.msra.mxu2 %v5001_v37  ;;  %v5097_v37 = vor.u32 %v5977_v19, %v5094_v21  ;;  %v1974_v63 = vadd.f32 %v1973_v52, %v1960_v46  ;;  %v5959_v19 = vld [vmem:[#allocation8 + $0xc4] sm:$0xf]  ;;  %v5022_v21 = vld [vmem:[#allocation8 + $0xcc] sm:$0xf0] }
 0x134   :  { %3096 = vmatpush.bf16.msra.mxu3 %v5165_v1  ;;  %v5082_v1 = vld [vmem:[#allocation8 + $0x144] sm:$0xf0]  ;;  %v5025_v26 = vor.u32 %v5959_v19, %v5022_v21 }
 0x135   :  { %v5085_v42 = vor.u32 %v5974_v29, %v5082_v1  ;;  %v5016_v29 = vld [vmem:[#allocation8 + $0xb0] sm:$0xf]  ;;  %v5958_v1 = vld [vmem:[#allocation8 + $0xb8] sm:$0xf0] }
 0x136   :  { %3110 = vmatpush.bf16.msrb.mxu1 %v5261_v4  ;;  %v5178_v4 = vld [vmem:[#allocation8 + $0x204] sm:$0xf0]  ;;  %v5017_v52 = vor.u32 %v5958_v1, %v5016_v29 }
 0x137   :  { %3137 = vmatpush.bf16.msra.mxu2 %v4989_v35  ;;  %v5971_v35 = vld [vmem:[#allocation8 + $0x124] sm:$0xf] }
 0x138   :  { %3097 = vmatpush.bf16.msra.mxu3 %v5153_v38  ;;  %v5212_v38 = vld [vmem:[#allocation8 + $0x240] sm:$0xf]  ;;  %v5073_v40 = vor.u32 %v5971_v35, %v5070_v61  ;;  %v2041_v41 = vpop.f32.mrf.mxu0 }
 0x139   :  { %v5213_v11 = vor.u32 %v6008_v33, %v5212_v38  ;;  %v5004_v38 = vld [vmem:[#allocation8 + $0x98] sm:$0xf] }
 0x13a   :  { %3111 = vmatpush.bf16.msrb.mxu1 %v5249_v18  ;;  %v5166_v18 = vld [vmem:[#allocation8 + $0x1ec] sm:$0xf0] }
 0x13b   :  { %3138 = vmatpush.bf16.msra.mxu2 %v4977_v50  ;;  %v6004_v50 = vld [vmem:[#allocation8 + $0x22c] sm:$0xf] }
 0x13c   :  { %3098 = vmatpush.bf16.msra.mxu3 %v5141_v47  ;;  %v1986_v47 = vadd.f32 %v6570_v62, %v1972_v34  ;;  %v5205_v49 = vor.u32 %v6004_v50, %v5202_v43  ;;  %v5998_v62 = vld [vmem:[#allocation8 + $0x1fc] sm:$0xf]  ;;  %v5130_v43 = vld [vmem:[#allocation8 + $0x1a4] sm:$0xf0] }
 0x13d   :  { %v5181_v53 = vor.u32 %v5998_v62, %v5178_v4  ;;  %v5986_v50 = vld [vmem:[#allocation8 + $0x19c] sm:$0xf]  ;;  %v5949_v62 = vld [vmem:[#allocation8 + $0x70] sm:$0xf0]  ;;  %v5368_v4 = vld [vmem:[#allocation8 + $0x378] sm:$0xf] }
 0x13e   :  { %3112 = vmatpush.bf16.msrb.mxu1 %v5237_v28  ;;  %v2000_v60 = vadd.f32 %v1999_v22, %v1986_v47  ;;  %v5955_v22 = vld [vmem:[#allocation8 + $0xa0] sm:$0xf0]  ;;  %v5133_v46 = vor.u32 %v5986_v50, %v5130_v43  ;;  %v4932_v43 = vld [vmem:[#allocation8 + $0x8] sm:$0xf] }
 0x13f   :  { %3139 = vmatpush.bf16.msra.mxu2 %v4965_v56  ;;  %v6001_v56 = vld [vmem:[#allocation8 + $0x214] sm:$0xf]  ;;  %v5005_v47 = vor.u32 %v5955_v22, %v5004_v38  ;;  %v6046_v38 = vld [vmem:[#allocation8 + $0x37c] sm:$0xf]  ;;  %v5370_v22 = vld [vmem:[#allocation8 + $0x384] sm:$0xf0] }
 0x140   :  { %3099 = vmatpush.bf16.msra.mxu3 %v5129_v0  ;;  %v5965_v0 = vld [vmem:[#allocation8 + $0xf4] sm:$0xf]  ;;  %v5193_v45 = vor.u32 %v6001_v56, %v5190_v58  ;;  %v2043_v16 = vpop.f32.mrf.mxu0  ;;  %v5983_v58 = vld [vmem:[#allocation8 + $0x184] sm:$0xf] }
 0x141   :  { %v5049_v36 = vor.u32 %v5965_v0, %v5046_v15  ;;  %v4993_v15 = vor.u32 %v5952_v10, %v4992_v48  ;;  %v5937_v48 = vld [vmem:[#allocation8 + $0x10] sm:$0xf0]  ;;  %v5320_v10 = vld [vmem:[#allocation8 + $0x318] sm:$0xf] }
 0x142   :  { %3113 = vmatpush.bf16.msrb.mxu1 %v5225_v32  ;;  %v2013_v54 = vpop.f32.mrf.mxu1  ;;  %v5142_v32 = vld [vmem:[#allocation8 + $0x1bc] sm:$0xf0] }
 0x143   :  { %3140 = vmatpush.bf16.msra.mxu2 %v4953_v5  ;;  %v1988_v5 = vadd.f32 %v1987_v24, %v1974_v63  ;;  %v2014_v7 = vadd.f32 %v2013_v54, %v2000_v60  ;;  %v5145_v61 = vor.u32 %v5989_v30, %v5142_v32  ;;  %v6050_v54 = vld [vmem:[#allocation8 + $0x398] sm:$0xf0]  ;;  %v5118_v60 = vld [vmem:[#allocation8 + $0x18c] sm:$0xf0]  ;;  %v4944_v32 = vld [vmem:[#allocation8 + $0x20] sm:$0xf] }
 0x144   :  { %3100 = vmatpush.bf16.msra.mxu3 %v5117_v12  ;;  %v2001_v12 = vpop.f32.mrf.mxu2  ;;  %v5121_v63 = vor.u32 %v5983_v58, %v5118_v60  ;;  %v5358_v58 = vld [vmem:[#allocation8 + $0x36c] sm:$0xf0] }
 0x145   :  { %v2002_v14 = vadd.f32 %v2001_v12, %v1988_v5  ;;  %v6047_v5 = vld [vmem:[#allocation8 + $0x380] sm:$0xf0]  ;;  %v5356_v12 = vld [vmem:[#allocation8 + $0x360] sm:$0xf] }
 0x146   :  { %3114 = vmatpush.bf16.msrb.mxu1 %v5213_v11  ;;  %v5369_v8 = vor.u32 %v6047_v5, %v5368_v4  ;;  %v5308_v4 = vld [vmem:[#allocation8 + $0x300] sm:$0xf]  ;;  %v6032_v5 = vld [vmem:[#allocation8 + $0x308] sm:$0xf0] }
 0x147   :  { %3141 = vmatpush.bf16.msra.mxu2 %v4941_v20 }
 0x148   :  { %3149 = vmatpush.bf16.msrb.mxu3 %v5109_v17  ;;  %v5995_v17 = vld [vmem:[#allocation8 + $0x1e4] sm:$0xf] }
 0x149   :  { %v5169_v23 = vor.u32 %v5995_v17, %v5166_v18  ;;  %v2069_v51 = vpop.f32.mrf.mxu0  ;;  %v5394_v18 = vld [vmem:[#allocation8 + $0x3b4] sm:$0xf0] }
 0x14a   :  { %3163 = vmatpush.bf16.msra.mxu1 %v5205_v49  ;;  %v2027_v2 = vpop.f32.mrf.mxu3  ;;  %v2015_v3 = vpop.f32.mrf.mxu1  ;;  %v5380_v49 = vld [vmem:[#allocation8 + $0x390] sm:$0xf] }
 0x14b   :  { %3142 = vmatpush.bf16.msra.mxu2 %v4929_v57  ;;  %v2028_v20 = vadd.f32 %v2027_v2, %v2014_v7  ;;  %v2016_v39 = vadd.f32 %v2015_v3, %v2002_v14  ;;  %v5381_v56 = vor.u32 %v6050_v54, %v5380_v49  ;;  %v6052_v3 = vld [vmem:[#allocation8 + $0x3ac] sm:$0xf]  ;;  %v6035_v49 = vld [vmem:[#allocation8 + $0x320] sm:$0xf0] }
 0x14c   :  { %3150 = vmatpush.bf16.msrb.mxu3 %v5097_v37 }
 0x14d   :  { %v2042_v37 = vadd.f32 %v2041_v41, %v2028_v20  ;;  %v2055_v35 = vpop.f32.mrf.mxu2  ;;  %v6053_v41 = vld [vmem:[#allocation8 + $0x3b0] sm:$0xf0]  ;;  %v5397_v20 = vor.u32 %v6052_v3, %v5394_v18  ;;  %v5388_v18 = vld [vmem:[#allocation8 + $0x398] sm:$0xf] }
 0x14e   :  { %3143 = vmatmul.bf16.vlgmr.msra.gmra.mxu2 %v6563_v25  ;;  %3164 = vmatpush.bf16.msra.mxu1 %v5193_v45  ;;  %v4980_v45 = vld [vmem:[#allocation8 + $0x68] sm:$0xf] }
 0x14f   :  { %v4981_v9 = vor.u32 %v5949_v62, %v4980_v45  ;;  %3191 = vmatpush.bf16.msrb.mxu2 %v5397_v20  ;;  %v4933_v45 = vor.u32 %v5937_v48, %v4932_v43  ;;  %v5976_v43 = vld [vmem:[#allocation8 + $0x148] sm:$0xf0]  ;;  %v5262_v48 = vld [vmem:[#allocation8 + $0x2ac] sm:$0xf0] }
 0x150   :  { %3151 = vmatpush.bf16.msrb.mxu3 %v5085_v42  ;;  %v2244_v42 = vmax.f32 %v2042_v37, 0.0 }
 0x151   :  { %v2071_v0 = vpop.f32.mrf.mxu0 }
 0x152   :  { %3165 = vmatpush.bf16.msra.mxu1 %v5181_v53  ;;  %v2029_v24 = vpop.f32.mrf.mxu3  ;;  %v5946_v53 = vld [vmem:[#allocation8 + $0x58] sm:$0xf0] }
 0x153   :  { %v2030_v28 = vadd.f32 %v2029_v24, %v2016_v39  ;;  %v5943_v24 = vld [vmem:[#allocation8 + $0x40] sm:$0xf0] }
 0x154   :  { %3152 = vmatpush.bf16.msrb.mxu3 %v5073_v40  ;;  %v5392_v40 = vld [vmem:[#allocation8 + $0x3a8] sm:$0xf] }
 0x155   :  { %v2044_v57 = vadd.f32 %v2043_v16, %v2030_v28  ;;  %v5393_v11 = vor.u32 %v6053_v41, %v5392_v40  ;;  %v6044_v16 = vld [vmem:[#allocation8 + $0x368] sm:$0xf0]  ;;  %v6049_v28 = vld [vmem:[#allocation8 + $0x394] sm:$0xf]  ;;  %v5373_v41 = vor.u32 %v6046_v38, %v5370_v22  ;;  %v5322_v22 = vld [vmem:[#allocation8 + $0x324] sm:$0xf0] }
 0x156   :  { %3166 = vmatpush.bf16.msra.mxu1 %v5169_v23  ;;  %v5357_v17 = vor.u32 %v6044_v16, %v5356_v12  ;;  %v4956_v23 = vld [vmem:[#allocation8 + $0x38] sm:$0xf] }
 0x157   :  { %v2249_v34 = vmax.f32 %v2044_v57, 0.0  ;;  %3121 = vmatpush.bf16.msra.mxu0 %v5393_v11  ;;  %v4957_v30 = vor.u32 %v5943_v24, %v4956_v23  ;;  %v5346_v16 = vld [vmem:[#allocation8 + $0x354] sm:$0xf0]  ;;  %v5286_v23 = vld [vmem:[#allocation8 + $0x2dc] sm:$0xf0] }
 0x158   :  { %3153 = vmatpush.bf16.msrb.mxu3 %v5061_v55  ;;  %v467_v55 = vperm.slane %v6526_v13, 3  ;;  %v4968_v13 = vld [vmem:[#allocation8 + $0x50] sm:$0xf] }
 0x159   :  { %v6575_v33 = vpack.c.bf16 %v2249_v34, %v2244_v42  ;;  %v4969_v21 = vor.u32 %v5946_v53, %v4968_v13  ;;  %v5940_v42 = vld [vmem:[#allocation8 + $0x28] sm:$0xf0]  ;;  %v5332_v34 = vld [vmem:[#allocation8 + $0x330] sm:$0xf]  ;;  %v5298_v13 = vld [vmem:[#allocation8 + $0x2f4] sm:$0xf0] }
 0x15a   :  { %3167 = vmatpush.bf16.msra.mxu1 %v5157_v44  ;;  %v2056_v7 = vadd.f32 %v2055_v35, %v467_v55  ;;  %v5382_v44 = vld [vmem:[#allocation8 + $0x39c] sm:$0xf0]  ;;  %v6038_v35 = vld [vmem:[#allocation8 + $0x338] sm:$0xf0]  ;;  %v4945_v50 = vor.u32 %v5940_v42, %v4944_v32  ;;  %v6040_v53 = vld [vmem:[#allocation8 + $0x34c] sm:$0xf] }
 0x15b   :  { %3101 = vmatmul.bf16.vlgmr.msra.gmra.mxu3 %v6575_v33  ;;  %3122 = vmatpush.bf16.msra.mxu0 %v5381_v56  ;;  %v6043_v56 = vld [vmem:[#allocation8 + $0x364] sm:$0xf] }
 0x15c   :  { %3154 = vmatpush.bf16.msrb.mxu3 %v5049_v36  ;;  %v2057_v36 = vpop.f32.mrf.mxu2  ;;  %v5979_v32 = vld [vmem:[#allocation8 + $0x160] sm:$0xf0] }
 0x15d   :  { %v2058_v14 = vadd.f32 %v2057_v36, %v467_v55  ;;  %v5321_v55 = vor.u32 %v6035_v49, %v5320_v10  ;;  %v6031_v10 = vld [vmem:[#allocation8 + $0x304] sm:$0xf] }
 0x15e   :  { %3168 = vmatpush.bf16.msra.mxu1 %v5145_v61 }
 0x15f   :  { %3123 = vmatpush.bf16.msra.mxu0 %v5369_v8  ;;  %v2072_v57 = vadd.f32 %v2071_v0, %v2058_v14  ;;  %v5400_v0 = vld [vmem:[#allocation8 + $0x3b0] sm:$0xf]  ;;  %v5309_v8 = vor.u32 %v6032_v5, %v5308_v4  ;;  %v6051_v14 = vld [vmem:[#allocation8 + $0x3a0] sm:$0xf0]  ;;  %v5250_v4 = vld [vmem:[#allocation8 + $0x294] sm:$0xf0] }
 0x160   :  { %3155 = vmatpush.bf16.msrb.mxu3 %v5037_v6  ;;  %v2070_v6 = vadd.f32 %v2069_v51, %v2056_v7  ;;  %v5385_v51 = vor.u32 %v6049_v28, %v5382_v44  ;;  %v5376_v44 = vld [vmem:[#allocation8 + $0x380] sm:$0xf] }
 0x162   :  { %3169 = vmatpush.bf16.msra.mxu1 %v5133_v46  ;;  %v2083_v2 = vpop.f32.mrf.mxu1  ;;  %3192 = vmatpush.bf16.msrb.mxu2 %v5385_v51 }
 0x163   :  { %3124 = vmatpush.bf16.msra.mxu0 %v5357_v17  ;;  %v2084_v27 = vadd.f32 %v2083_v2, %v2070_v6  ;;  %v6054_v2 = vld [vmem:[#allocation8 + $0x3b8] sm:$0xf0]  ;;  %v5349_v17 = vor.u32 %v6040_v53, %v5346_v16  ;;  %v6039_v53 = vld [vmem:[#allocation8 + $0x340] sm:$0xf0]  ;;  %v5064_v16 = vld [vmem:[#allocation8 + $0x110] sm:$0xf] }
 0x164   :  { %3156 = vmatpush.bf16.msrb.mxu3 %v5025_v26  ;;  %v5344_v26 = vld [vmem:[#allocation8 + $0x348] sm:$0xf]  ;;  %v5401_v62 = vor.u32 %v6054_v2, %v5400_v0  ;;  %v6042_v0 = vld [vmem:[#allocation8 + $0x358] sm:$0xf0] }
 0x165   :  { %v5345_v37 = vor.u32 %v6041_v59, %v5344_v26  ;;  %v5112_v26 = vld [vmem:[#allocation8 + $0x170] sm:$0xf]  ;;  %v5982_v59 = vld [vmem:[#allocation8 + $0x178] sm:$0xf0] }
 0x166   :  { %3170 = vmatpush.bf16.msra.mxu1 %v5121_v63  ;;  %3193 = vmatpush.bf16.msrb.mxu2 %v5373_v41  ;;  %v5361_v63 = vor.u32 %v6043_v56, %v5358_v58  ;;  %v5113_v51 = vor.u32 %v5982_v59, %v5112_v26  ;;  %v6030_v56 = vld [vmem:[#allocation8 + $0x2f8] sm:$0xf0]  ;;  %v5052_v26 = vld [vmem:[#allocation8 + $0xf8] sm:$0xf] }
 0x167   :  { %3125 = vmatpush.bf16.msra.mxu0 %v5345_v37  ;;  %v5334_v37 = vld [vmem:[#allocation8 + $0x33c] sm:$0xf0] }
 0x168   :  { %3205 = vmatpush.bf16.msra.mxu3 %v5017_v52  ;;  %v5333_v52 = vor.u32 %v6038_v35, %v5332_v34  ;;  %v6022_v35 = vld [vmem:[#allocation8 + $0x2bc] sm:$0xf] }
 0x169   :  { %v2125_v1 = vpop.f32.mrf.mxu0 }
 0x16a   :  { %v2097_v19 = vpop.f32.mrf.mxu3  ;;  %v2085_v39 = vpop.f32.mrf.mxu1  ;;  %3194 = vmatpush.bf16.msrb.mxu2 %v5361_v63  ;;  %v5352_v63 = vld [vmem:[#allocation8 + $0x350] sm:$0xf] }
 0x16b   :  { %3157 = vmatmul.bf16.vlgmr.msrb.gmra.mxu3 %v6567_v31  ;;  %v2098_v61 = vadd.f32 %v2097_v19, %v2084_v27  ;;  %v2086_v40 = vadd.f32 %v2085_v39, %v2072_v57  ;;  %3126 = vmatpush.bf16.msra.mxu0 %v5333_v52  ;;  %v5389_v19 = vor.u32 %v6051_v14, %v5388_v18  ;;  %v6037_v39 = vld [vmem:[#allocation8 + $0x334] sm:$0xf]  ;;  %v6048_v57 = vld [vmem:[#allocation8 + $0x388] sm:$0xf0]  ;;  %v6034_v52 = vld [vmem:[#allocation8 + $0x31c] sm:$0xf] }
 0x16c   :  { %3206 = vmatpush.bf16.msra.mxu3 %v5005_v47  ;;  %v5337_v28 = vor.u32 %v6037_v39, %v5334_v37  ;;  %v5377_v42 = vor.u32 %v6048_v57, %v5376_v44  ;;  %v5325_v41 = vor.u32 %v6034_v52, %v5322_v22  ;;  %v5353_v2 = vor.u32 %v6042_v0, %v5352_v63  ;;  %v5238_v18 = vld [vmem:[#allocation8 + $0x27c] sm:$0xf0]  ;;  %v6036_v39 = vld [vmem:[#allocation8 + $0x328] sm:$0xf0]  ;;  %v6010_v37 = vld [vmem:[#allocation8 + $0x25c] sm:$0xf] }
 0x16d   :  { %v2111_v29 = vpop.f32.mrf.mxu2  ;;  %v5040_v52 = vld [vmem:[#allocation8 + $0xe0] sm:$0xf]  ;;  %v5964_v22 = vld [vmem:[#allocation8 + $0xe8] sm:$0xf0] }
 0x16e   :  { %v2112_v54 = vadd.f32 %v2111_v29, %v2098_v61  ;;  %3195 = vmatpush.bf16.msrb.mxu2 %v5349_v17  ;;  %v5274_v61 = vld [vmem:[#allocation8 + $0x2c4] sm:$0xf0]  ;;  %v6013_v17 = vld [vmem:[#allocation8 + $0x274] sm:$0xf] }
 0x16f   :  { %3127 = vmatpush.bf16.msra.mxu0 %v5321_v55  ;;  %v5277_v38 = vor.u32 %v6022_v35, %v5274_v61  ;;  %v5304_v55 = vld [vmem:[#allocation8 + $0x2f0] sm:$0xf]  ;;  %v5241_v14 = vor.u32 %v6013_v17, %v5238_v18  ;;  %v6033_v35 = vld [vmem:[#allocation8 + $0x310] sm:$0xf0] }
 0x170   :  { %3207 = vmatpush.bf16.msra.mxu3 %v4993_v15  ;;  %v2126_v7 = vadd.f32 %v2125_v1, %v2112_v54  ;;  %v5310_v54 = vld [vmem:[#allocation8 + $0x30c] sm:$0xf0] }
 0x171   :  { %v2127_v36 = vpop.f32.mrf.mxu0  ;;  %v5313_v58 = vor.u32 %v6031_v10, %v5310_v54  ;;  %v5961_v10 = vld [vmem:[#allocation8 + $0xd0] sm:$0xf0] }
 0x172   :  { %v2099_v11 = vpop.f32.mrf.mxu3  ;;  %v2139_v47 = vpop.f32.mrf.mxu1  ;;  %3196 = vmatpush.bf16.msrb.mxu2 %v5337_v28  ;;  %v5226_v28 = vld [vmem:[#allocation8 + $0x264] sm:$0xf0] }
 0x173   :  { %v2100_v46 = vadd.f32 %v2099_v11, %v2086_v40  ;;  %v2140_v3 = vadd.f32 %v2139_v47, %v2126_v7  ;;  %3128 = vmatpush.bf16.msra.mxu0 %v5309_v8  ;;  %v6045_v40 = vld [vmem:[#allocation8 + $0x370] sm:$0xf0]  ;;  %v6019_v47 = vld [vmem:[#allocation8 + $0x2a4] sm:$0xf]  ;;  %v5292_v7 = vld [vmem:[#allocation8 + $0x2d8] sm:$0xf]  ;;  %v5229_v57 = vor.u32 %v6010_v37, %v5226_v28 }
 0x174   :  { %3208 = vmatpush.bf16.msra.mxu3 %v4981_v9  ;;  %v6028_v9 = vld [vmem:[#allocation8 + $0x2ec] sm:$0xf]  ;;  %v5265_v49 = vor.u32 %v6019_v47, %v5262_v48  ;;  %v6027_v8 = vld [vmem:[#allocation8 + $0x2e0] sm:$0xf0]  ;;  %v6018_v47 = vld [vmem:[#allocation8 + $0x298] sm:$0xf0] }
 0x175   :  { %v2113_v60 = vpop.f32.mrf.mxu2  ;;  %v5301_v12 = vor.u32 %v6028_v9, %v5298_v13  ;;  %v2245_v29 = vmax.f32 %v2140_v3, 0.0  ;;  %v5340_v9 = vld [vmem:[#allocation8 + $0x338] sm:$0xf]  ;;  %v5293_v13 = vor.u32 %v6027_v8, %v5292_v7  ;;  %v5028_v48 = vld [vmem:[#allocation8 + $0xc8] sm:$0xf] }
 0x176   :  { %v2114_v15 = vadd.f32 %v2113_v60, %v2100_v46  ;;  %3197 = vmatpush.bf16.msrb.mxu2 %v5325_v41  ;;  %v5305_v60 = vor.u32 %v6030_v56, %v5304_v55  ;;  %v5341_v3 = vor.u32 %v6039_v53, %v5340_v9  ;;  %v6147_v41 = vld [vmem:[#allocation7] sm:$0x1f]  ;;  %v6015_v56 = vld [vmem:[#allocation8 + $0x280] sm:$0xf0]  ;;  %v5220_v8 = vld [vmem:[#allocation8 + $0x248] sm:$0xf] }
 0x177   :  { %3177 = vmatpush.bf16.msrb.mxu0 %v5301_v12  ;;  %v5244_v55 = vld [vmem:[#allocation8 + $0x278] sm:$0xf]  ;;  %v6009_v9 = vld [vmem:[#allocation8 + $0x250] sm:$0xf0]  ;;  %v6006_v37 = vld [vmem:[#allocation8 + $0x238] sm:$0xf0] }
 0x178   :  { %3209 = vmatpush.bf16.msra.mxu3 %v4969_v21  ;;  %v2128_v6 = vadd.f32 %v2127_v36, %v2114_v15  ;;  %v6025_v21 = vld [vmem:[#allocation8 + $0x2d4] sm:$0xf]  ;;  %v5245_v63 = vor.u32 %v6015_v56, %v5244_v55  ;;  %v5221_v53 = vor.u32 %v6009_v9, %v5220_v8  ;;  %v6070_v55 = vld [vmem:[#allocation10 + $0x74] sm:$0xf0]  ;;  %v5428_v9 = vld [vmem:[#allocation10 + $0x30] sm:$0xf] }
 0x179   :  { %v5289_v27 = vor.u32 %v6025_v21, %v5286_v23  ;;  %v5973_v36 = vld [vmem:[#allocation8 + $0x130] sm:$0xf0]  ;;  %v5328_v21 = vld [vmem:[#allocation8 + $0x320] sm:$0xf] }
 0x17a   :  { %v2141_v20 = vpop.f32.mrf.mxu1  ;;  %3198 = vmatpush.bf16.msrb.mxu2 %v5313_v58  ;;  %v5329_v59 = vor.u32 %v6036_v39, %v5328_v21 }
 0x17b   :  { %v2142_v24 = vadd.f32 %v2141_v20, %v2128_v6  ;;  %3178 = vmatpush.bf16.msrb.mxu0 %v5289_v27  ;;  %v5970_v6 = vld [vmem:[#allocation8 + $0x118] sm:$0xf0]  ;;  %v5280_v20 = vld [vmem:[#allocation8 + $0x2c0] sm:$0xf]  ;;  %v5967_v27 = vld [vmem:[#allocation8 + $0x100] sm:$0xf0] }
 0x17c   :  { %3210 = vmatpush.bf16.msra.mxu3 %v4957_v30  ;;  %v5100_v30 = vld [vmem:[#allocation8 + $0x158] sm:$0xf]  ;;  %v5053_v61 = vor.u32 %v5967_v27, %v5052_v26  ;;  %v5208_v27 = vld [vmem:[#allocation8 + $0x230] sm:$0xf] }
 0x17d   :  { %v2250_v1 = vmax.f32 %v2142_v24, 0.0  ;;  %v5101_v11 = vor.u32 %v5979_v32, %v5100_v30  ;;  %v5065_v24 = vor.u32 %v5970_v6, %v5064_v16 }
 0x17e   :  { %3247 = vmatpush.bf16.msra.mxu2 %v5305_v60  ;;  %v5029_v60 = vor.u32 %v5961_v10, %v5028_v48  ;;  %v5124_v48 = vld [vmem:[#allocation8 + $0x188] sm:$0xf]  ;;  %v5985_v10 = vld [vmem:[#allocation8 + $0x190] sm:$0xf0] }
 0x17f   :  { %v6581_v34 = vpack.c.bf16 %v2250_v1, %v2245_v29  ;;  %3179 = vmatpush.bf16.msrb.mxu0 %v5277_v38  ;;  %v5268_v29 = vld [vmem:[#allocation8 + $0x2a8] sm:$0xf]  ;;  %v6021_v1 = vld [vmem:[#allocation8 + $0x2b0] sm:$0xf0] }
 0x180   :  { %3211 = vmatpush.bf16.msra.mxu3 %v4945_v50  ;;  %v5088_v50 = vld [vmem:[#allocation8 + $0x140] sm:$0xf] }
 0x181   :  { %3115 = vmatmul.bf16.vlgmr.msrb.gmra.mxu1 %v6581_v34  ;;  %v5089_v15 = vor.u32 %v5976_v43, %v5088_v50  ;;  %v5256_v43 = vld [vmem:[#allocation8 + $0x290] sm:$0xf] }
 0x182   :  { %3219 = vmatpush.bf16.msrb.mxu1 %v5113_v51  ;;  %3248 = vmatpush.bf16.msra.mxu2 %v5293_v13  ;;  %v5316_v51 = vld [vmem:[#allocation8 + $0x308] sm:$0xf] }
 0x183   :  { %3180 = vmatpush.bf16.msrb.mxu0 %v5265_v49  ;;  %v5317_v38 = vor.u32 %v6033_v35, %v5316_v51  ;;  %v5257_v49 = vor.u32 %v6018_v47, %v5256_v43  ;;  %v6003_v51 = vld [vmem:[#allocation8 + $0x220] sm:$0xf0]  ;;  %v5136_v43 = vld [vmem:[#allocation8 + $0x1a0] sm:$0xf] }
 0x184   :  { %3212 = vmatpush.bf16.msra.mxu3 %v4933_v45  ;;  %v5076_v45 = vld [vmem:[#allocation8 + $0x128] sm:$0xf] }
 0x185   :  { %v5077_v12 = vor.u32 %v5973_v36, %v5076_v45  ;;  %v5232_v36 = vld [vmem:[#allocation8 + $0x260] sm:$0xf] }
 0x186   :  { %3220 = vmatpush.bf16.msrb.mxu1 %v5101_v11  ;;  %v2167_v44 = vpop.f32.mrf.mxu1  ;;  %v468_v11 = vperm.slane %v6147_v41, 4  ;;  %v5148_v41 = vld [vmem:[#allocation8 + $0x1b8] sm:$0xf] }
 0x187   :  { %3213 = vmatmul.bf16.vlgmr.msra.gmra.mxu3 %v6563_v25  ;;  %v5364_v25 = vld [vmem:[#allocation8 + $0x368] sm:$0xf] }
 0x188   :  { %3261 = vmatpush.bf16.msrb.mxu3 %v5401_v62  ;;  %v5365_v46 = vor.u32 %v6045_v40, %v5364_v25  ;;  %v6016_v62 = vld [vmem:[#allocation8 + $0x28c] sm:$0xf]  ;;  %v6007_v25 = vld [vmem:[#allocation8 + $0x244] sm:$0xf]  ;;  %v5214_v40 = vld [vmem:[#allocation8 + $0x24c] sm:$0xf0] }
 0x189   :  { %v5253_v5 = vor.u32 %v6016_v62, %v5250_v4  ;;  %v5217_v50 = vor.u32 %v6007_v25, %v5214_v40  ;;  %v6012_v62 = vld [vmem:[#allocation8 + $0x268] sm:$0xf0]  ;;  %v5994_v25 = vld [vmem:[#allocation8 + $0x1d8] sm:$0xf0] }
 0x18a   :  { %3221 = vmatpush.bf16.msrb.mxu1 %v5089_v15  ;;  %v2153_v30 = vpop.f32.mrf.mxu3 }
 0x18b   :  { %3181 = vmatpush.bf16.msrb.mxu0 %v5253_v5  ;;  %v2154_v54 = vadd.f32 %v2153_v30, %v468_v11  ;;  %v5233_v5 = vor.u32 %v6012_v62, %v5232_v36  ;;  %v5436_v36 = vld [vmem:[#allocation10 + $0x40] sm:$0xf] }
 0x18c   :  { %3262 = vmatpush.bf16.msrb.mxu3 %v5389_v19  ;;  %v6024_v19 = vld [vmem:[#allocation8 + $0x2c8] sm:$0xf0] }
 0x18d   :  { %v5281_v23 = vor.u32 %v6024_v19, %v5280_v20  ;;  %v2181_v32 = vpop.f32.mrf.mxu2  ;;  %v2168_v45 = vadd.f32 %v2167_v44, %v2154_v54  ;;  %v5460_v54 = vld [vmem:[#allocation10 + $0x70] sm:$0xf] }
 0x18e   :  { %3222 = vmatpush.bf16.msrb.mxu1 %v5077_v12  ;;  %v2169_v58 = vpop.f32.mrf.mxu1  ;;  %v5461_v56 = vor.u32 %v6070_v55, %v5460_v54  ;;  %v5414_v54 = vld [vmem:[#allocation10 + $0x18] sm:$0xf0] }
 0x18f   :  { %3182 = vmatpush.bf16.msrb.mxu0 %v5241_v14  ;;  %3249 = vmatpush.bf16.msra.mxu2 %v5281_v23  ;;  %v2182_v7 = vadd.f32 %v2181_v32, %v2168_v45  ;;  %v5184_v32 = vld [vmem:[#allocation8 + $0x200] sm:$0xf]  ;;  %v6069_v45 = vld [vmem:[#allocation10 + $0x74] sm:$0xf] }
 0x190   :  { %3263 = vmatpush.bf16.msrb.mxu3 %v5377_v42  ;;  %v5269_v42 = vor.u32 %v6021_v1, %v5268_v29  ;;  %v5196_v1 = vld [vmem:[#allocation8 + $0x218] sm:$0xf] }
 0x191   :  { %3171 = vmatmul.bf16.vlgmr.msra.gmra.mxu1 %v6575_v33  ;;  %v5197_v30 = vor.u32 %v6003_v51, %v5196_v1  ;;  %v5430_v1 = vld [vmem:[#allocation10 + $0x38] sm:$0xf0] }
 0x192   :  { %3223 = vmatpush.bf16.msrb.mxu1 %v5065_v24  ;;  %v2155_v0 = vpop.f32.mrf.mxu3 }
 0x193   :  { %3183 = vmatpush.bf16.msrb.mxu0 %v5229_v57  ;;  %3250 = vmatpush.bf16.msra.mxu2 %v5269_v42  ;;  %v2156_v4 = vadd.f32 %v2155_v0, %v468_v11  ;;  %v5209_v57 = vor.u32 %v6006_v37, %v5208_v27  ;;  %v6000_v42 = vld [vmem:[#allocation8 + $0x208] sm:$0xf0]  ;;  %v5991_v11 = vld [vmem:[#allocation8 + $0x1c0] sm:$0xf0]  ;;  %v6066_v0 = vld [vmem:[#allocation10 + $0x54] sm:$0xf0] }
 0x194   :  { %3264 = vmatpush.bf16.msrb.mxu3 %v5365_v46  ;;  %v5041_v46 = vor.u32 %v5964_v22, %v5040_v52  ;;  %v5185_v35 = vor.u32 %v6000_v42, %v5184_v32  ;;  %v5997_v52 = vld [vmem:[#allocation8 + $0x1f0] sm:$0xf0]  ;;  %v5160_v22 = vld [vmem:[#allocation8 + $0x1d0] sm:$0xf]  ;;  %v6082_v37 = vld [vmem:[#allocation10 + $0xd4] sm:$0xf0] }
 0x195   :  { %v2183_v15 = vpop.f32.mrf.mxu2  ;;  %v2170_v13 = vadd.f32 %v2169_v58, %v2156_v4  ;;  %v5161_v40 = vor.u32 %v5994_v25, %v5160_v22  ;;  %v5452_v58 = vld [vmem:[#allocation10 + $0x60] sm:$0xf]  ;;  %v6064_v4 = vld [vmem:[#allocation10 + $0x44] sm:$0xf0]  ;;  %v5508_v27 = vld [vmem:[#allocation10 + $0xd0] sm:$0xf] }
 0x196   :  { %3224 = vmatpush.bf16.msrb.mxu1 %v5053_v61  ;;  %v5172_v61 = vld [vmem:[#allocation8 + $0x1e8] sm:$0xf] }
 0x197   :  { %3184 = vmatpush.bf16.msrb.mxu0 %v5217_v50  ;;  %3251 = vmatpush.bf16.msra.mxu2 %v5257_v49  ;;  %v2184_v17 = vadd.f32 %v2183_v15, %v2170_v13  ;;  %v5149_v50 = vor.u32 %v5991_v11, %v5148_v41  ;;  %v5125_v49 = vor.u32 %v5985_v10, %v5124_v48  ;;  %v6062_v13 = vld [vmem:[#allocation10 + $0x34] sm:$0xf0]  ;;  %v6056_v32 = vld [vmem:[#allocation10 + $0x4] sm:$0xf0]  ;;  %v5422_v41 = vld [vmem:[#allocation10 + $0x28] sm:$0xf0] }
 0x198   :  { %3265 = vmatpush.bf16.msrb.mxu3 %v5353_v2  ;;  %v2195_v2 = vpop.f32.mrf.mxu0  ;;  %v6080_v22 = vld [vmem:[#allocation10 + $0xc4] sm:$0xf0]  ;;  %v6078_v48 = vld [vmem:[#allocation10 + $0xb4] sm:$0xf0] }
 0x19a   :  { %3225 = vmatpush.bf16.msrb.mxu1 %v5041_v46  ;;  %v5988_v46 = vld [vmem:[#allocation8 + $0x1a8] sm:$0xf0] }
 0x19b   :  { %3252 = vmatpush.bf16.msra.mxu2 %v5245_v63  ;;  %v5137_v47 = vor.u32 %v5988_v46, %v5136_v43  ;;  %v5444_v63 = vld [vmem:[#allocation10 + $0x50] sm:$0xf]  ;;  %v5518_v43 = vld [vmem:[#allocation10 + $0xe8] sm:$0xf0] }
 0x19c   :  { %3266 = vmatpush.bf16.msrb.mxu3 %v5341_v3  ;;  %v2196_v3 = vadd.f32 %v2195_v2, %v2182_v7  ;;  %v5445_v15 = vor.u32 %v6066_v0, %v5444_v63  ;;  %v5462_v2 = vld [vmem:[#allocation10 + $0x78] sm:$0xf0]  ;;  %v5454_v7 = vld [vmem:[#allocation10 + $0x68] sm:$0xf0]  ;;  %v5484_v0 = vld [vmem:[#allocation10 + $0xa0] sm:$0xf] }
 0x19d   :  { %v2237_v6 = vpop.f32.mrf.mxu2  ;;  %v5465_v62 = vor.u32 %v6069_v45, %v5462_v2  ;;  %v6055_v2 = vld [vmem:[#allocation10 + $0x4] sm:$0xf] }
 0x19e   :  { %3226 = vmatpush.bf16.msrb.mxu1 %v5029_v60  ;;  %v6068_v60 = vld [vmem:[#allocation10 + $0x64] sm:$0xf0] }
 0x19f   :  { %3253 = vmatpush.bf16.msra.mxu2 %v5233_v5  ;;  %v5437_v5 = vor.u32 %v6064_v4, %v5436_v36  ;;  %v5406_v36 = vld [vmem:[#allocation10 + $0x8] sm:$0xf0]  ;;  %v6079_v4 = vld [vmem:[#allocation10 + $0xc4] sm:$0xf] }
 0x1a0   :  { %3267 = vmatpush.bf16.msrb.mxu3 %v5329_v59  ;;  %v2197_v14 = vpop.f32.mrf.mxu0 }
 0x1a1   :  { %3227 = vmatmul.bf16.vlgmr.msrb.gmra.mxu1 %v6567_v31  ;;  %v2198_v20 = vadd.f32 %v2197_v14, %v2184_v17  ;;  %v5446_v17 = vld [vmem:[#allocation10 + $0x58] sm:$0xf0]  ;;  %v6060_v14 = vld [vmem:[#allocation10 + $0x24] sm:$0xf0] }
 0x1a2   :  { %3578 = vmatpush.bf16.msra.mxu1 %v5461_v56 }
 0x1a3   :  { %3254 = vmatpush.bf16.msra.mxu2 %v5221_v53  ;;  %v5429_v53 = vor.u32 %v6062_v13, %v5428_v9 }
 0x1a4   :  { %3268 = vmatpush.bf16.msrb.mxu3 %v5317_v38  ;;  %v5173_v38 = vor.u32 %v5997_v52, %v5172_v61  ;;  %v5526_v61 = vld [vmem:[#allocation10 + $0xf8] sm:$0xf0] }
 0x1a5   :  { %v2239_v26 = vpop.f32.mrf.mxu2 }
 0x1a6   :  { %v2223_v12 = vpop.f32.mrf.mxu1 }
 0x1a8   :  { %3620 = vmatpush.bf16.msra.mxu3 %v5465_v62  ;;  %v5409_v62 = vor.u32 %v6055_v2, %v5406_v36  ;;  %v5556_v2 = vld [vmem:[#allocation10 + $0x130] sm:$0xf]  ;;  %v6094_v36 = vld [vmem:[#allocation10 + $0x134] sm:$0xf0] }
 0x1a9   :  { %v3074_v9 = vpop.f32.mrf.mxu0 }
 0x1aa   :  { %v2209_v16 = vpop.f32.mrf.mxu3 }
 0x1ab   :  { %v2210_v18 = vadd.f32 %v2209_v16, %v2196_v3  ;;  %v6086_v16 = vld [vmem:[#allocation10 + $0xf4] sm:$0xf0]  ;;  %v6065_v3 = vld [vmem:[#allocation10 + $0x54] sm:$0xf] }
 0x1ad   :  { %v2224_v19 = vadd.f32 %v2223_v12, %v2210_v18  ;;  %v5524_v12 = vld [vmem:[#allocation10 + $0xf0] sm:$0xf]  ;;  %v5420_v18 = vld [vmem:[#allocation10 + $0x20] sm:$0xf] }
 0x1ae   :  { %v2225_v39 = vpop.f32.mrf.mxu1 }
 0x1af   :  { %v2238_v24 = vadd.f32 %v2237_v6, %v2224_v19  ;;  %v5525_v6 = vor.u32 %v6086_v16, %v5524_v12  ;;  %v5421_v19 = vor.u32 %v6060_v14, %v5420_v18  ;;  %v5494_v12 = vld [vmem:[#allocation10 + $0xb8] sm:$0xf0] }
 0x1b1   :  { %v2246_v28 = vmax.f32 %v2238_v24, 0.0 }
 0x1b2   :  { %v2211_v21 = vpop.f32.mrf.mxu3 }
 0x1b3   :  { %v2212_v23 = vadd.f32 %v2211_v21, %v2198_v20  ;;  %v5449_v20 = vor.u32 %v6065_v3, %v5446_v17  ;;  %v5516_v21 = vld [vmem:[#allocation10 + $0xe0] sm:$0xf]  ;;  %v6072_v17 = vld [vmem:[#allocation10 + $0x84] sm:$0xf0] }
 0x1b5   :  { %v2226_v31 = vadd.f32 %v2225_v39, %v2212_v23  ;;  %v6084_v23 = vld [vmem:[#allocation10 + $0xe4] sm:$0xf0]  ;;  %v6063_v39 = vld [vmem:[#allocation10 + $0x44] sm:$0xf] }
 0x1b6   :  { %v5517_v24 = vor.u32 %v6084_v23, %v5516_v21  ;;  %v6102_v21 = vld [vmem:[#allocation10 + $0x174] sm:$0xf0]  ;;  %v6101_v23 = vld [vmem:[#allocation10 + $0x174] sm:$0xf] }
 0x1b7   :  { %v2240_v59 = vadd.f32 %v2239_v26, %v2226_v31  ;;  %v5438_v31 = vld [vmem:[#allocation10 + $0x48] sm:$0xf0]  ;;  %v5412_v26 = vld [vmem:[#allocation10 + $0x10] sm:$0xf] }
 0x1b9   :  { %v2251_v44 = vmax.f32 %v2240_v59, 0.0  ;;  %v6058_v59 = vld [vmem:[#allocation10 + $0x14] sm:$0xf0] }
 0x1bb   :  { %v2256_v29 = vpack.c.bf16 %v2251_v44, %v2246_v28  ;;  %v5441_v28 = vor.u32 %v6063_v39, %v5438_v31  ;;  %v5413_v44 = vor.u32 %v6058_v59, %v5412_v26  ;;  %v6075_v26 = vld [vmem:[#allocation10 + $0xa4] sm:$0xf]  ;;  %v5486_v59 = vld [vmem:[#allocation10 + $0xa8] sm:$0xf0] }
 0x1bd   :  { %3129 = vmatmul.bf16.vlgmr.msra.gmra.mxu0 %v2256_v29  ;;  %3199 = vmatmul.bf16.vlgmr.msrb.gmra.mxu2 %v2256_v29 }
 0x1be   :  { %3269 = vmatmul.bf16.vlgmr.msrb.gmra.mxu3 %v2256_v29  ;;  %3233 = vmatpush.bf16.msra.mxu0 %v5209_v57  ;;  %v5509_v57 = vor.u32 %v6082_v37, %v5508_v27  ;;  %v6061_v29 = vld [vmem:[#allocation10 + $0x34] sm:$0xf]  ;;  %v5489_v27 = vor.u32 %v6075_v26, %v5486_v59  ;;  %v5580_v37 = vld [vmem:[#allocation10 + $0x160] sm:$0xf] }
 0x1bf   :  { %v5433_v51 = vor.u32 %v6061_v29, %v5430_v1  ;;  %v5582_v29 = vld [vmem:[#allocation10 + $0x168] sm:$0xf0]  ;;  %v6600_v1 = vld [vmem:[%s6634_s4] sm:$0x7] }
 0x1c2   :  { %3234 = vmatpush.bf16.msra.mxu0 %v5197_v30  ;;  %v5404_v30 = vld [vmem:[#allocation10] sm:$0xf] }
 0x1c3   :  { %v5405_v42 = vor.u32 %v6056_v32, %v5404_v30  ;;  %v6073_v32 = vld [vmem:[#allocation10 + $0x94] sm:$0xf] }
 0x1c6   :  { %3235 = vmatpush.bf16.msra.mxu0 %v5185_v35  ;;  %v6085_v35 = vld [vmem:[#allocation10 + $0xf4] sm:$0xf] }
 0x1c7   :  { %v5529_v52 = vor.u32 %v6085_v35, %v5526_v61 }
 0x1ca   :  { %3236 = vmatpush.bf16.msra.mxu0 %v5173_v38  ;;  %v5500_v38 = vld [vmem:[#allocation10 + $0xc0] sm:$0xf] }
 0x1cb   :  { %v5501_v25 = vor.u32 %v6080_v22, %v5500_v38  ;;  %v6098_v38 = vld [vmem:[#allocation10 + $0x154] sm:$0xf0]  ;;  %v6097_v22 = vld [vmem:[#allocation10 + $0x154] sm:$0xf] }
 0x1cd   :  { %3185 = vmatmul.bf16.vlgmr.msrb.gmra.mxu0 %v6581_v34  ;;  %3255 = vmatmul.bf16.vlgmr.msra.gmra.mxu2 %v6581_v34  ;;  %v5453_v34 = vor.u32 %v6068_v60, %v5452_v58  ;;  %v6591_v58 = vpop.f32.mrf.mxu2  ;;  %v6081_v60 = vld [vmem:[#allocation10 + $0xd4] sm:$0xf] }
 0x1ce   :  { %3237 = vmatpush.bf16.msra.mxu0 %v5161_v40  ;;  %v6059_v40 = vld [vmem:[#allocation10 + $0x24] sm:$0xf] }
 0x1cf   :  { %3579 = vmatpush.bf16.msra.mxu1 %v5453_v34  ;;  %v5425_v11 = vor.u32 %v6059_v40, %v5422_v41  ;;  %v5510_v34 = vld [vmem:[#allocation10 + $0xd8] sm:$0xf0] }
 0x1d0   :  { %v5513_v63 = vor.u32 %v6081_v60, %v5510_v34  ;;  %v5566_v34 = vld [vmem:[#allocation10 + $0x148] sm:$0xf0] }
 0x1d2   :  { %3238 = vmatpush.bf16.msra.mxu0 %v5149_v50  ;;  %v6083_v50 = vld [vmem:[#allocation10 + $0xe4] sm:$0xf] }
 0x1d3   :  { %3580 = vmatpush.bf16.msra.mxu1 %v5445_v15  ;;  %v5521_v46 = vor.u32 %v6083_v50, %v5518_v43  ;;  %v6076_v15 = vld [vmem:[#allocation10 + $0xa4] sm:$0xf0] }
 0x1d4   :  { %v5485_v45 = vor.u32 %v6076_v15, %v5484_v0 }
 0x1d5   :  { %v3090_v18 = vpop.f32.mrf.mxu2 }
 0x1d6   :  { %3239 = vmatpush.bf16.msra.mxu0 %v5137_v47  ;;  %v5492_v47 = vld [vmem:[#allocation10 + $0xb0] sm:$0xf] }
 0x1d7   :  { %3581 = vmatpush.bf16.msra.mxu1 %v5437_v5  ;;  %v5493_v10 = vor.u32 %v6078_v48, %v5492_v47  ;;  %v5502_v5 = vld [vmem:[#allocation10 + $0xc8] sm:$0xf0] }
 0x1d8   :  { %v5470_v47 = vld [vmem:[#allocation10 + $0x88] sm:$0xf0] }
 0x1da   :  { %3240 = vmatpush.bf16.msra.mxu0 %v5125_v49  ;;  %v6057_v49 = vld [vmem:[#allocation10 + $0x14] sm:$0xf] }
 0x1db   :  { %3582 = vmatpush.bf16.msra.mxu1 %v5429_v53  ;;  %v5417_v56 = vor.u32 %v6057_v49, %v5414_v54  ;;  %v6077_v53 = vld [vmem:[#allocation10 + $0xb4] sm:$0xf]  ;;  %v6096_v49 = vld [vmem:[#allocation10 + $0x144] sm:$0xf0]  ;;  %v6095_v54 = vld [vmem:[#allocation10 + $0x144] sm:$0xf] }
 0x1dc   :  { %v5497_v3 = vor.u32 %v6077_v53, %v5494_v12  ;;  %v5569_v0 = vor.u32 %v6095_v54, %v5566_v34 }
 0x1dd   :  { %3241 = vmatmul.bf16.vlgmr.msra.gmra.mxu0 %v6575_v33  ;;  %v6067_v33 = vld [vmem:[#allocation10 + $0x64] sm:$0xf]  ;;  %v6602_v61 = vpop.f32.mrf.mxu2 }
 0x1de   :  { %v5457_v8 = vor.u32 %v6067_v33, %v5454_v7  ;;  %3592 = vmatpush.bf16.msrb.mxu0 %v5525_v6  ;;  %v6589_v55 = vpop.f32.mrf.mxu3  ;;  %v5505_v33 = vor.u32 %v6079_v4, %v5502_v5  ;;  %v5476_v7 = vld [vmem:[#allocation10 + $0x90] sm:$0xf]  ;;  %v5468_v6 = vld [vmem:[#allocation10 + $0x80] sm:$0xf] }
 0x1df   :  { %3583 = vmatpush.bf16.msra.mxu1 %v5421_v19  ;;  %v5588_v19 = vld [vmem:[#allocation10 + $0x170] sm:$0xf] }
 0x1e0   :  { %3621 = vmatpush.bf16.msra.mxu3 %v5457_v8  ;;  %v6074_v8 = vld [vmem:[#allocation10 + $0x94] sm:$0xf0]  ;;  %v5589_v39 = vor.u32 %v6102_v21, %v5588_v19  ;;  %v5550_v21 = vld [vmem:[#allocation10 + $0x128] sm:$0xf0] }
 0x1e1   :  { %v5477_v13 = vor.u32 %v6074_v8, %v5476_v7  ;;  %v5558_v7 = vld [vmem:[#allocation10 + $0x138] sm:$0xf0] }
 0x1e2   :  { %3593 = vmatpush.bf16.msrb.mxu0 %v5517_v24  ;;  %v5590_v24 = vld [vmem:[#allocation10 + $0x178] sm:$0xf0]  ;;  %3606 = vmatpush.bf16.msrb.mxu2 %v5589_v39 }
 0x1e3   :  { %3584 = vmatpush.bf16.msra.mxu1 %v5413_v44  ;;  %v5593_v31 = vor.u32 %v6101_v23, %v5590_v24  ;;  %v6099_v44 = vld [vmem:[#allocation10 + $0x164] sm:$0xf]  ;;  %v5540_v24 = vld [vmem:[#allocation10 + $0x110] sm:$0xf] }
 0x1e4   :  { %3622 = vmatpush.bf16.msra.mxu3 %v5449_v20  ;;  %v5469_v20 = vor.u32 %v6072_v17, %v5468_v6  ;;  %v5585_v30 = vor.u32 %v6099_v44, %v5582_v29  ;;  %v6092_v6 = vld [vmem:[#allocation10 + $0x124] sm:$0xf0]  ;;  %v6091_v17 = vld [vmem:[#allocation10 + $0x124] sm:$0xf]  ;;  %v5532_v29 = vld [vmem:[#allocation10 + $0x100] sm:$0xf] }
 0x1e5   :  { %v3146_v8 = vpop.f32.mrf.mxu2  ;;  %v5553_v23 = vor.u32 %v6091_v17, %v5550_v21  ;;  %v6110_v21 = vld [vmem:[#allocation11 + $0x38] sm:$0xff] }
 0x1e6   :  { %3594 = vmatpush.bf16.msrb.mxu0 %v5509_v57  ;;  %v6593_v16 = vpop.f32.mrf.mxu3 }
 0x1e7   :  { %3585 = vmatpush.bf16.msra.mxu1 %v5405_v42  ;;  %v5478_v42 = vld [vmem:[#allocation10 + $0x98] sm:$0xf0] }
 0x1e8   :  { %3623 = vmatpush.bf16.msra.mxu3 %v5441_v28  ;;  %v6100_v28 = vld [vmem:[#allocation10 + $0x164] sm:$0xf0]  ;;  %v5481_v35 = vor.u32 %v6073_v32, %v5478_v42 }
 0x1e9   :  { %v5581_v57 = vor.u32 %v6100_v28, %v5580_v37  ;;  %v5542_v37 = vld [vmem:[#allocation10 + $0x118] sm:$0xf0] }
 0x1ea   :  { %3595 = vmatpush.bf16.msrb.mxu0 %v5501_v25  ;;  %v2419_v25 = vperm.slane %v6600_v1, 0 }
 0x1eb   :  { %3634 = vmatpush.bf16.msrb.mxu1 %v5529_v52  ;;  %3607 = vmatpush.bf16.msrb.mxu2 %v5581_v57  ;;  %v5572_v52 = vld [vmem:[#allocation10 + $0x150] sm:$0xf] }
 0x1ec   :  { %3624 = vmatpush.bf16.msra.mxu3 %v5433_v51  ;;  %v3076_v51 = vpop.f32.mrf.mxu0  ;;  %v5573_v41 = vor.u32 %v6098_v38, %v5572_v52  ;;  %v5534_v52 = vld [vmem:[#allocation10 + $0x108] sm:$0xf0] }
 0x1ed   :  { %v3077_v15 = vadd.f32 %v3076_v51, %v2419_v25  ;;  %v6088_v51 = vld [vmem:[#allocation10 + $0x104] sm:$0xf0] }
 0x1ee   :  { %3596 = vmatpush.bf16.msrb.mxu0 %v5493_v10  ;;  %v6605_v40 = vpop.f32.mrf.mxu3  ;;  %v5564_v10 = vld [vmem:[#allocation10 + $0x140] sm:$0xf] }
 0x1ef   :  { %3635 = vmatpush.bf16.msrb.mxu1 %v5521_v46  ;;  %v6071_v46 = vld [vmem:[#allocation10 + $0x84] sm:$0xf]  ;;  %3608 = vmatpush.bf16.msrb.mxu2 %v5573_v41  ;;  %v5565_v60 = vor.u32 %v6096_v49, %v5564_v10  ;;  %v3091_v4 = vadd.f32 %v3090_v18, %v3077_v15 }
 0x1f0   :  { %3625 = vmatpush.bf16.msra.mxu3 %v5425_v11  ;;  %v5574_v11 = vld [vmem:[#allocation10 + $0x158] sm:$0xf0]  ;;  %v5473_v48 = vor.u32 %v6071_v46, %v5470_v47 }
 0x1f1   :  { %v5577_v43 = vor.u32 %v6097_v22, %v5574_v11 }
 0x1f2   :  { %3597 = vmatpush.bf16.msrb.mxu0 %v5485_v45 }
 0x1f3   :  { %3636 = vmatpush.bf16.msrb.mxu1 %v5513_v63  ;;  %3609 = vmatpush.bf16.msrb.mxu2 %v5565_v60  ;;  %v2421_v60 = vperm.slane %v6600_v1, 2 }
 0x1f4   :  { %3626 = vmatpush.bf16.msra.mxu3 %v5417_v56  ;;  %v3075_v56 = vadd.f32 %v3074_v9, %v2419_v25 }
 0x1f6   :  { %3598 = vmatpush.bf16.msrb.mxu0 %v5477_v13  ;;  %v3089_v45 = vadd.f32 %v6591_v58, %v3075_v56  ;;  %v3105_v13 = vadd.f32 %v6593_v16, %v3091_v4  ;;  %v3160_v53 = vpop.f32.mrf.mxu3  ;;  %v5548_v58 = vld [vmem:[#allocation10 + $0x120] sm:$0xf]  ;;  %v6090_v16 = vld [vmem:[#allocation10 + $0x114] sm:$0xf0] }
 0x1f7   :  { %3637 = vmatpush.bf16.msrb.mxu1 %v5505_v33  ;;  %v5557_v33 = vor.u32 %v6094_v36, %v5556_v2  ;;  %v5549_v18 = vor.u32 %v6092_v6, %v5548_v58 }
 0x1f8   :  { %3627 = vmatpush.bf16.msra.mxu3 %v5409_v62  ;;  %v6093_v62 = vld [vmem:[#allocation10 + $0x134] sm:$0xf]  ;;  %v3103_v5 = vadd.f32 %v6589_v55, %v3089_v45 }
 0x1f9   :  { %v5561_v9 = vor.u32 %v6093_v62, %v5558_v7  ;;  %3610 = vmatpush.bf16.msrb.mxu2 %v5557_v33 }
 0x1fa   :  { %3599 = vmatpush.bf16.msrb.mxu0 %v5469_v20 }
 0x1fb   :  { %3638 = vmatpush.bf16.msrb.mxu1 %v5497_v3 }
 0x1fd   :  { %3611 = vmatpush.bf16.msrb.mxu2 %v5549_v18  ;;  %v6117_v18 = vld [vmem:[#allocation11 + $0x70] sm:$0xff] }
 0x1fe   :  { %v6595_v14 = vpop.f32.mrf.mxu1  ;;  %3648 = vmatpush.bf16.msra.mxu0 %v5593_v31  ;;  %v6089_v31 = vld [vmem:[#allocation10 + $0x114] sm:$0xf] }
 0x1ff   :  { %3639 = vmatpush.bf16.msrb.mxu1 %v5489_v27  ;;  %v3117_v12 = vadd.f32 %v6595_v14, %v3103_v5  ;;  %v2420_v14 = vperm.slane %v6600_v1, 1  ;;  %v5541_v27 = vor.u32 %v6090_v16, %v5540_v24  ;;  %v5545_v44 = vor.u32 %v6089_v31, %v5542_v37  ;;  %v6108_v24 = vld [vmem:[#allocation11 + $0x28] sm:$0xff]  ;;  %v6114_v16 = vld [vmem:[#allocation11 + $0x58] sm:$0xff]  ;;  %v6107_v31 = vld [vmem:[#allocation11 + $0x20] sm:$0xff] }
 0x200   :  { %v6105_v37 = vld [vmem:[#allocation11 + $0x10] sm:$0xff] }
 0x201   :  { %3612 = vmatpush.bf16.msrb.mxu2 %v5541_v27  ;;  %v3145_v32 = vadd.f32 %v6602_v61, %v2420_v14  ;;  %v3147_v11 = vadd.f32 %v3146_v8, %v2420_v14  ;;  %v6113_v14 = vld [vmem:[#allocation11 + $0x50] sm:$0xff] }
 0x202   :  { %3649 = vmatpush.bf16.msra.mxu0 %v5585_v30  ;;  %v6087_v30 = vld [vmem:[#allocation10 + $0x104] sm:$0xf] }
 0x203   :  { %3640 = vmatpush.bf16.msrb.mxu1 %v5481_v35  ;;  %v5533_v35 = vor.u32 %v6088_v51, %v5532_v29  ;;  %v5537_v25 = vor.u32 %v6087_v30, %v5534_v52  ;;  %v3159_v41 = vadd.f32 %v6605_v40, %v3145_v32  ;;  %v6103_v29 = vld [vmem:[#allocation11] sm:$0xff]  ;;  %v6126_v30 = vld [vmem:[#allocation13 + $0x38] sm:$0xff]  ;;  %v6125_v32 = vld [vmem:[#allocation13 + $0x30] sm:$0xff] }
 0x205   :  { %3613 = vmatpush.bf16.msrb.mxu2 %v5533_v35 }
 0x206   :  { %v3118_v50 = vpop.f32.mrf.mxu1  ;;  %3650 = vmatpush.bf16.msra.mxu0 %v5577_v43  ;;  %v3161_v43 = vadd.f32 %v3160_v53, %v3147_v11 }
 0x207   :  { %3641 = vmatpush.bf16.msrb.mxu1 %v5473_v48  ;;  %v3119_v20 = vadd.f32 %v3118_v50, %v3105_v13 }
 0x209   :  { %3800 = vmatpush.bf16.msra.mxu2 %v6110_v21 }
 0x20a   :  { %3651 = vmatpush.bf16.msra.mxu0 %v5569_v0  ;;  %v3214_v42 = vpop.f32.mrf.mxu3 }
 0x20b   :  { %v3215_v15 = vadd.f32 %v3214_v42, %v2421_v60 }
 0x20e   :  { %v3172_v3 = vpop.f32.mrf.mxu1  ;;  %3652 = vmatpush.bf16.msra.mxu0 %v5561_v9 }
 0x20f   :  { %v3173_v50 = vadd.f32 %v3172_v3, %v3159_v41 }
 0x212   :  { %3653 = vmatpush.bf16.msra.mxu0 %v5553_v23  ;;  %v3216_v54 = vpop.f32.mrf.mxu3  ;;  %v6109_v23 = vld [vmem:[#allocation11 + $0x30] sm:$0xff] }
 0x213   :  { %v3217_v33 = vadd.f32 %v3216_v54, %v2421_v60  ;;  %3801 = vmatpush.bf16.msra.mxu2 %v6109_v23 }
 0x216   :  { %3654 = vmatpush.bf16.msra.mxu0 %v5545_v44  ;;  %v3174_v38 = vpop.f32.mrf.mxu1  ;;  %v6104_v44 = vld [vmem:[#allocation11 + $0x8] sm:$0xff] }
 0x217   :  { %v3175_v48 = vadd.f32 %v3174_v38, %v3161_v43  ;;  %3802 = vmatpush.bf16.msra.mxu2 %v6108_v24  ;;  %v3332_v38 = vld [vmem:[%s6636_s6] sm:$0x3] }
 0x218   :  { %v3334_v43 = vperm.slane %v3332_v38, 0 }
 0x21a   :  { %3655 = vmatpush.bf16.msra.mxu0 %v5537_v25 }
 0x21b   :  { %3803 = vmatpush.bf16.msra.mxu2 %v6107_v31 }
 0x21e   :  { %v3228_v56 = vpop.f32.mrf.mxu1 }
 0x21f   :  { %v3229_v36 = vadd.f32 %v3228_v56, %v3215_v15 }
 0x226   :  { %v3230_v5 = vpop.f32.mrf.mxu1 }
 0x227   :  { %v3231_v7 = vadd.f32 %v3230_v5, %v3217_v33  ;;  %v6124_v33 = vld [vmem:[#allocation13 + $0x28] sm:$0xff] }
 0x23a   :  { %v3130_v63 = vpop.f32.mrf.mxu0 }
 0x23b   :  { %v3131_v19 = vadd.f32 %v3130_v63, %v3117_v12 }
 0x23d   :  { %v3275_v26 = vmax.f32 %v3131_v19, 0.0  ;;  %v6118_v19 = vld [vmem:[#allocation11 + $0x78] sm:$0xff] }
 0x23e   :  { %3814 = vmatpush.bf16.msrb.mxu3 %v6118_v19 }
 0x240   :  { %v3200_v28 = vpop.f32.mrf.mxu2 }
 0x241   :  { %v3270_v62 = vpop.f32.mrf.mxu3 }
 0x242   :  { %v3132_v55 = vpop.f32.mrf.mxu0  ;;  %3815 = vmatpush.bf16.msrb.mxu3 %v6117_v18 }
 0x243   :  { %v3133_v39 = vadd.f32 %v3132_v55, %v3119_v20  ;;  %v6116_v55 = vld [vmem:[#allocation11 + $0x68] sm:$0xff] }
 0x245   :  { %v3278_v59 = vmax.f32 %v3133_v39, 0.0  ;;  %v6115_v39 = vld [vmem:[#allocation11 + $0x60] sm:$0xff] }
 0x246   :  { %3816 = vmatpush.bf16.msrb.mxu3 %v6116_v55 }
 0x247   :  { %v3281_v57 = vpack.c.bf16 %v3278_v59, %v3275_v26  ;;  %v6106_v26 = vld [vmem:[#allocation11 + $0x18] sm:$0xff]  ;;  %v6112_v59 = vld [vmem:[#allocation11 + $0x48] sm:$0xff] }
 0x248   :  { %v3202_v47 = vpop.f32.mrf.mxu2  ;;  %3804 = vmatpush.bf16.msra.mxu2 %v6106_v26 }
 0x249   :  { %3586 = vmatmul.bf16.vlgmr.msra.gmra.mxu1 %v3281_v57  ;;  %3628 = vmatmul.bf16.vlgmr.msra.gmra.mxu3 %v3281_v57  ;;  %v3272_v3 = vpop.f32.mrf.mxu3 }
 0x24a   :  { %v3186_v22 = vpop.f32.mrf.mxu0  ;;  %3817 = vmatpush.bf16.msrb.mxu3 %v6115_v39  ;;  %3899 = vmatpush.bf16.msra.mxu1 %v6126_v30  ;;  %v6146_v39 = vld [vmem:[%s6640_s10] ss:$0 sm:$0xff] }
 0x24b   :  { %v3187_v46 = vadd.f32 %v3186_v22, %v3173_v50  ;;  %v3335_v22 = vperm.slane %v3332_v38, 1 }
 0x24c   :  { %3805 = vmatpush.bf16.msra.mxu2 %v6105_v37 }
 0x24d   :  { %v3201_v61 = vadd.f32 %v3200_v28, %v3187_v46  ;;  %v6111_v28 = vld [vmem:[#allocation11 + $0x40] sm:$0xff] }
 0x24e   :  { %3818 = vmatpush.bf16.msrb.mxu3 %v6114_v16  ;;  %3900 = vmatpush.bf16.msra.mxu1 %v6125_v32 }
 0x24f   :  { %v3276_v63 = vmax.f32 %v3201_v61, 0.0 }
 0x250   :  { %v3256_v45 = vpop.f32.mrf.mxu2  ;;  %3806 = vmatpush.bf16.msra.mxu2 %v6104_v44 }
 0x252   :  { %v3188_v10 = vpop.f32.mrf.mxu0  ;;  %3819 = vmatpush.bf16.msrb.mxu3 %v6113_v14  ;;  %3901 = vmatpush.bf16.msra.mxu1 %v6124_v33 }
 0x253   :  { %v3189_v49 = vadd.f32 %v3188_v10, %v3175_v48 }
 0x254   :  { %3807 = vmatpush.bf16.msra.mxu2 %v6103_v29 }
 0x255   :  { %v3203_v34 = vadd.f32 %v3202_v47, %v3189_v49 }
 0x256   :  { %3820 = vmatpush.bf16.msrb.mxu3 %v6112_v59 }
 0x257   :  { %v3279_v0 = vmax.f32 %v3203_v34, 0.0 }
 0x258   :  { %v3258_v53 = vpop.f32.mrf.mxu2 }
 0x259   :  { %v3282_v40 = vpack.c.bf16 %v3279_v0, %v3276_v63 }
 0x25a   :  { %v3242_v2 = vpop.f32.mrf.mxu0  ;;  %3821 = vmatpush.bf16.msrb.mxu3 %v6111_v28 }
 0x25b   :  { %3600 = vmatmul.bf16.vlgmr.msrb.gmra.mxu0 %v3282_v40  ;;  %3642 = vmatmul.bf16.vlgmr.msrb.gmra.mxu1 %v3282_v40  ;;  %v3243_v4 = vadd.f32 %v3242_v2, %v3229_v36 }
 0x25d   :  { %v3257_v8 = vadd.f32 %v3256_v45, %v3243_v4 }
 0x25f   :  { %v3271_v1 = vadd.f32 %v3270_v62, %v3257_v8  ;;  %v6122_v8 = vld [vmem:[#allocation13 + $0x18] sm:$0xff] }
 0x261   :  { %v3277_v6 = vmax.f32 %v3271_v1, 0.0 }
 0x262   :  { %v3244_v9 = vpop.f32.mrf.mxu0 }
 0x263   :  { %v3245_v13 = vadd.f32 %v3244_v9, %v3231_v7  ;;  %v6123_v7 = vld [vmem:[#allocation13 + $0x20] sm:$0xff]  ;;  %v6121_v9 = vld [vmem:[#allocation13 + $0x10] sm:$0xff] }
 0x264   :  { %3902 = vmatpush.bf16.msra.mxu1 %v6123_v7 }
 0x265   :  { %v3259_v12 = vadd.f32 %v3258_v53, %v3245_v13  ;;  %v6120_v13 = vld [vmem:[#allocation13 + $0x8] sm:$0xff]  ;;  %v6119_v53 = vld [vmem:[#allocation13] sm:$0xff] }
 0x267   :  { %v3273_v58 = vadd.f32 %v3272_v3, %v3259_v12  ;;  %v6145_v3 = vld [vmem:[%s6638_s8] ss:$0 sm:$0xff] }
 0x268   :  { %3903 = vmatpush.bf16.msra.mxu1 %v6122_v8 }
 0x269   :  { %v3280_v17 = vmax.f32 %v3273_v58, 0.0 }
 0x26b   :  { %v3283_v20 = vpack.c.bf16 %v3280_v17, %v3277_v6 }
 0x26c   :  { %3904 = vmatpush.bf16.msra.mxu1 %v6121_v9 }
 0x26d   :  { %3614 = vmatmul.bf16.vlgmr.msrb.gmra.mxu2 %v3283_v20  ;;  %3656 = vmatmul.bf16.vlgmr.msra.gmra.mxu0 %v3283_v20 }
 0x270   :  { %3905 = vmatpush.bf16.msra.mxu1 %v6120_v13 }
 0x274   :  { %3906 = vmatpush.bf16.msra.mxu1 %v6119_v53 }
 0x2c6   :  { %v3587_v27 = vpop.f32.mrf.mxu1 }
 0x2c7   :  { %v3588_v54 = vadd.f32 %v3587_v27, %v3334_v43 }
 0x2cc   :  { %v3629_v42 = vpop.f32.mrf.mxu3 }
 0x2cd   :  { %v3630_v11 = vadd.f32 %v3629_v42, %v3335_v22 }
 0x2ce   :  { %v3589_v51 = vpop.f32.mrf.mxu1 }
 0x2cf   :  { %v3590_v60 = vadd.f32 %v3589_v51, %v3334_v43 }
 0x2d4   :  { %v3631_v41 = vpop.f32.mrf.mxu3 }
 0x2d5   :  { %v3632_v46 = vadd.f32 %v3631_v41, %v3335_v22 }
 0x2d8   :  { %v3601_v57 = vpop.f32.mrf.mxu0  ;;  %v3643_v52 = vpop.f32.mrf.mxu1 }
 0x2d9   :  { %v3644_v47 = vadd.f32 %v3643_v52, %v3630_v11  ;;  %v3602_v34 = vadd.f32 %v3601_v57, %v3588_v54 }
 0x2e0   :  { %v3603_v35 = vpop.f32.mrf.mxu0  ;;  %v3645_v50 = vpop.f32.mrf.mxu1 }
 0x2e1   :  { %v3646_v10 = vadd.f32 %v3645_v50, %v3632_v46  ;;  %v3604_v15 = vadd.f32 %v3603_v35, %v3590_v60 }
 0x2ea   :  { %v3657_v25 = vpop.f32.mrf.mxu0 }
 0x2eb   :  { %v3658_v61 = vadd.f32 %v3657_v25, %v3644_v47 }
 0x2ed   :  { %v3663_v63 = vmax.f32 %v3658_v61, 0.0 }
 0x2f0   :  { %v3615_v48 = vpop.f32.mrf.mxu2 }
 0x2f1   :  { %v3616_v40 = vadd.f32 %v3615_v48, %v3602_v34 }
 0x2f2   :  { %v3659_v49 = vpop.f32.mrf.mxu0 }
 0x2f3   :  { %v3660_v56 = vadd.f32 %v3659_v49, %v3646_v10  ;;  %v3662_v62 = vmax.f32 %v3616_v40, 0.0 }
 0x2f5   :  { %v3665_v0 = vmax.f32 %v3660_v56, 0.0 }
 0x2f7   :  { %v3667_v45 = vpack.c.bf16 %v3665_v0, %v3663_v63 }
 0x2f8   :  { %v3617_v2 = vpop.f32.mrf.mxu2 }
 0x2f9   :  { %v3618_v36 = vadd.f32 %v3617_v2, %v3604_v15  ;;  %3822 = vmatmul.bf16.vlgmr.msrb.gmra.mxu3 %v3667_v45 }
 0x2fb   :  { %v3664_v4 = vmax.f32 %v3618_v36, 0.0 }
 0x2fd   :  { %v3666_v5 = vpack.c.bf16 %v3664_v4, %v3662_v62 }
 0x2ff   :  { %3808 = vmatmul.bf16.vlgmr.msra.gmra.mxu2 %v3666_v5 }
 0x37c   :  { %v3823_v1 = vpop.f32.mrf.mxu3 }
 0x382   :  { %v3809_v12 = vpop.f32.mrf.mxu2 }
 0x383   :  { %v3810_v58 = vadd.f32 %v6145_v3, %v3809_v12 }
 0x384   :  { %v3825_v19 = vpop.f32.mrf.mxu3 }
 0x385   :  { %v3824_v17 = vadd.f32 %v3823_v1, %v3810_v58 }
 0x387   :  { %v3828_v21 = vmax.f32 %v3824_v17, 0.0 }
 0x38a   :  { %v3811_v6 = vpop.f32.mrf.mxu2 }
 0x38b   :  { %v3812_v20 = vadd.f32 %v6145_v3, %v3811_v6 }
 0x38d   :  { %v3826_v18 = vadd.f32 %v3825_v19, %v3812_v20 }
 0x38f   :  { %v3829_v55 = vmax.f32 %v3826_v18, 0.0 }
 0x391   :  { %v3830_v23 = vpack.c.bf16 %v3829_v55, %v3828_v21 }
 0x393   :  { %3907 = vmatmul.bf16.vlgmr.msra.gmra.mxu1 %v3830_v23 }
 0x410   :  { %v3908_v24 = vpop.f32.mrf.mxu1 }
 0x411   :  { %v3909_v16 = vadd.f32 %v6146_v39, %v3908_v24 }
 0x413   :  { %3913 = vst [vmem:[#allocation14] sm:$0xff] %v3909_v16 }
 0x418   :  { %v3910_v31 = vpop.f32.mrf.mxu1 }
 0x419   :  { %v3911_v14 = vadd.f32 %v6146_v39, %v3910_v31 }
 0x41b   :  { %3914 = vst [vmem:[#allocation14 + $0x8] sm:$0xff] %v3911_v14 }
 0x41c   :  { %3927 = dma.vmem_to_hbm [thread:$0]  %s3920_s22, 256, %s3922_s23, [#allocation4], %s6364_s12, %s6364_s12, %s6365_s13  }
 0x41d   :  { %6348 = dma.done.wait [#allocation4], 256  }
 0x41e   :  { %6349 = vsyncadd [#allocation4], 4294967040 }
 0x41f   :  { %3932 = vsyncpa [#allocation3], 1 }
 0x420   :  { %3933 = vsyncpa [#allocation6], 1 }
 0x421   :  { %3934 = vsyncpa [#allocation9], 1 }
 0x422   :  { %3935 = vsyncpa [#allocation12], 1 }
 0x423   :  { %3936 = vsyncpa [#allocation4], 1 }

</bundles_post_ra>
